<compile_context>
chip_gen: v5e
topology: v5e:2x2
jax: 0.10.0
libtpu: 0.0.40
codegen_flags: <defaults>
</compile_context>

<pallas_src>
import jax
import jax.numpy as jnp
from jax.experimental import pallas as pl
from jax.experimental.pallas import tpu as pltpu


LANE = 128


def _round_up(v: int, m: int) -> int:
    return ((v + m - 1) // m) * m


# ----------------------------------------------------------------------------
# Fused kernel: GAT1 (H heads, concat) -> ELU -> GAT2 (1 head) -> ELU
#               -> Linear -> Sigmoid.  Everything stays resident in VMEM.
# ----------------------------------------------------------------------------
def make_gcn_kernel(heads1: int, c1: int, c2: int, neg_slope: float = 0.2):

    def softmax_attn(a_dst_col, a_src_row, mask_bf16):
        # a_dst_col [Np,1] f32, a_src_row [1,Np] f32, mask {0,1} bf16 [Np,Np]
        logits = a_dst_col + a_src_row                     # logits[i, j]: msg j -> i
        logits = jnp.maximum(logits, neg_slope * logits)   # LeakyReLU(0.2), 1 VALU op
        # Row max over ALL columns is a valid stability bound (exp arg <= 0);
        # masked entries are zeroed multiplicatively AFTER the exp.  Every row
        # has a self-loop, so the denominator stays > 0 for realistic logit
        # ranges (no -3e4 additive constant to keep in sync).
        m = jnp.max(logits, axis=-1, keepdims=True)
        p = jnp.exp(logits - m) * mask_bf16                # bf16 mask, no f32 copy kept
        denom = jnp.sum(p, axis=-1, keepdims=True)
        return p * pl.reciprocal(denom, approx=True)       # EUP, not VALU divide

    def elu(v):
        # ELU(alpha=1); clamp exp arg so the dead branch never produces inf.
        return jnp.where(v > 0, v, jnp.exp(jnp.minimum(v, 0.0)) - 1.0)

    def kernel(x_ref, mask_ref,
               w1aug_ref, b1_ref,
               w2_ref, a2_ref, b2_ref,
               wl_ref, bl_ref,
               out_ref, h1_scratch):
        mask = mask_ref[...]                               # {0,1} bf16, stays bf16

        # -------- Layer 1: GATConv(F_in -> C1, H heads, concat=True) --------
        # One MXU matmul produces both the per-head features and the
        # attention projections:  y1 = x @ [W1 | W1 @ A1].
        y1 = jnp.dot(x_ref[...].astype(jnp.bfloat16),
                     w1aug_ref[...].astype(jnp.bfloat16),
                     preferred_element_type=jnp.float32)   # [Np, H*C1 + 2H]
        xw1 = y1[:, :heads1 * c1]                          # lane-aligned slice (128)
        alpha1 = y1[:, heads1 * c1:]                       # [Np, 2H] (src | dst)
        asrc1_t = jnp.transpose(alpha1[:, :heads1])        # [H, Np], src half only

        for h in range(heads1):                            # static unrolled loop
            attn = softmax_attn(alpha1[:, heads1 + h:heads1 + h + 1],
                                asrc1_t[h:h + 1, :], mask)           # [Np, Np]
            # TODO(synk): attention dropout (p=self.dropout) skipped (eval mode).
            h1_scratch[:, h * c1:(h + 1) * c1] = jnp.dot(
                attn.astype(jnp.bfloat16),
                xw1[:, h * c1:(h + 1) * c1].astype(jnp.bfloat16),
                preferred_element_type=jnp.float32)                  # [Np, C1]

        h1 = elu(h1_scratch[...] + b1_ref[...])            # [Np, H*C1]

        # -------- Layer 2: GATConv(H*C1 -> C2, 1 head, concat=False) --------
        xw2 = jnp.dot(h1.astype(jnp.bfloat16),
                      w2_ref[...].astype(jnp.bfloat16),
                      preferred_element_type=jnp.float32)            # [Np, C2]
        alpha2 = jnp.dot(xw2.astype(jnp.bfloat16),
                         a2_ref[...].astype(jnp.bfloat16),
                         preferred_element_type=jnp.float32)         # [Np, 2]
        attn2 = softmax_attn(alpha2[:, 1:2],
                             jnp.transpose(alpha2[:, 0:1]), mask)
        h2 = jnp.dot(attn2.astype(jnp.bfloat16), xw2.astype(jnp.bfloat16),
                     preferred_element_type=jnp.float32)   # 1 head -> mean == identity
        h2 = elu(h2 + b2_ref[...])                         # [Np, C2], never leaves VMEM

        # -------- Linear (padded to 128 output lanes) + Sigmoid --------------
        y = jnp.dot(h2.astype(jnp.bfloat16), wl_ref[...].astype(jnp.bfloat16),
                    preferred_element_type=jnp.float32) + bl_ref[...]
        out_ref[...] = jax.nn.sigmoid(y)                   # lane-dense store

    return kernel


# ----------------------------------------------------------------------------
# JAX glue.
# ----------------------------------------------------------------------------
def build_adj_mask(edge_index, n_pad):
    """{0,1} bf16 dense mask: mask[i, j] = 1 iff edge j->i or i == j.

    Built directly in bf16 (no f32 intermediate).  For a static graph this can
    be computed once and cached across forward passes.
    """
    mask = jnp.zeros((n_pad, n_pad), jnp.bfloat16)
    mask = mask.at[edge_index[1], edge_index[0]].set(1.0)
    idx = jnp.arange(n_pad)
    mask = mask.at[idx, idx].set(1.0)      # self-loops (also on padded rows)
    return mask


def build_att_matrix(att_src, att_dst):
    """[H, C] x 2  ->  block-diagonal [H*C, 2H] so alpha = xw @ A."""
    h, c = att_src.shape
    a = jnp.zeros((h * c, 2 * h), jnp.float32)
    for i in range(h):                                      # trace-time, H is tiny
        a = a.at[i * c:(i + 1) * c, i].set(att_src[i])
        a = a.at[i * c:(i + 1) * c, h + i].set(att_dst[i])
    return a


def _vmem_limit_bytes(n_pad, resident_bytes):
    # Resident operands/outputs/scratch + headroom for a few live [Np, Np]
    # f32 temporaries inside one attention head, capped to the chip's
    # physical VMEM (64 MiB on v7x, 128 MiB on v5e/v6e).
    need = int(resident_bytes + 4 * 4 * n_pad * n_pad + (8 << 20))
    cap = 100 * 1024 * 1024
    try:
        info_fn = getattr(pltpu, "get_tpu_info", None)
        if info_fn is not None:
            cap = int(0.85 * info_fn().vmem_capacity_bytes)
    except Exception:
        pass
    return max(32 * 1024 * 1024, min(cap, need))


def gcn_forward(params, x, edge_index, edge_attr, *, heads, hidden):
    del edge_attr  # ignored (see TODO at top)
    n, f_in = x.shape
    c1 = hidden
    c2 = hidden // 4
    out_c = params["wl"].shape[1]

    # Pad nodes to a lane multiple so every [Np, Np] elementwise op, row
    # reduction and attn @ xh matmul runs on dense vregs.
    n_pad = _round_up(max(n, LANE), LANE)

    mask = build_adj_mask(edge_index, n_pad)                # {0,1} bf16
    x_p = jnp.zeros((n_pad, f_in), jnp.float32).at[:n, :].set(x)

    # Fold the layer-1 attention projection into the feature matmul.
    a1 = build_att_matrix(params["as1"], params["ad1"])     # [H*C1, 2H]
    w1aug = jnp.concatenate([params["w1"], params["w1"] @ a1], axis=-1)
    a2 = build_att_matrix(params["as2"], params["ad2"])     # [C2, 2]

    # Pad the final Linear to 128 output lanes -> unmasked vst.
    wl_pad = jnp.zeros((c2, LANE), jnp.float32).at[:, :out_c].set(params["wl"])
    bl_pad = jnp.zeros((1, LANE), jnp.float32).at[:, :out_c].set(
        params["bl"].reshape(1, out_c))

    operands = (x_p, mask, w1aug, params["b1"].reshape(1, heads * c1),
                params["w2"], a2, params["b2"].reshape(1, c2),
                wl_pad, bl_pad)

    resident = (sum(int(o.size) * o.dtype.itemsize for o in operands)
                + n_pad * LANE * 4              # output
                + n_pad * heads * c1 * 4)       # VMEM scratch

    flops = int(2 * n_pad * f_in * int(w1aug.shape[1])      # x @ [W1 | W1 A1]
                + heads * 2 * n_pad * n_pad * c1             # attn @ xh (layer 1)
                + 2 * n_pad * (heads * c1) * c2              # h1 @ W2
                + 2 * n_pad * c2 * 2                         # alpha2
                + 2 * n_pad * n_pad * c2                     # attn @ xh (layer 2)
                + 2 * n_pad * c2 * LANE)                     # linear (padded)
    transcendentals = int((heads + 1) * n_pad * n_pad        # softmax exp
                          + n_pad * (heads * c1 + c2 + LANE))  # ELU + sigmoid
    bytes_accessed = int(resident + n_pad * LANE * 4)

    vmem = pl.BlockSpec(memory_space=pltpu.MemorySpace.VMEM)
    kernel = make_gcn_kernel(heads, c1, c2)

    out = pl.pallas_call(
        kernel,
        out_shape=jax.ShapeDtypeStruct((n_pad, LANE), jnp.float32),
        in_specs=[vmem] * len(operands),
        out_specs=vmem,
        scratch_shapes=[pltpu.VMEM((n_pad, heads * c1), jnp.float32)],
        compiler_params=pltpu.CompilerParams(
            vmem_limit_bytes=_vmem_limit_bytes(n_pad, resident)),
        cost_estimate=pl.CostEstimate(flops=flops,
                                      transcendentals=transcendentals,
                                      bytes_accessed=bytes_accessed),
    )(*operands)
    return out[:n, :out_c]


# ----------------------------------------------------------------------------
# Pure-JAX f32 reference (eval-mode PyG GATConv semantics) for validation.
# ----------------------------------------------------------------------------
def gcn_reference(params, x, edge_index, *, heads, hidden):
    n = x.shape[0]
    c1, c2 = hidden, hidden // 4
    adj = jnp.zeros((n, n), jnp.float32)
    adj = adj.at[edge_index[1], edge_index[0]].set(1.0)
    adj = adj.at[jnp.arange(n), jnp.arange(n)].set(1.0)

    def gat(h_in, w, a_src, a_dst, b, nh, c, concat):
        xw = (h_in @ w).reshape(n, nh, c)
        al_s = jnp.einsum("nhc,hc->nh", xw, a_src)
        al_d = jnp.einsum("nhc,hc->nh", xw, a_dst)
        outs = []
        for hd in range(nh):
            logits = al_d[:, hd][:, None] + al_s[:, hd][None, :]
            logits = jnp.where(logits > 0, logits, 0.2 * logits)
            logits = jnp.where(adj > 0, logits, -jnp.inf)
            attn = jax.nn.softmax(logits, axis=-1)
            outs.append(attn @ xw[:, hd, :])
        out = jnp.concatenate(outs, -1) if concat else sum(outs) / nh
        return out + b

    h1 = jax.nn.elu(gat(x, params["w1"], params["as1"], params["ad1"],
                        params["b1"], heads, c1, True))
    h2 = jax.nn.elu(gat(h1, params["w2"], params["as2"], params["ad2"],
                        params["b2"], 1, c2, False))
    return jax.nn.sigmoid(h2 @ params["wl"] + params["bl"])


if __name__ == "__main__":
    # Small shapes consistent with the module.
    N = 8            # number of graph nodes
    IN_C = 16        # in_channels
    HID = 32         # hidden_channels
    HEADS = 4        # heads
    OUT_C = 4        # out_channels
    EDGE_DIM = 3     # edge_attr feature dim (unused by GATConv here)

    key = jax.random.PRNGKey(0)
    ks = jax.random.split(key, 10)

    # Node features.
    x = jax.random.normal(ks[0], (N, IN_C), jnp.float32)

    # Deterministic bidirectional ring graph: edge_index[0]=source, [1]=target.
    src = jnp.concatenate([jnp.arange(N), (jnp.arange(N) + 1) % N])
    dst = jnp.concatenate([(jnp.arange(N) + 1) % N, jnp.arange(N)])
    edge_index = jnp.stack([src, dst]).astype(jnp.int32)          # [2, 2N]
    edge_attr = jax.random.normal(ks[1], (2 * N, EDGE_DIM), jnp.float32)

    # Deterministic parameter init (synthetic, not a checkpoint load).
    s = 0.1
    params = {
        # conv1: GATConv(IN_C, HID, heads=HEADS, concat=True)
        "w1":  s * jax.random.normal(ks[2], (IN_C, HEADS * HID), jnp.float32),
        "as1": s * jax.random.normal(ks[3], (HEADS, HID), jnp.float32),
        "ad1": s * jax.random.normal(ks[4], (HEADS, HID), jnp.float32),
        "b1":  jnp.zeros((HEADS * HID,), jnp.float32),
        # conv2: GATConv(HID*HEADS, HID//4, heads=1, concat=False)
        "w2":  s * jax.random.normal(ks[5], (HEADS * HID, HID // 4), jnp.float32),
        "as2": s * jax.random.normal(ks[6], (1, HID // 4), jnp.float32),
        "ad2": s * jax.random.normal(ks[7], (1, HID // 4), jnp.float32),
        "b2":  jnp.zeros((HID // 4,), jnp.float32),
        # lin: Linear(HID//4, OUT_C)
        "wl":  s * jax.random.normal(ks[8], (HID // 4, OUT_C), jnp.float32),
        "bl":  s * jax.random.normal(ks[9], (OUT_C,), jnp.float32),
    }

    out = gcn_forward(params, x, edge_index, edge_attr, heads=HEADS, hidden=HID)
    out = jax.block_until_ready(out)

    assert out.shape == (N, OUT_C)
    assert bool(jnp.all(jnp.isfinite(out)))
    assert bool(jnp.all((out > 0.0) & (out < 1.0)))   # sigmoid range

    # Loose tolerance: kernel uses bf16 matmuls + approx reciprocal.
    ref = gcn_reference(params, x, edge_index, heads=HEADS, hidden=HID)
    assert bool(jnp.allclose(out, ref, rtol=5e-2, atol=5e-2))

    print("KERNEL_OK")
</pallas_src>

<mosaic_0001>
module attributes {stable_mosaic.version = 11 : i64} {
  func.func @kernel(%arg0: memref<128x16xf32, #tpu.memory_space<vmem>>, %arg1: memref<128x128xbf16, #tpu.memory_space<vmem>>, %arg2: memref<16x136xf32, #tpu.memory_space<vmem>>, %arg3: memref<1x128xf32, #tpu.memory_space<vmem>>, %arg4: memref<128x8xf32, #tpu.memory_space<vmem>>, %arg5: memref<8x2xf32, #tpu.memory_space<vmem>>, %arg6: memref<1x8xf32, #tpu.memory_space<vmem>>, %arg7: memref<8x128xf32, #tpu.memory_space<vmem>>, %arg8: memref<1x128xf32, #tpu.memory_space<vmem>>, %arg9: memref<128x128xf32, #tpu.memory_space<vmem>>, %arg10: memref<128x128xf32, #tpu.memory_space<vmem>>) attributes {dimension_semantics = [], scalar_prefetch = 0 : i64, scratch_operands = 1 : i64, tpu.core_type = #tpu.core_type<tc>} {
    %c0 = arith.constant 0 : index
    %c0_0 = arith.constant 0 : index
    %0 = vector.load %arg1[%c0, %c0_0] : memref<128x128xbf16, #tpu.memory_space<vmem>>, vector<128x128xbf16>
    %c0_1 = arith.constant 0 : index
    %c0_2 = arith.constant 0 : index
    %1 = vector.load %arg0[%c0_1, %c0_2] : memref<128x16xf32, #tpu.memory_space<vmem>>, vector<128x16xf32>
    %2 = arith.truncf %1 : vector<128x16xf32> to vector<128x16xbf16>
    %c0_3 = arith.constant 0 : index
    %c0_4 = arith.constant 0 : index
    %3 = vector.load %arg2[%c0_3, %c0_4] : memref<16x136xf32, #tpu.memory_space<vmem>>, vector<16x136xf32>
    %4 = arith.truncf %3 : vector<16x136xf32> to vector<16x136xbf16>
    %cst = arith.constant dense<0.000000e+00> : vector<128x136xf32>
    %5 = tpu.matmul %2, %4, %cst {dimension_numbers = #tpu.dot_dimension_numbers<[1], [0], [0], [1], [0, 0, 1, 1], [], []>} : vector<128x16xbf16>, vector<16x136xbf16>, vector<128x136xf32> -> vector<128x136xf32>
    %6 = vector.extract_strided_slice %5 {offsets = [0, 0], sizes = [128, 128], strides = [1, 1]} : vector<128x136xf32> to vector<128x128xf32>
    %7 = vector.extract_strided_slice %5 {offsets = [0, 128], sizes = [128, 8], strides = [1, 1]} : vector<128x136xf32> to vector<128x8xf32>
    %8 = vector.extract_strided_slice %7 {offsets = [0, 0], sizes = [128, 4], strides = [1, 1]} : vector<128x8xf32> to vector<128x4xf32>
    %9 = tpu.transpose %8, [1, 0] : vector<128x4xf32> -> vector<4x128xf32>
    %10 = vector.extract_strided_slice %7 {offsets = [0, 4], sizes = [128, 1], strides = [1, 1]} : vector<128x8xf32> to vector<128x1xf32>
    %11 = vector.extract_strided_slice %9 {offsets = [0, 0], sizes = [1, 128], strides = [1, 1]} : vector<4x128xf32> to vector<1x128xf32>
    %12 = vector.broadcast %10 : vector<128x1xf32> to vector<128x128xf32>
    %13 = vector.broadcast %11 : vector<1x128xf32> to vector<128x128xf32>
    %14 = arith.addf %12, %13 : vector<128x128xf32>
    %cst_5 = arith.constant 2.000000e-01 : f32
    %15 = vector.broadcast %cst_5 : f32 to vector<128x128xf32>
    %16 = arith.mulf %15, %14 : vector<128x128xf32>
    %17 = arith.maximumf %14, %16 : vector<128x128xf32>
    %cst_6 = arith.constant dense<0xFF800000> : vector<128xf32>
    %18 = vector.multi_reduction <maximumf>, %17, %cst_6 [1] : vector<128x128xf32> to vector<128xf32>
    %19 = vector.shape_cast %18 : vector<128xf32> to vector<128x1xf32>
    %20 = vector.broadcast %19 : vector<128x1xf32> to vector<128x128xf32>
    %21 = arith.subf %17, %20 : vector<128x128xf32>
    %22 = math.exp %21 : vector<128x128xf32>
    %23 = arith.extf %0 : vector<128x128xbf16> to vector<128x128xf32>
    %24 = arith.mulf %22, %23 : vector<128x128xf32>
    %cst_7 = arith.constant dense<0.000000e+00> : vector<128xf32>
    %25 = vector.multi_reduction <add>, %24, %cst_7 [1] : vector<128x128xf32> to vector<128xf32>
    %26 = vector.shape_cast %25 : vector<128xf32> to vector<128x1xf32>
    %27 = tpu.reciprocal %26 {approx = true} : vector<128x1xf32> -> vector<128x1xf32>
    %28 = vector.broadcast %27 : vector<128x1xf32> to vector<128x128xf32>
    %29 = arith.mulf %24, %28 : vector<128x128xf32>
    %30 = arith.truncf %29 : vector<128x128xf32> to vector<128x128xbf16>
    %31 = vector.extract_strided_slice %6 {offsets = [0, 0], sizes = [128, 32], strides = [1, 1]} : vector<128x128xf32> to vector<128x32xf32>
    %32 = arith.truncf %31 : vector<128x32xf32> to vector<128x32xbf16>
    %cst_8 = arith.constant dense<0.000000e+00> : vector<128x32xf32>
    %33 = tpu.matmul %30, %32, %cst_8 {dimension_numbers = #tpu.dot_dimension_numbers<[1], [0], [0], [1], [0, 0, 1, 1], [], []>} : vector<128x128xbf16>, vector<128x32xbf16>, vector<128x32xf32> -> vector<128x32xf32>
    %c0_9 = arith.constant 0 : index
    %c0_10 = arith.constant 0 : index
    %34 = vector.load %arg10[%c0_9, %c0_10] : memref<128x128xf32, #tpu.memory_space<vmem>>, vector<128x32xf32>
    tpu.vector_store %arg10[%c0_9, %c0_10], %33 {strides = array<i32>} : memref<128x128xf32, #tpu.memory_space<vmem>>, vector<128x32xf32>,
    %35 = vector.extract_strided_slice %7 {offsets = [0, 5], sizes = [128, 1], strides = [1, 1]} : vector<128x8xf32> to vector<128x1xf32>
    %36 = vector.extract_strided_slice %9 {offsets = [1, 0], sizes = [1, 128], strides = [1, 1]} : vector<4x128xf32> to vector<1x128xf32>
    %37 = vector.broadcast %35 : vector<128x1xf32> to vector<128x128xf32>
    %38 = vector.broadcast %36 : vector<1x128xf32> to vector<128x128xf32>
    %39 = arith.addf %37, %38 : vector<128x128xf32>
    %cst_11 = arith.constant 2.000000e-01 : f32
    %40 = vector.broadcast %cst_11 : f32 to vector<128x128xf32>
    %41 = arith.mulf %40, %39 : vector<128x128xf32>
    %42 = arith.maximumf %39, %41 : vector<128x128xf32>
    %cst_12 = arith.constant dense<0xFF800000> : vector<128xf32>
    %43 = vector.multi_reduction <maximumf>, %42, %cst_12 [1] : vector<128x128xf32> to vector<128xf32>
    %44 = vector.shape_cast %43 : vector<128xf32> to vector<128x1xf32>
    %45 = vector.broadcast %44 : vector<128x1xf32> to vector<128x128xf32>
    %46 = arith.subf %42, %45 : vector<128x128xf32>
    %47 = math.exp %46 : vector<128x128xf32>
    %48 = arith.extf %0 : vector<128x128xbf16> to vector<128x128xf32>
    %49 = arith.mulf %47, %48 : vector<128x128xf32>
    %cst_13 = arith.constant dense<0.000000e+00> : vector<128xf32>
    %50 = vector.multi_reduction <add>, %49, %cst_13 [1] : vector<128x128xf32> to vector<128xf32>
    %51 = vector.shape_cast %50 : vector<128xf32> to vector<128x1xf32>
    %52 = tpu.reciprocal %51 {approx = true} : vector<128x1xf32> -> vector<128x1xf32>
    %53 = vector.broadcast %52 : vector<128x1xf32> to vector<128x128xf32>
    %54 = arith.mulf %49, %53 : vector<128x128xf32>
    %55 = arith.truncf %54 : vector<128x128xf32> to vector<128x128xbf16>
    %56 = vector.extract_strided_slice %6 {offsets = [0, 32], sizes = [128, 32], strides = [1, 1]} : vector<128x128xf32> to vector<128x32xf32>
    %57 = arith.truncf %56 : vector<128x32xf32> to vector<128x32xbf16>
    %cst_14 = arith.constant dense<0.000000e+00> : vector<128x32xf32>
    %58 = tpu.matmul %55, %57, %cst_14 {dimension_numbers = #tpu.dot_dimension_numbers<[1], [0], [0], [1], [0, 0, 1, 1], [], []>} : vector<128x128xbf16>, vector<128x32xbf16>, vector<128x32xf32> -> vector<128x32xf32>
    %c0_15 = arith.constant 0 : index
    %c32 = arith.constant 32 : index
    %59 = vector.load %arg10[%c0_15, %c32] : memref<128x128xf32, #tpu.memory_space<vmem>>, vector<128x32xf32>
    tpu.vector_store %arg10[%c0_15, %c32], %58 {strides = array<i32>} : memref<128x128xf32, #tpu.memory_space<vmem>>, vector<128x32xf32>,
    %60 = vector.extract_strided_slice %7 {offsets = [0, 6], sizes = [128, 1], strides = [1, 1]} : vector<128x8xf32> to vector<128x1xf32>
    %61 = vector.extract_strided_slice %9 {offsets = [2, 0], sizes = [1, 128], strides = [1, 1]} : vector<4x128xf32> to vector<1x128xf32>
    %62 = vector.broadcast %60 : vector<128x1xf32> to vector<128x128xf32>
    %63 = vector.broadcast %61 : vector<1x128xf32> to vector<128x128xf32>
    %64 = arith.addf %62, %63 : vector<128x128xf32>
    %cst_16 = arith.constant 2.000000e-01 : f32
    %65 = vector.broadcast %cst_16 : f32 to vector<128x128xf32>
    %66 = arith.mulf %65, %64 : vector<128x128xf32>
    %67 = arith.maximumf %64, %66 : vector<128x128xf32>
    %cst_17 = arith.constant dense<0xFF800000> : vector<128xf32>
    %68 = vector.multi_reduction <maximumf>, %67, %cst_17 [1] : vector<128x128xf32> to vector<128xf32>
    %69 = vector.shape_cast %68 : vector<128xf32> to vector<128x1xf32>
    %70 = vector.broadcast %69 : vector<128x1xf32> to vector<128x128xf32>
    %71 = arith.subf %67, %70 : vector<128x128xf32>
    %72 = math.exp %71 : vector<128x128xf32>
    %73 = arith.extf %0 : vector<128x128xbf16> to vector<128x128xf32>
    %74 = arith.mulf %72, %73 : vector<128x128xf32>
    %cst_18 = arith.constant dense<0.000000e+00> : vector<128xf32>
    %75 = vector.multi_reduction <add>, %74, %cst_18 [1] : vector<128x128xf32> to vector<128xf32>
    %76 = vector.shape_cast %75 : vector<128xf32> to vector<128x1xf32>
    %77 = tpu.reciprocal %76 {approx = true} : vector<128x1xf32> -> vector<128x1xf32>
    %78 = vector.broadcast %77 : vector<128x1xf32> to vector<128x128xf32>
    %79 = arith.mulf %74, %78 : vector<128x128xf32>
    %80 = arith.truncf %79 : vector<128x128xf32> to vector<128x128xbf16>
    %81 = vector.extract_strided_slice %6 {offsets = [0, 64], sizes = [128, 32], strides = [1, 1]} : vector<128x128xf32> to vector<128x32xf32>
    %82 = arith.truncf %81 : vector<128x32xf32> to vector<128x32xbf16>
    %cst_19 = arith.constant dense<0.000000e+00> : vector<128x32xf32>
    %83 = tpu.matmul %80, %82, %cst_19 {dimension_numbers = #tpu.dot_dimension_numbers<[1], [0], [0], [1], [0, 0, 1, 1], [], []>} : vector<128x128xbf16>, vector<128x32xbf16>, vector<128x32xf32> -> vector<128x32xf32>
    %c0_20 = arith.constant 0 : index
    %c64 = arith.constant 64 : index
    %84 = vector.load %arg10[%c0_20, %c64] : memref<128x128xf32, #tpu.memory_space<vmem>>, vector<128x32xf32>
    tpu.vector_store %arg10[%c0_20, %c64], %83 {strides = array<i32>} : memref<128x128xf32, #tpu.memory_space<vmem>>, vector<128x32xf32>,
    %85 = vector.extract_strided_slice %7 {offsets = [0, 7], sizes = [128, 1], strides = [1, 1]} : vector<128x8xf32> to vector<128x1xf32>
    %86 = vector.extract_strided_slice %9 {offsets = [3, 0], sizes = [1, 128], strides = [1, 1]} : vector<4x128xf32> to vector<1x128xf32>
    %87 = vector.broadcast %85 : vector<128x1xf32> to vector<128x128xf32>
    %88 = vector.broadcast %86 : vector<1x128xf32> to vector<128x128xf32>
    %89 = arith.addf %87, %88 : vector<128x128xf32>
    %cst_21 = arith.constant 2.000000e-01 : f32
    %90 = vector.broadcast %cst_21 : f32 to vector<128x128xf32>
    %91 = arith.mulf %90, %89 : vector<128x128xf32>
    %92 = arith.maximumf %89, %91 : vector<128x128xf32>
    %cst_22 = arith.constant dense<0xFF800000> : vector<128xf32>
    %93 = vector.multi_reduction <maximumf>, %92, %cst_22 [1] : vector<128x128xf32> to vector<128xf32>
    %94 = vector.shape_cast %93 : vector<128xf32> to vector<128x1xf32>
    %95 = vector.broadcast %94 : vector<128x1xf32> to vector<128x128xf32>
    %96 = arith.subf %92, %95 : vector<128x128xf32>
    %97 = math.exp %96 : vector<128x128xf32>
    %98 = arith.extf %0 : vector<128x128xbf16> to vector<128x128xf32>
    %99 = arith.mulf %97, %98 : vector<128x128xf32>
    %cst_23 = arith.constant dense<0.000000e+00> : vector<128xf32>
    %100 = vector.multi_reduction <add>, %99, %cst_23 [1] : vector<128x128xf32> to vector<128xf32>
    %101 = vector.shape_cast %100 : vector<128xf32> to vector<128x1xf32>
    %102 = tpu.reciprocal %101 {approx = true} : vector<128x1xf32> -> vector<128x1xf32>
    %103 = vector.broadcast %102 : vector<128x1xf32> to vector<128x128xf32>
    %104 = arith.mulf %99, %103 : vector<128x128xf32>
    %105 = arith.truncf %104 : vector<128x128xf32> to vector<128x128xbf16>
    %106 = vector.extract_strided_slice %6 {offsets = [0, 96], sizes = [128, 32], strides = [1, 1]} : vector<128x128xf32> to vector<128x32xf32>
    %107 = arith.truncf %106 : vector<128x32xf32> to vector<128x32xbf16>
    %cst_24 = arith.constant dense<0.000000e+00> : vector<128x32xf32>
    %108 = tpu.matmul %105, %107, %cst_24 {dimension_numbers = #tpu.dot_dimension_numbers<[1], [0], [0], [1], [0, 0, 1, 1], [], []>} : vector<128x128xbf16>, vector<128x32xbf16>, vector<128x32xf32> -> vector<128x32xf32>
    %c0_25 = arith.constant 0 : index
    %c96 = arith.constant 96 : index
    %109 = vector.load %arg10[%c0_25, %c96] : memref<128x128xf32, #tpu.memory_space<vmem>>, vector<128x32xf32>
    tpu.vector_store %arg10[%c0_25, %c96], %108 {strides = array<i32>} : memref<128x128xf32, #tpu.memory_space<vmem>>, vector<128x32xf32>,
    %c0_26 = arith.constant 0 : index
    %c0_27 = arith.constant 0 : index
    %110 = vector.load %arg10[%c0_26, %c0_27] : memref<128x128xf32, #tpu.memory_space<vmem>>, vector<128x128xf32>
    %c0_28 = arith.constant 0 : index
    %c0_29 = arith.constant 0 : index
    %111 = vector.load %arg3[%c0_28, %c0_29] : memref<1x128xf32, #tpu.memory_space<vmem>>, vector<1x128xf32>
    %112 = vector.broadcast %111 : vector<1x128xf32> to vector<128x128xf32>
    %113 = arith.addf %110, %112 : vector<128x128xf32>
    %cst_30 = arith.constant 0.000000e+00 : f32
    %114 = vector.broadcast %cst_30 : f32 to vector<128x128xf32>
    %115 = arith.cmpf ogt, %113, %114 : vector<128x128xf32>
    %cst_31 = arith.constant 0.000000e+00 : f32
    %116 = vector.broadcast %cst_31 : f32 to vector<128x128xf32>
    %117 = arith.minimumf %113, %116 : vector<128x128xf32>
    %118 = math.exp %117 : vector<128x128xf32>
    %cst_32 = arith.constant 1.000000e+00 : f32
    %119 = vector.broadcast %cst_32 : f32 to vector<128x128xf32>
    %120 = arith.subf %118, %119 : vector<128x128xf32>
    %121 = arith.select %115, %113, %120 : vector<128x128xi1>, vector<128x128xf32>
    %122 = arith.truncf %121 : vector<128x128xf32> to vector<128x128xbf16>
    %c0_33 = arith.constant 0 : index
    %c0_34 = arith.constant 0 : index
    %123 = vector.load %arg4[%c0_33, %c0_34] : memref<128x8xf32, #tpu.memory_space<vmem>>, vector<128x8xf32>
    %124 = arith.truncf %123 : vector<128x8xf32> to vector<128x8xbf16>
    %cst_35 = arith.constant dense<0.000000e+00> : vector<128x8xf32>
    %125 = tpu.matmul %122, %124, %cst_35 {dimension_numbers = #tpu.dot_dimension_numbers<[1], [0], [0], [1], [0, 0, 1, 1], [], []>} : vector<128x128xbf16>, vector<128x8xbf16>, vector<128x8xf32> -> vector<128x8xf32>
    %126 = arith.truncf %125 : vector<128x8xf32> to vector<128x8xbf16>
    %c0_36 = arith.constant 0 : index
    %c0_37 = arith.constant 0 : index
    %127 = vector.load %arg5[%c0_36, %c0_37] : memref<8x2xf32, #tpu.memory_space<vmem>>, vector<8x2xf32>
    %128 = arith.truncf %127 : vector<8x2xf32> to vector<8x2xbf16>
    %cst_38 = arith.constant dense<0.000000e+00> : vector<128x2xf32>
    %129 = tpu.matmul %126, %128, %cst_38 {dimension_numbers = #tpu.dot_dimension_numbers<[1], [0], [0], [1], [0, 0, 1, 1], [], []>} : vector<128x8xbf16>, vector<8x2xbf16>, vector<128x2xf32> -> vector<128x2xf32>
    %130 = vector.extract_strided_slice %129 {offsets = [0, 1], sizes = [128, 1], strides = [1, 1]} : vector<128x2xf32> to vector<128x1xf32>
    %131 = vector.extract_strided_slice %129 {offsets = [0, 0], sizes = [128, 1], strides = [1, 1]} : vector<128x2xf32> to vector<128x1xf32>
    %132 = tpu.transpose %131, [1, 0] : vector<128x1xf32> -> vector<1x128xf32>
    %133 = vector.broadcast %130 : vector<128x1xf32> to vector<128x128xf32>
    %134 = vector.broadcast %132 : vector<1x128xf32> to vector<128x128xf32>
    %135 = arith.addf %133, %134 : vector<128x128xf32>
    %cst_39 = arith.constant 2.000000e-01 : f32
    %136 = vector.broadcast %cst_39 : f32 to vector<128x128xf32>
    %137 = arith.mulf %136, %135 : vector<128x128xf32>
    %138 = arith.maximumf %135, %137 : vector<128x128xf32>
    %cst_40 = arith.constant dense<0xFF800000> : vector<128xf32>
    %139 = vector.multi_reduction <maximumf>, %138, %cst_40 [1] : vector<128x128xf32> to vector<128xf32>
    %140 = vector.shape_cast %139 : vector<128xf32> to vector<128x1xf32>
    %141 = vector.broadcast %140 : vector<128x1xf32> to vector<128x128xf32>
    %142 = arith.subf %138, %141 : vector<128x128xf32>
    %143 = math.exp %142 : vector<128x128xf32>
    %144 = arith.extf %0 : vector<128x128xbf16> to vector<128x128xf32>
    %145 = arith.mulf %143, %144 : vector<128x128xf32>
    %cst_41 = arith.constant dense<0.000000e+00> : vector<128xf32>
    %146 = vector.multi_reduction <add>, %145, %cst_41 [1] : vector<128x128xf32> to vector<128xf32>
    %147 = vector.shape_cast %146 : vector<128xf32> to vector<128x1xf32>
    %148 = tpu.reciprocal %147 {approx = true} : vector<128x1xf32> -> vector<128x1xf32>
    %149 = vector.broadcast %148 : vector<128x1xf32> to vector<128x128xf32>
    %150 = arith.mulf %145, %149 : vector<128x128xf32>
    %151 = arith.truncf %150 : vector<128x128xf32> to vector<128x128xbf16>
    %152 = arith.truncf %125 : vector<128x8xf32> to vector<128x8xbf16>
    %cst_42 = arith.constant dense<0.000000e+00> : vector<128x8xf32>
    %153 = tpu.matmul %151, %152, %cst_42 {dimension_numbers = #tpu.dot_dimension_numbers<[1], [0], [0], [1], [0, 0, 1, 1], [], []>} : vector<128x128xbf16>, vector<128x8xbf16>, vector<128x8xf32> -> vector<128x8xf32>
    %c0_43 = arith.constant 0 : index
    %c0_44 = arith.constant 0 : index
    %154 = vector.load %arg6[%c0_43, %c0_44] : memref<1x8xf32, #tpu.memory_space<vmem>>, vector<1x8xf32>
    %155 = vector.broadcast %154 : vector<1x8xf32> to vector<128x8xf32>
    %156 = arith.addf %153, %155 : vector<128x8xf32>
    %cst_45 = arith.constant 0.000000e+00 : f32
    %157 = vector.broadcast %cst_45 : f32 to vector<128x8xf32>
    %158 = arith.cmpf ogt, %156, %157 : vector<128x8xf32>
    %cst_46 = arith.constant 0.000000e+00 : f32
    %159 = vector.broadcast %cst_46 : f32 to vector<128x8xf32>
    %160 = arith.minimumf %156, %159 : vector<128x8xf32>
    %161 = math.exp %160 : vector<128x8xf32>
    %cst_47 = arith.constant 1.000000e+00 : f32
    %162 = vector.broadcast %cst_47 : f32 to vector<128x8xf32>
    %163 = arith.subf %161, %162 : vector<128x8xf32>
    %164 = arith.select %158, %156, %163 : vector<128x8xi1>, vector<128x8xf32>
    %165 = arith.truncf %164 : vector<128x8xf32> to vector<128x8xbf16>
    %c0_48 = arith.constant 0 : index
    %c0_49 = arith.constant 0 : index
    %166 = vector.load %arg7[%c0_48, %c0_49] : memref<8x128xf32, #tpu.memory_space<vmem>>, vector<8x128xf32>
    %167 = arith.truncf %166 : vector<8x128xf32> to vector<8x128xbf16>
    %cst_50 = arith.constant dense<0.000000e+00> : vector<128x128xf32>
    %168 = tpu.matmul %165, %167, %cst_50 {dimension_numbers = #tpu.dot_dimension_numbers<[1], [0], [0], [1], [0, 0, 1, 1], [], []>} : vector<128x8xbf16>, vector<8x128xbf16>, vector<128x128xf32> -> vector<128x128xf32>
    %c0_51 = arith.constant 0 : index
    %c0_52 = arith.constant 0 : index
    %169 = vector.load %arg8[%c0_51, %c0_52] : memref<1x128xf32, #tpu.memory_space<vmem>>, vector<1x128xf32>
    %170 = vector.broadcast %169 : vector<1x128xf32> to vector<128x128xf32>
    %171 = arith.addf %168, %170 : vector<128x128xf32>
    %172 = arith.negf %171 : vector<128x128xf32>
    %173 = math.exp %172 : vector<128x128xf32>
    %cst_53 = arith.constant 1.000000e+00 : f32
    %174 = vector.broadcast %cst_53 : f32 to vector<128x128xf32>
    %175 = arith.addf %174, %173 : vector<128x128xf32>
    %176 = arith.divf %174, %175 : vector<128x128xf32>
    %c0_54 = arith.constant 0 : index
    %c0_55 = arith.constant 0 : index
    %177 = vector.load %arg9[%c0_54, %c0_55] : memref<128x128xf32, #tpu.memory_space<vmem>>, vector<128x128xf32>
    tpu.vector_store %arg9[%c0_54, %c0_55], %176 {strides = array<i32>} : memref<128x128xf32, #tpu.memory_space<vmem>>, vector<128x128xf32>,
    return
  }
}

</mosaic_0001>

<bundles_post_ra>
// kernel: tpu_custom_call.1
= control target key start
LH: loop header
LB: loop body
LE: loop exit
PB: predicated region body
PF: predicated region fallthrough
CT: control target
= control target key end

     0   :  { %vm80_vm0 = vcmask 130048   ;;  %s5635_s0 = inlined_call_operand.vmem [shape: f32[128,16], index: 0, kind: input, shape index: {}]   ;;  %s5636_s1 = inlined_call_operand.vmem [shape: bf16[128,128], index: 1, kind: input, shape index: {}]   ;;  %s5637_s2 = inlined_call_operand.vmem [shape: f32[16,136], index: 2, kind: input, shape index: {}]   ;;  %s5638_s3 = inlined_call_operand.vmem [shape: f32[1,128], index: 3, kind: input, shape index: {}]   ;;  %s5639_s4 = inlined_call_operand.vmem [shape: f32[128,8], index: 4, kind: input, shape index: {}]   ;;  %s5640_s5 = inlined_call_operand.vmem [shape: f32[8,2], index: 5, kind: input, shape index: {}]   ;;  %s5641_s6 = inlined_call_operand.vmem [shape: f32[1,8], index: 6, kind: input, shape index: {}]   ;;  %s5642_s7 = inlined_call_operand.vmem [shape: f32[8,128], index: 7, kind: input, shape index: {}]   ;;  %s5643_s8 = inlined_call_operand.vmem [shape: f32[1,128], index: 8, kind: input, shape index: {}]   ;;  %s5644_s9 = inlined_call_operand.hbm [shape: f32[128,128], index: 9, kind: output, shape index: {}]  }
   0x1   :  { %v75_v0 = vld [vmem:[%s5637_s2 + $0x8] sm:$0xff]  ;;  %v77_v1 = vld [vmem:[%s5637_s2 + $0x18] sm:$0xff]  ;;  %v50_v2 = vld [vmem:[%s5635_s0] sm:$0xff] }
   0x2   :  { %v79_v3 = vpack.c.bf16 %v77_v1, %v75_v0  ;;  %v51_v4 = vld [vmem:[%s5635_s0 + $0x8] sm:$0xff]  ;;  %v58_v5 = vld [vmem:[%s5635_s0 + $0x40] sm:$0xff] }
   0x3   :  { %v59_v6 = vld [vmem:[%s5635_s0 + $0x48] sm:$0xff]  ;;  %v3883_v7 = vpack.c.bf16 %v51_v4, %v50_v2 }
   0x4   :  { %v3885_v8 = vpack.c.bf16 %v59_v6, %v58_v5  ;;  %161 = vmatpush.bf16.msra.mxu1 %v79_v3  ;;  %3262 = vmatpush.bf16.msra.mxu3 %v79_v3 }
   0x5   :  { %14 = vsyncpa [#allocation4], 0  ;;  %v52_v9 = vld [vmem:[%s5635_s0 + $0x10] sm:$0xff]  ;;  %v53_v10 = vld [vmem:[%s5635_s0 + $0x18] sm:$0xff]  ;;  %v5647_v12 = vmov 4   ;;  %v5645_v19 = vmov 6  }
   0x6   :  { %v3897_v11 = vpack.c.bf16 %v53_v10, %v52_v9  ;;  %3282 = vset.pattern.permute.xlu1 %v5647_v12  ;;  %v54_v13 = vld [vmem:[%s5635_s0 + $0x20] sm:$0xff]  ;;  %v55_v14 = vld [vmem:[%s5635_s0 + $0x28] sm:$0xff]  ;;  %v56_v16 = vld [vmem:[%s5635_s0 + $0x30] sm:$0xff]  ;;  %3286 = vset.pattern.permute.xlu2 %v5645_v19  ;;  %v5649_v20 = vmov 5   ;;  %v5651_v35 = vmov 7   ;;  %s3809_s29 = smov 64  }
   0x7   :  { %3150 = vmatmul.msk.bf16.vlgmr.msra.gmra.mxu1 %vm80_vm0, %v3883_v7  ;;  %3154 = vmatmul.msk.bf16.vlgmr.msra.gmra.mxu3 %vm80_vm0, %v3885_v8  ;;  %v3908_v15 = vpack.c.bf16 %v55_v14, %v54_v13  ;;  %v57_v17 = vld [vmem:[%s5635_s0 + $0x38] sm:$0xff]  ;;  %v60_v21 = vld [vmem:[%s5635_s0 + $0x50] sm:$0xff]  ;;  %v62_v25 = vld [vmem:[%s5635_s0 + $0x60] sm:$0xff]  ;;  %s3810_s30 = smov 32   ;;  %vm605_vm1 = vcmask 261120   ;;  %vm1048_vm2 = vcmask 523520  }
   0x8   :  { %v3918_v18 = vpack.c.bf16 %v57_v17, %v56_v16  ;;  %3305 = vset.pattern.permute.xlu0 %v5649_v20  ;;  %v61_v22 = vld [vmem:[%s5635_s0 + $0x58] sm:$0xff]  ;;  %v63_v26 = vld [vmem:[%s5635_s0 + $0x68] sm:$0xff]  ;;  %v64_v31 = vld [vmem:[%s5635_s0 + $0x70] sm:$0xff]  ;;  %vm1483_vm3 = vcmask 785920   ;;  %vm1918_vm4 = vcmask 1048320   ;;  %vm2183_vm7 = vcmask 1043456  }
   0x9   :  { %v3930_v23 = vpack.c.bf16 %v61_v22, %v60_v21  ;;  %v3940_v27 = vpack.c.bf16 %v63_v26, %v62_v25  ;;  %v65_v32 = vld [vmem:[%s5635_s0 + $0x78] sm:$0xff]  ;;  %v74_v40 = vld [vmem:[%s5637_s2] sm:$0xff]  ;;  %v76_v41 = vld [vmem:[%s5637_s2 + $0x10] sm:$0xff]  ;;  %s3808_s2 = smov 96   ;;  %s3130_s19 = sshll.u32 %s5644_s9, 4  ;;  %s3131_s19 = int_to_ptr.hbm [resolvable:$true] %s3130_s19 }
   0xa   :  { %v3956_v33 = vpack.c.bf16 %v65_v32, %v64_v31  ;;  %v78_v42 = vpack.c.bf16 %v76_v41, %v74_v40  ;;  %s3813_s20 = smov 128   ;;  %s3814_s21 = smov 8  }
   0xc   :  { %3261 = vmatpush.bf16.msra.mxu2 %v78_v42  ;;  %112 = vmatpush.bf16.msra.mxu0 %v78_v42 }
   0xf   :  { %3147 = vmatmul.msk.bf16.vlgmr.msra.gmra.mxu2 %vm80_vm0, %v3930_v23  ;;  %3142 = vmatmul.msk.bf16.vlgmr.msra.gmra.mxu0 %vm80_vm0, %v3883_v7 }
  0x17   :  { %3151 = vmatmul.msk.bf16.gmra.mxu1 %vm80_vm0, %v3897_v11  ;;  %3155 = vmatmul.msk.bf16.gmra.mxu3 %vm80_vm0, %v3930_v23 }
  0x1f   :  { %3148 = vmatmul.msk.bf16.gmra.mxu2 %vm80_vm0, %v3940_v27  ;;  %3143 = vmatmul.msk.bf16.gmra.mxu0 %vm80_vm0, %v3897_v11 }
  0x27   :  { %3152 = vmatmul.msk.bf16.gmra.mxu1 %vm80_vm0, %v3908_v15  ;;  %3156 = vmatmul.msk.bf16.gmra.mxu3 %vm80_vm0, %v3940_v27 }
  0x2f   :  { %3149 = vmatmul.msk.bf16.gmra.mxu2 %vm80_vm0, %v3956_v33  ;;  %3144 = vmatmul.msk.bf16.gmra.mxu0 %vm80_vm0, %v3908_v15 }
  0x37   :  { %3153 = vmatmul.msk.bf16.gmra.mxu1 %vm80_vm0, %v3918_v18  ;;  %3157 = vmatmul.msk.bf16.gmra.mxu3 %vm80_vm0, %v3956_v33 }
  0x3f   :  { %3145 = vmatmul.msk.bf16.gmra.mxu0 %vm80_vm0, %v3918_v18 }
  0x4f   :  { %3146 = vmatmul.msk.bf16.gmra.mxu0 %vm80_vm0, %v3885_v8 }
  0x84   :  { %v163_v24 = vpop.f32.mrf.mxu1 }
  0x85   :  { %237 = vperm.xlu1 %3282, %v163_v24  }
  0x8a   :  { %v3942_v28 = vpop.f32.mrf.mxu3 }
  0x8b   :  { %1098 = vperm.xlu2 %3286, %v3942_v28  }
  0x8c   :  { %v165_v29 = vpop.f32.mrf.mxu1  ;;  %v4086_v18 = vpop.f32.mrf.mxu0 }
  0x8d   :  { %3283 = vset.pattern.permute.xlu1 %v5649_v20 }
  0x8e   :  { %623 = vperm.xlu1 %3283, %v163_v24  }
  0x92   :  { %v3969_v38 = vpop.f32.mrf.mxu3  ;;  %v139_v56 = vpop.f32.mrf.mxu2 }
  0x93   :  { %3288 = vset.pattern.permute.xlu2 %v5649_v20 }
  0x94   :  { %627 = vperm.xlu2 %3288, %v165_v29   ;;  %v168_v30 = vpop.f32.mrf.mxu1  ;;  %v4098_v31 = vpop.f32.mrf.mxu0 }
  0x96   :  { %3284 = vset.pattern.permute.xlu1 %v5645_v19 }
  0x97   :  { %1066 = vperm.xlu1 %3284, %v163_v24  }
  0x9a   :  { %v4030_v44 = vpop.f32.mrf.mxu3  ;;  %v141_v59 = vpop.f32.mrf.mxu2 }
  0x9b   :  { %v4103_v42 = vpack.c.bf16 %v141_v59, %v139_v56 }
  0x9c   :  { %3289 = vset.pattern.permute.xlu2 %v5645_v19  ;;  %v170_v34 = vpop.f32.mrf.mxu1  ;;  %v4115_v56 = vpop.f32.mrf.mxu0 }
  0x9d   :  { %1070 = vperm.xlu2 %3289, %v165_v29  }
  0x9f   :  { %3285 = vset.pattern.permute.xlu1 %v5651_v35 }
  0xa0   :  { %1501 = vperm.xlu1 %3285, %v163_v24  }
  0xa2   :  { %v4035_v45 = vpop.f32.mrf.mxu3  ;;  %v144_v62 = vpop.f32.mrf.mxu2 }
  0xa4   :  { %v3962_v36 = vpop.f32.mrf.mxu1 }
  0xa5   :  { %3290 = vset.pattern.permute.xlu2 %v5651_v35 }
  0xa6   :  { %1505 = vperm.xlu2 %3290, %v165_v29  }
  0xa8   :  { %3287 = vset.pattern.permute.xlu1 %v5647_v12 }
  0xa9   :  { %242 = vperm.xlu1 %3287, %v165_v29  }
  0xaa   :  { %v4039_v46 = vpop.f32.mrf.mxu3  ;;  %v146_v1 = vpop.f32.mrf.mxu2 }
  0xab   :  { %5690 = vst [vmem:[#allocation6_spill] sm:$0xff] %v4039_v46  ;;  %v4100_v33 = vpack.c.bf16 %v146_v1, %v144_v62 }
  0xac   :  { %v3966_v37 = vpop.f32.mrf.mxu1 }
  0xae   :  { %3292 = vset.pattern.permute.xlu2 %v5647_v12 }
  0xaf   :  { %247 = vperm.xlu2 %3292, %v168_v30  }
  0xb1   :  { %3291 = vset.pattern.permute.xlu1 %v5651_v35 }
  0xb2   :  { %1537 = vperm.xlu1 %3291, %v3969_v38   ;;  %v4042_v47 = vpop.f32.mrf.mxu3  ;;  %v149_v11 = vpop.f32.mrf.mxu2 }
  0xb4   :  { %v3973_v39 = vpop.f32.mrf.mxu1 }
  0xb5   :  { %647 = vperm.xlu0 %3305, %v3973_v39  }
  0xb7   :  { %252 = vperm.xlu2 %3292, %v170_v34  }
  0xba   :  { %3293 = vset.pattern.permute.xlu1 %v5649_v20  ;;  %v4045_v48 = vpop.f32.mrf.mxu3  ;;  %v151_v25 = vpop.f32.mrf.mxu2 }
  0xbb   :  { %631 = vperm.xlu1 %3293, %v168_v30  }
  0xbc   :  { %v4010_v43 = vpop.f32.mrf.mxu1 }
  0xbf   :  { %3296 = vset.pattern.permute.xlu2 %v5649_v20 }
  0xc0   :  { %635 = vperm.xlu2 %3296, %v170_v34  }
  0xc2   :  { %v4052_v51 = vpop.f32.mrf.mxu3 }
  0xc3   :  { %3294 = vset.pattern.permute.xlu1 %v5645_v19 }
  0xc4   :  { %1074 = vperm.xlu1 %3294, %v168_v30  }
  0xc8   :  { %3297 = vset.pattern.permute.xlu2 %v5645_v19 }
  0xc9   :  { %1078 = vperm.xlu2 %3297, %v170_v34  }
  0xcc   :  { %3295 = vset.pattern.permute.xlu1 %v5651_v35 }
  0xcd   :  { %1509 = vperm.xlu1 %3295, %v168_v30  }
  0xd1   :  { %3298 = vset.pattern.permute.xlu2 %v5651_v35 }
  0xd2   :  { %1513 = vperm.xlu2 %3298, %v170_v34  }
  0xd5   :  { %3299 = vset.pattern.permute.xlu1 %v5649_v20 }
  0xd6   :  { %639 = vperm.xlu1 %3299, %v3962_v36  }
  0xd7   :  { %203 = vxpose.xlu0.b32.start [1/16] (narrow) %v163_v24, 8 }
  0xda   :  { %3302 = vset.pattern.permute.xlu2 %v5649_v20 }
  0xdb   :  { %643 = vperm.xlu2 %3302, %v3966_v37  }
  0xde   :  { %3300 = vset.pattern.permute.xlu1 %v5645_v19 }
  0xdf   :  { %1082 = vperm.xlu1 %3300, %v3962_v36   ;;  %204 = vxpose.xlu0.b32.cont [2/16] (narrow) %v165_v29, 8 }
  0xe3   :  { %3303 = vset.pattern.permute.xlu2 %v5645_v19 }
  0xe4   :  { %1086 = vperm.xlu2 %3303, %v3966_v37  }
  0xe5   :  { %v4048_v49 = vpop.permute.xlu2 %1098 }
  0xe7   :  { %3301 = vset.pattern.permute.xlu1 %v5651_v35  ;;  %205 = vxpose.xlu0.b32.cont [3/16] (narrow) %v168_v30, 8  ;;  %v4094_v30 = vpack.c.bf16 %v151_v25, %v149_v11 }
  0xe8   :  { %1517 = vperm.xlu1 %3301, %v3962_v36  }
  0xe9   :  { %556 = vmatpush.bf16.msrb.mxu2 %v4094_v30 }
  0xec   :  { %3304 = vset.pattern.permute.xlu2 %v5651_v35 }
  0xed   :  { %1521 = vperm.xlu2 %3304, %v3966_v37   ;;  %557 = vmatpush.bf16.msrb.mxu2 %v4100_v33 }
  0xee   :  { %v628_v52 = vpop.permute.xlu2 %627 }
  0xef   :  { %206 = vxpose.xlu0.b32.cont [4/16] (narrow) %v170_v34, 8 }
  0xf0   :  { %3306 = vset.pattern.permute.xlu1 %v5645_v19 }
  0xf1   :  { %1090 = vperm.xlu1 %3306, %v3973_v39   ;;  %558 = vmatpush.bf16.msrb.mxu2 %v4103_v42 }
  0xf5   :  { %1529 = vperm.xlu2 %3304, %v4010_v43  }
  0xf7   :  { %207 = vxpose.xlu0.b32.cont [5/16] (narrow) %v3962_v36, 8  ;;  %v4050_v50 = vpop.permute.xlu1 %237  ;;  %v1071_v54 = vpop.permute.xlu2 %1070 }
  0xf9   :  { %3307 = vset.pattern.permute.xlu1 %v5651_v35 }
  0xfa   :  { %1525 = vperm.xlu1 %3307, %v3973_v39  }
  0xfd   :  { %3310 = vset.pattern.permute.xlu2 %v5649_v20 }
  0xff   :  { %208 = vxpose.xlu0.b32.cont [6/16] (narrow) %v3966_v37, 8 }
 0x100   :  { %v624_v53 = vpop.permute.xlu1 %623  ;;  %v1506_v57 = vpop.permute.xlu2 %1505 }
 0x102   :  { %3308 = vset.pattern.permute.xlu1 %v5645_v19 }
 0x103   :  { %1094 = vperm.xlu1 %3308, %v4010_v43  }
 0x107   :  { %209 = vxpose.xlu0.b32.cont [7/16] (narrow) %v3973_v39, 8 }
 0x109   :  { %v1067_v55 = vpop.permute.xlu1 %1066  ;;  %v4055_v60 = vpop.permute.xlu2 %247 }
 0x10b   :  { %3309 = vset.pattern.permute.xlu1 %v5647_v12 }
 0x10f   :  { %210 = vxpose.xlu0.b32.cont [8/16] (narrow) %v4010_v43, 8 }
 0x111   :  { %v4063_v2 = vpop.permute.xlu2 %252 }
 0x112   :  { %v1502_v58 = vpop.permute.xlu1 %1501 }
 0x117   :  { %211 = vxpose.xlu0.b32.cont [9/16] (narrow) %v3942_v28, 8 }
 0x11a   :  { %v636_v21 = vpop.permute.xlu2 %635 }
 0x11b   :  { %v4057_v61 = vpop.permute.xlu1 %242 }
 0x11f   :  { %212 = vxpose.xlu0.b32.cont [10/16] (narrow) %v3969_v38, 8 }
 0x123   :  { %v1079_v41 = vpop.permute.xlu2 %1078 }
 0x124   :  { %v4061_v0 = vpop.permute.xlu1 %1537 }
 0x127   :  { %213 = vxpose.xlu0.b32.cont [11/16] (narrow) %v4030_v44, 8  ;;  %v4059_v63 = vpop.permute.xlu0 %647 }
 0x12c   :  { %v1514_v1 = vpop.permute.xlu2 %1513 }
 0x12d   :  { %v632_v17 = vpop.permute.xlu1 %631 }
 0x12f   :  { %214 = vxpose.xlu0.b32.cont [12/16] (narrow) %v4035_v45, 8 }
 0x136   :  { %v1075_v32 = vpop.permute.xlu1 %1074 }
 0x137   :  { %215 = vxpose.xlu0.b32.cont [13/16] (narrow) %v4039_v46, 8 }
 0x13f   :  { %216 = vxpose.xlu0.b32.cont [14/16] (narrow) %v4042_v47, 8  ;;  %v1510_v59 = vpop.permute.xlu1 %1509 }
 0x147   :  { %217 = vxpose.xlu0.b32.cont [15/16] (narrow) %v4045_v48, 8 }
 0x14f   :  { %218 = vxpose.xlu0.b32.end [16/16] (narrow) %v4052_v51, 8 }
 0x17b   :  { %v4065_v3 = vpop.trf.xlu0 }
 0x17c   :  { %v4068_v4 = vperm.slane %v4065_v3, 1  ;;  %v4071_v5 = vperm.slane %v4065_v3, 2  ;;  %v4074_v6 = vperm.slane %v4065_v3, 3 }
 0x17e   :  { %v688_v7 = vadd.f32 %v4068_v4, %v628_v52  ;;  %v687_v8 = vadd.f32 %v4068_v4, %v624_v53  ;;  %v1566_v15 = vadd.f32 %v4074_v6, %v1506_v57  ;;  %v1130_v16 = vadd.f32 %v4071_v5, %v1067_v55 }
 0x17f   :  { %v690_v24 = vadd.f32 %v4068_v4, %v636_v21  ;;  %v1131_v29 = vadd.f32 %v4071_v5, %v1071_v54  ;;  %v1133_v54 = vadd.f32 %v4071_v5, %v1079_v41  ;;  %v1565_v55 = vadd.f32 %v4074_v6, %v1502_v58 }
 0x180   :  { %v704_v9 = vmul.f32 0.2, %v688_v7  ;;  %v703_v10 = vmul.f32 0.2, %v687_v8  ;;  %v1582_v22 = vmul.f32 0.2, %v1566_v15  ;;  %v689_v58 = vadd.f32 %v4068_v4, %v632_v17 }
 0x181   :  { %v1146_v23 = vmul.f32 0.2, %v1130_v16  ;;  %v706_v34 = vmul.f32 0.2, %v690_v24  ;;  %v1147_v40 = vmul.f32 0.2, %v1131_v29 }
 0x182   :  { %v4078_v13 = vmax.f32 %v688_v7, %v704_v9  ;;  %v4080_v14 = vmax.f32 %v687_v8, %v703_v10  ;;  %v4089_v26 = vmax.f32 %v1566_v15, %v1582_v22  ;;  %v1149_v57 = vmul.f32 0.2, %v1133_v54  ;;  %v121_v15 = vpop.f32.mrf.mxu0 }
 0x183   :  { %v4091_v27 = vmax.f32 %v1130_v16, %v1146_v23  ;;  %v4106_v52 = vmax.f32 %v690_v24, %v706_v34  ;;  %v4108_v53 = vmax.f32 %v1131_v29, %v1147_v40  ;;  %v1581_v62 = vmul.f32 0.2, %v1565_v55  ;;  %v640_v16 = vpop.permute.xlu1 %639 }
 0x184   :  { %737 = vmax.xlane.f32.xlu2 %v4078_v13  ;;  %735 = vmax.xlane.f32.xlu1 %v4080_v14  ;;  %v4117_v7 = vmax.f32 %v1133_v54, %v1149_v57  ;;  %v1568_v9 = vadd.f32 %v4074_v6, %v1514_v1  ;;  %v705_v11 = vmul.f32 0.2, %v689_v58  ;;  %v691_v23 = vadd.f32 %v4068_v4, %v640_v16 }
 0x185   :  { %v4119_v8 = vmax.f32 %v1565_v55, %v1581_v62  ;;  %v1567_v24 = vadd.f32 %v4074_v6, %v1510_v59  ;;  %v4134_v17 = vperm.slane %v4065_v3, 0  ;;  %v1132_v3 = vadd.f32 %v4071_v5, %v1075_v32 }
 0x186   :  { %v1584_v10 = vmul.f32 0.2, %v1568_v9  ;;  %v4127_v22 = vmax.f32 %v689_v58, %v705_v11  ;;  %v707_v25 = vmul.f32 0.2, %v691_v23 }
 0x187   :  { %v1583_v29 = vmul.f32 0.2, %v1567_v24  ;;  %v316_v54 = vadd.f32 %v4134_v17, %v4050_v50  ;;  %v1148_v1 = vmul.f32 0.2, %v1132_v3 }
 0x188   :  { %v4125_v21 = vmax.f32 %v1568_v9, %v1584_v10  ;;  %v4136_v40 = vmax.f32 %v691_v23, %v707_v25  ;;  %v644_v9 = vpop.permute.xlu2 %643 }
 0x189   :  { %v4138_v41 = vmax.f32 %v1567_v24, %v1583_v29  ;;  %v332_v55 = vmul.f32 0.2, %v316_v54  ;;  %v4149_v58 = vmax.f32 %v1132_v3, %v1148_v1  ;;  %v692_v50 = vadd.f32 %v4068_v4, %v644_v9 }
 0x18a   :  { %5691 = vst [vmem:[#allocation7_spill] sm:$0xff] %v4125_v21  ;;  %v124_v34 = vpop.f32.mrf.mxu0 }
 0x18b   :  { %5692 = vst [vmem:[#allocation8_spill] sm:$0xff] %v4136_v40  ;;  %v4144_v62 = vmax.f32 %v316_v54, %v332_v55  ;;  %v708_v11 = vmul.f32 0.2, %v692_v50  ;;  %v1083_v16 = vpop.permute.xlu1 %1082 }
 0x18c   :  { %1615 = vmax.xlane.f32.xlu2 %v4089_v26  ;;  %1178 = vmax.xlane.f32.xlu1 %v4091_v27  ;;  %5693 = vst [vmem:[#allocation9_spill] sm:$0xff] %v4138_v41  ;;  %v1134_v32 = vadd.f32 %v4071_v5, %v1083_v16 }
 0x18d   :  { %5694 = vst [vmem:[#allocation10_spill] sm:$0xff] %v4149_v58  ;;  %v4155_v23 = vmax.f32 %v692_v50, %v708_v11 }
 0x18e   :  { %v1150_v25 = vmul.f32 0.2, %v1134_v32 }
 0x190   :  { %v1087_v29 = vpop.permute.xlu2 %1086  ;;  %v4161_v54 = vmax.f32 %v1134_v32, %v1150_v25 }
 0x191   :  { %v1135_v55 = vadd.f32 %v4071_v5, %v1087_v29 }
 0x192   :  { %v126_v57 = vpop.f32.mrf.mxu0 }
 0x193   :  { %v1518_v1 = vpop.permute.xlu1 %1517  ;;  %v1151_v50 = vmul.f32 0.2, %v1135_v55  ;;  %v4173_v12 = vpack.c.bf16 %v126_v57, %v124_v34  ;;  %v4189_v34 = vpack.c.bf16 %v4098_v31, %v4086_v18 }
 0x194   :  { %741 = vmax.xlane.f32.xlu2 %v4106_v52  ;;  %1180 = vmax.xlane.f32.xlu1 %v4108_v53  ;;  %v1569_v19 = vadd.f32 %v4074_v6, %v1518_v1 }
 0x195   :  { %v4170_v16 = vmax.f32 %v1135_v55, %v1151_v50 }
 0x196   :  { %v1585_v32 = vmul.f32 0.2, %v1569_v19 }
 0x197   :  { %5695 = vst [vmem:[#allocation11_spill] sm:$0xff] %v4170_v16 }
 0x19a   :  { %v129_v59 = vpop.f32.mrf.mxu0 }
 0x19b   :  { %v4177_v25 = vpop.permute.xlu1 %1090 }
 0x19c   :  { %1184 = vmax.xlane.f32.xlu2 %v4117_v7  ;;  %1613 = vmax.xlane.f32.xlu1 %v4119_v8 }
 0x1a2   :  { %v131_v10 = vpop.f32.mrf.mxu0 }
 0x1a3   :  { %v4167_v11 = vpack.c.bf16 %v131_v10, %v129_v59  ;;  %v4183_v59 = vmax.f32 %v1569_v19, %v1585_v32  ;;  %v693_v10 = vadd.f32 %v4068_v4, %v4059_v63  ;;  %v317_v19 = vadd.f32 %v4134_v17, %v4057_v61 }
 0x1a4   :  { %1619 = vmax.xlane.f32.xlu2 %v4125_v21  ;;  %739 = vmax.xlane.f32.xlu1 %v4127_v22 }
 0x1a5   :  { %5696 = vst [vmem:[#allocation12_spill] sm:$0xff] %v4183_v59  ;;  %v709_v57 = vmul.f32 0.2, %v693_v10  ;;  %v333_v63 = vmul.f32 0.2, %v317_v19 }
 0x1a7   :  { %v4198_v29 = vmax.f32 %v693_v10, %v709_v57  ;;  %v4202_v31 = vmax.f32 %v317_v19, %v333_v63 }
 0x1a9   :  { %5697 = vst [vmem:[#allocation13_spill] sm:$0xff] %v4198_v29 }
 0x1aa   :  { %v134_v24 = vpop.f32.mrf.mxu0 }
 0x1ac   :  { %743 = vmax.xlane.f32.xlu2 %v4136_v40  ;;  %1617 = vmax.xlane.f32.xlu1 %v4138_v41 }
 0x1b2   :  { %v136_v3 = vpop.f32.mrf.mxu0 }
 0x1b3   :  { %v4165_v9 = vpack.c.bf16 %v136_v3, %v134_v24  ;;  %v4180_v24 = vpack.c.bf16 %v121_v15, %v4115_v56  ;;  %v1522_v56 = vpop.permute.xlu2 %1521  ;;  %v4194_v15 = vpop.permute.xlu1 %1525 }
 0x1b4   :  { %364 = vmax.xlane.f32.xlu2 %v4144_v62  ;;  %v1570_v18 = vadd.f32 %v4074_v6, %v1522_v56  ;;  %v3223_v56 = vld [vmem:[%s5636_s1] sm:$0xff]   ;;  %v1571_v21 = vadd.f32 %v4074_v6, %v4194_v15 }
 0x1b5   :  { %559 = vmatpush.bf16.msrb.mxu2 %v4165_v9  ;;  %v4218_v63 = vunpack.c.l.bf16 %v3223_v56 }
 0x1b6   :  { %3312 = vset.pattern.permute.xlu0 %v5651_v35  ;;  %v1586_v1 = vmul.f32 0.2, %v1570_v18  ;;  %v319_v35 = vadd.f32 %v4134_v17, %v4063_v2  ;;  %v5702_v2 = vmov 7  }
 0x1b7   :  { %5699 = vst [vmem:[#allocation15_spill] sm:$0xff] %v4218_v63 }
 0x1b8   :  { %v4209_v50 = vmax.f32 %v1570_v18, %v1586_v1  ;;  %v318_v1 = vadd.f32 %v4134_v17, %v4055_v60 }
 0x1b9   :  { %560 = vmatpush.bf16.msrb.mxu2 %v4167_v11 }
 0x1ba   :  { %5698 = vst [vmem:[#allocation14_spill] sm:$0xff] %v4209_v50 }
 0x1bb   :  { %v4204_v55 = vpop.permute.xlu2 %1529  ;;  %v4206_v3 = vpop.permute.xlu1 %1094 }
 0x1bd   :  { %561 = vmatpush.bf16.msrb.mxu2 %v4173_v12 }
 0x1c0   :  { %1182 = vmax.xlane.f32.xlu0 %v4149_v58 }
 0x1c1   :  { %562 = vmatpush.bf16.msrb.mxu2 %v4180_v24 }
 0x1c5   :  { %925 = vrot.lane.b32.xlu1 %v4094_v30, %s3808_s2  ;;  %563 = vmatpush.bf16.msrb.mxu2 %v4189_v34 }
 0x1c8   :  { %745 = vmax.xlane.f32.xlu0 %v4155_v23 }
 0x1cc   :  { %923 = vrot.lane.b32.xlu2 %v4100_v33, %s3808_s2 }
 0x1d0   :  { %1186 = vmax.xlane.f32.xlu0 %v4161_v54 }
 0x1d8   :  { %1188 = vmax.xlane.f32.xlu0 %v4170_v16 }
 0x1e0   :  { %1621 = vmax.xlane.f32.xlu0 %v4183_v59 }
 0x1e8   :  { %747 = vmax.xlane.f32.xlu0 %v4198_v29 }
 0x1ef   :  { %366 = vmax.xlane.f32.xlu1 %v4202_v31 }
 0x1f5   :  { %1623 = vmax.xlane.f32.xlu2 %v4209_v50 }
 0x1f7   :  { %v738_v61 = vpop.xlane.xlu2 %737  ;;  %v736_v32 = vpop.xlane.xlu1 %735 }
 0x1f8   :  { %v767_v10 = vsub.f32 %v4080_v14, %v736_v32  ;;  %v334_v32 = vmul.f32 0.2, %v318_v1 }
 0x1fa   :  { %v783_v57 = vmul.f32 1.442695, %v767_v10 }
 0x1fc   :  { %3330 = vpow2.f32 %v783_v57  ;;  %v4231_v57 = vmax.f32 %v318_v1, %v334_v32 }
 0x1fe   :  { %5700 = vst [vmem:[#allocation16_spill] sm:$0xff] %v4231_v57 }
 0x1ff   :  { %v4216_v19 = vpop.xlane.xlu2 %1615  ;;  %v4226_v14 = vpop.xlane.xlu1 %1178 }
 0x202   :  { %v3331_v20 = vpop.eup %3330 }
 0x203   :  { %v4221_v18 = vmul.f32 %v3331_v20, %v4218_v63  ;;  %v335_v20 = vmul.f32 0.2, %v319_v35 }
 0x205   :  { %831 = vadd.xlane.f32.xlu0 %v4221_v18 }
 0x207   :  { %v4229_v10 = vpop.xlane.xlu2 %741  ;;  %v4238_v60 = vpop.xlane.xlu1 %1180 }
 0x208   :  { %257 = vperm.xlu1 %3309, %v3962_v36   ;;  %v4242_v36 = vmax.f32 %v319_v35, %v335_v20 }
 0x20a   :  { %5701 = vst [vmem:[#allocation17_spill] sm:$0xff] %v4242_v36 }
 0x20d   :  { %651 = vperm.xlu2 %3310, %v4010_v43   ;;  %368 = vmax.xlane.f32.xlu0 %v4231_v57 }
 0x20f   :  { %v4240_v16 = vpop.xlane.xlu2 %1184  ;;  %v4250_v1 = vpop.xlane.xlu1 %1613 }
 0x210   :  { %272 = vperm.xlu1 %3309, %v4010_v43  }
 0x215   :  { %921 = vrot.lane.b32.xlu2 %v4103_v42, %s3808_s2  ;;  %370 = vmax.xlane.f32.xlu0 %v4242_v36  ;;  %v5706_v36 = vmov 5  }
 0x217   :  { %v4252_v43 = vpop.xlane.xlu2 %1619  ;;  %v4258_v35 = vpop.xlane.xlu1 %739 }
 0x218   :  { %1360 = vrot.lane.b32.xlu1 %v4094_v30, %s3809_s29  ;;  %5703 = vst [vmem:[#allocation18_spill] sm:$0xff] %v4252_v43  ;;  %v1587_v43 = vmul.f32 0.2, %v1571_v21 }
 0x219   :  { %3311 = vset.pattern.permute.xlu1 %v5702_v2 }
 0x21a   :  { %v4284_v58 = vmax.f32 %v1571_v21, %v1587_v43  ;;  %v4300_v43 = vunpack.c.h.bf16 %v3223_v56 }
 0x21c   :  { %5707 = vst [vmem:[#allocation21_spill] sm:$0xff] %v4284_v58 }
 0x21d   :  { %1358 = vrot.lane.b32.xlu2 %v4100_v33, %s3809_s29  ;;  %5710 = vst [vmem:[#allocation23_spill] sm:$0xff] %v4300_v43 }
 0x21f   :  { %v4262_v32 = vpop.xlane.xlu2 %743  ;;  %v4269_v20 = vpop.xlane.xlu1 %1617 }
 0x220   :  { %1795 = vrot.lane.b32.xlu1 %v4094_v30, %s3810_s30  ;;  %5704 = vst [vmem:[#allocation19_spill] sm:$0xff] %v4262_v32 }
 0x221   :  { %5705 = vst [vmem:[#allocation20_spill] sm:$0xff] %v4269_v20 }
 0x225   :  { %1793 = vrot.lane.b32.xlu2 %v4100_v33, %s3810_s30 }
 0x227   :  { %v4273_v30 = vpop.xlane.xlu2 %364 }
 0x228   :  { %1545 = vperm.xlu1 %3311, %v4035_v45  }
 0x229   :  { %915 = vrot.lane.b32.xlu0 %v4173_v12, %s3808_s2 }
 0x22d   :  { %1356 = vrot.lane.b32.xlu2 %v4103_v42, %s3809_s29 }
 0x22f   :  { %v924_v57 = vpop.permute.xlu2 %923 }
 0x230   :  { %919 = vrot.lane.b32.xlu1 %v4165_v9, %s3808_s2 }
 0x231   :  { %3316 = vset.pattern.permute.xlu1 %v5706_v36 }
 0x233   :  { %v4286_v59 = vpop.xlane.xlu0 %1182 }
 0x234   :  { %5708 = vst [vmem:[#allocation22_spill] sm:$0xff] %v4286_v59 }
 0x235   :  { %917 = vrot.lane.b32.xlu2 %v4167_v11, %s3808_s2 }
 0x237   :  { %v926_v33 = vpop.permute.xlu1 %925 }
 0x238   :  { %935 = vmatpush.bf16.msrb.mxu3 %v926_v33  ;;  %v5709_v33 = vmov 4  }
 0x23c   :  { %936 = vmatpush.bf16.msrb.mxu3 %v924_v57  ;;  %v4290_v57 = vpop.xlane.xlu0 %745 }
 0x23d   :  { %1791 = vrot.lane.b32.xlu2 %v4103_v42, %s3810_s30  ;;  %v768_v42 = vsub.f32 %v4078_v13, %v738_v61 }
 0x23f   :  { %v785_v29 = vmul.f32 1.442695, %v768_v42 }
 0x241   :  { %3332 = vpow2.f32 %v785_v29  ;;  %v1137_v29 = vadd.f32 %v4071_v5, %v4206_v3  ;;  %v1572_v3 = vadd.f32 %v4074_v6, %v4204_v55  ;;  %v1211_v55 = vsub.f32 %v4108_v53, %v4238_v60 }
 0x244   :  { %v4293_v40 = vpop.xlane.xlu0 %1186 }
 0x245   :  { %671 = vperm.xlu2 %3310, %v4039_v46  }
 0x24c   :  { %v4303_v32 = vpop.xlane.xlu0 %1188 }
 0x24d   :  { %675 = vperm.xlu2 %3310, %v4042_v47   ;;  %5711 = vst [vmem:[#allocation24_spill] sm:$0xff] %v4303_v32 }
 0x253   :  { %1625 = vmax.xlane.f32.xlu0 %v4284_v58  ;;  %v3333_v58 = vpop.eup %3332 }
 0x254   :  { %v4308_v42 = vmul.f32 %v3333_v58, %v4300_v43  ;;  %v4319_v20 = vpop.xlane.xlu0 %1621 }
 0x255   :  { %3313 = vset.pattern.permute.xlu2 %v5709_v33  ;;  %5713 = vst [vmem:[#allocation26_spill] sm:$0xff] %v4319_v20 }
 0x262   :  { %v4305_v13 = vpop.xlane.xlu1 %366 }
 0x267   :  { %1541 = vperm.xlu0 %3312, %v4030_v44  }
 0x268   :  { %v4296_v15 = vpop.xlane.xlu2 %1623 }
 0x26f   :  { %913 = vrot.lane.b32.xlu0 %v4180_v24, %s3808_s2 }
 0x270   :  { %v652_v21 = vpop.permute.xlu2 %651 }
 0x271   :  { %v694_v59 = vadd.f32 %v4068_v4, %v652_v21  ;;  %v1153_v21 = vmul.f32 0.2, %v1137_v29 }
 0x273   :  { %v710_v61 = vmul.f32 0.2, %v694_v59  ;;  %v4321_v58 = vmax.f32 %v1137_v29, %v1153_v21 }
 0x275   :  { %v4312_v41 = vmax.f32 %v694_v59, %v710_v61  ;;  %5714 = vst [vmem:[#allocation27_spill] sm:$0xff] %v4321_v58  ;;  %v1588_v61 = vmul.f32 0.2, %v1572_v3 }
 0x276   :  { %833 = vadd.xlane.f32.xlu2 %v4308_v42 }
 0x277   :  { %5712 = vst [vmem:[#allocation25_spill] sm:$0xff] %v4312_v41  ;;  %749 = vmax.xlane.f32.xlu1 %v4312_v41  ;;  %1549 = vperm.xlu0 %3312, %v4039_v46   ;;  %v4329_v50 = vmax.f32 %v1572_v3, %v1588_v61  ;;  %v1228_v3 = vmul.f32 1.442695, %v1211_v55  ;;  %v1136_v55 = vadd.f32 %v4071_v5, %v4177_v25 }
 0x278   :  { %v922_v56 = vpop.permute.xlu2 %921 }
 0x279   :  { %937 = vmatpush.bf16.msrb.mxu3 %v922_v56  ;;  %5715 = vst [vmem:[#allocation28_spill] sm:$0xff] %v4329_v50  ;;  %v4331_v56 = vpop.xlane.xlu0 %747  ;;  %3334 = vpow2.f32 %v1228_v3 }
 0x27a   :  { %v4317_v32 = vpop.permute.xlu1 %257 }
 0x27e   :  { %1192 = vmax.xlane.f32.xlu2 %v4321_v58 }
 0x27f   :  { %3315 = vset.pattern.permute.xlu0 %v5706_v36  ;;  %v3335_v53 = vpop.eup %3334 }
 0x280   :  { %v1359_v59 = vpop.permute.xlu2 %1358 }
 0x281   :  { %v4334_v21 = vpop.xlane.xlu0 %831 }
 0x282   :  { %v4327_v41 = vpop.permute.xlu1 %272 }
 0x286   :  { %1627 = vmax.xlane.f32.xlu2 %v4329_v50 }
 0x288   :  { %v1794_v20 = vpop.permute.xlu2 %1793 }
 0x289   :  { %v4340_v61 = vpop.xlane.xlu0 %368 }
 0x28a   :  { %v1361_v29 = vpop.permute.xlu1 %1360  ;;  %5716 = vst [vmem:[#allocation29_spill] sm:$0xff] %v4340_v61 }
 0x28b   :  { %1370 = vmatpush.bf16.msrb.mxu0 %v1361_v29 }
 0x28f   :  { %1371 = vmatpush.bf16.msrb.mxu0 %v1359_v59  ;;  %v4348_v59 = vmul.f32 %v3335_v53, %v4300_v43 }
 0x290   :  { %v1357_v58 = vpop.permute.xlu2 %1356  ;;  %1354 = vrot.lane.b32.xlu1 %v4165_v9, %s3809_s29 }
 0x292   :  { %v1796_v36 = vpop.permute.xlu1 %1795 }
 0x293   :  { %1372 = vmatpush.bf16.msrb.mxu0 %v1357_v58  ;;  %1805 = vmatpush.bf16.msrb.mxu1 %v1796_v36  ;;  %v4350_v58 = vpop.xlane.xlu0 %370  ;;  %v1152_v36 = vmul.f32 0.2, %v1136_v55 }
 0x294   :  { %5717 = vst [vmem:[#allocation30_spill] sm:$0xff] %v4350_v58 }
 0x297   :  { %1806 = vmatpush.bf16.msrb.mxu1 %v1794_v20 }
 0x298   :  { %v918_v50 = vpop.permute.xlu2 %917  ;;  %1789 = vrot.lane.b32.xlu1 %v4165_v9, %s3810_s30 }
 0x29a   :  { %v4344_v29 = vpop.permute.xlu1 %1545 }
 0x29b   :  { %v916_v9 = vpop.permute.xlu0 %915 }
 0x29e   :  { %262 = vperm.xlu2 %3313, %v3966_v37   ;;  %v5718_v37 = vmov 6  }
 0x2a0   :  { %v1792_v60 = vpop.permute.xlu2 %1791 }
 0x2a1   :  { %1807 = vmatpush.bf16.msrb.mxu1 %v1792_v60  ;;  %1276 = vadd.xlane.f32.xlu0 %v4348_v59  ;;  %v1645_v60 = vsub.f32 %v4119_v8, %v4250_v1  ;;  %v4395_v8 = vld [vmem:[%s5636_s1 + $0x8] sm:$0xff]   ;;  %v1210_v1 = vsub.f32 %v4091_v27, %v4226_v14 }
 0x2a2   :  { %v920_v20 = vpop.permute.xlu1 %919 }
 0x2a3   :  { %938 = vmatpush.bf16.msrb.mxu3 %v920_v20  ;;  %v1661_v20 = vmul.f32 1.442695, %v1645_v60 }
 0x2a5   :  { %3336 = vpow2.f32 %v1661_v20  ;;  %v1646_v20 = vsub.f32 %v4089_v26, %v4216_v19 }
 0x2a6   :  { %277 = vperm.xlu2 %3313, %v3942_v28  }
 0x2a7   :  { %939 = vmatpush.bf16.msrb.mxu3 %v918_v50  ;;  %v4364_v50 = vmax.f32 %v1136_v55, %v1152_v36  ;;  %v770_v36 = vsub.f32 %v4106_v52, %v4229_v10  ;;  %v4402_v52 = vunpack.c.h.bf16 %v4395_v8 }
 0x2a8   :  { %v4376_v3 = vpop.permute.xlu2 %671 }
 0x2a9   :  { %5719 = vst [vmem:[#allocation31_spill] sm:$0xff] %v4364_v50 }
 0x2aa   :  { %5722 = vst [vmem:[#allocation34_spill] sm:$0xff] %v4402_v52 }
 0x2ab   :  { %940 = vmatpush.bf16.msrb.mxu3 %v916_v9 }
 0x2ae   :  { %1352 = vrot.lane.b32.xlu2 %v4167_v11, %s3809_s29 }
 0x2af   :  { %3314 = vset.pattern.permute.xlu2 %v5718_v37 }
 0x2b0   :  { %v4384_v9 = vpop.permute.xlu2 %675 }
 0x2b5   :  { %655 = vperm.xlu0 %3315, %v3942_v28  }
 0x2b6   :  { %1114 = vperm.xlu2 %3314, %v4039_v46   ;;  %v789_v46 = vmul.f32 1.442695, %v770_v36  ;;  %v1663_v36 = vmul.f32 1.442695, %v1646_v20 }
 0x2b8   :  { %3338 = vpow2.f32 %v789_v46  ;;  %v1226_v46 = vmul.f32 1.442695, %v1210_v1 }
 0x2ba   :  { %3340 = vpow2.f32 %v1226_v46 }
 0x2bb   :  { %3342 = vpow2.f32 %v1663_v36 }
 0x2bd   :  { %911 = vrot.lane.b32.xlu0 %v4189_v34, %s3808_s2 }
 0x2be   :  { %1118 = vperm.xlu2 %3314, %v4042_v47  }
 0x2c2   :  { %1190 = vmax.xlane.f32.xlu1 %v4364_v50  ;;  %v3337_v50 = vpop.eup %3336 }
 0x2c3   :  { %v4389_v58 = vmul.f32 %v3337_v50, %v4218_v63  ;;  %v3339_v10 = vpop.eup %3338 }
 0x2c4   :  { %v4405_v50 = vmul.f32 %v3339_v10, %v4402_v52  ;;  %v3341_v27 = vpop.eup %3340 }
 0x2c5   :  { %1348 = vrot.lane.b32.xlu0 %v4180_v24, %s3809_s29  ;;  %v4417_v1 = vmul.f32 %v3341_v27, %v4218_v63  ;;  %v3343_v10 = vpop.eup %3342 }
 0x2c6   :  { %1350 = vrot.lane.b32.xlu2 %v4173_v12, %s3809_s29  ;;  %v4373_v25 = vpop.xlane.xlu0 %1625  ;;  %v4423_v26 = vmul.f32 %v3343_v10, %v4300_v43 }
 0x2c7   :  { %3317 = vset.pattern.permute.xlu2 %v5702_v2  ;;  %5720 = vst [vmem:[#allocation32_spill] sm:$0xff] %v4373_v25 }
 0x2cd   :  { %679 = vperm.xlu0 %3315, %v4045_v48  }
 0x2d5   :  { %3318 = vset.pattern.permute.xlu0 %v5718_v37 }
 0x2d9   :  { %v4378_v53 = vpop.permute.xlu0 %1541 }
 0x2db   :  { %1787 = vrot.lane.b32.xlu1 %v4167_v11, %s3810_s30 }
 0x2e1   :  { %v914_v55 = vpop.permute.xlu0 %913 }
 0x2e2   :  { %941 = vmatpush.bf16.msrb.mxu3 %v914_v55 }
 0x2e9   :  { %v834_v25 = vpop.xlane.xlu2 %833 }
 0x2ea   :  { %v4412_v55 = vpop.xlane.xlu1 %749  ;;  %3344 = vrcp.f32 %v834_v25 }
 0x2eb   :  { %3346 = vrcp.f32 %v4334_v21 }
 0x2ef   :  { %1709 = vadd.xlane.f32.xlu2 %v4389_v58 }
 0x2f1   :  { %v4397_v11 = vpop.xlane.xlu2 %1192 }
 0x2f2   :  { %5721 = vst [vmem:[#allocation33_spill] sm:$0xff] %v4397_v11 }
 0x2f7   :  { %837 = vadd.xlane.f32.xlu0 %v4405_v50 }
 0x2f9   :  { %v4408_v60 = vpop.xlane.xlu2 %1627 }
 0x2fa   :  { %5723 = vst [vmem:[#allocation35_spill] sm:$0xff] %v4408_v60 }
 0x301   :  { %v4414_v14 = vpop.permute.xlu2 %262 }
 0x302   :  { %v1355_v11 = vpop.permute.xlu1 %1354 }
 0x303   :  { %1373 = vmatpush.bf16.msrb.mxu0 %v1355_v11  ;;  %v4428_v11 = vpop.permute.xlu0 %1549 }
 0x304   :  { %5725 = vst [vmem:[#allocation37_spill] sm:$0xff] %v4428_v11 }
 0x305   :  { %1274 = vadd.xlane.f32.xlu1 %v4417_v1 }
 0x309   :  { %v4420_v60 = vpop.permute.xlu2 %277 }
 0x30a   :  { %5724 = vst [vmem:[#allocation36_spill] sm:$0xff] %v4420_v60  ;;  %v1790_v61 = vpop.permute.xlu1 %1789 }
 0x30b   :  { %1808 = vmatpush.bf16.msrb.mxu1 %v1790_v61  ;;  %1102 = vperm.xlu0 %3318, %v3969_v38  }
 0x30d   :  { %1711 = vadd.xlane.f32.xlu1 %v4423_v26 }
 0x311   :  { %v1353_v19 = vpop.permute.xlu2 %1352 }
 0x312   :  { %1374 = vmatpush.bf16.msrb.mxu0 %v1353_v19  ;;  %v3345_v19 = vpop.eup %3344 }
 0x313   :  { %1106 = vperm.xlu0 %3318, %v4030_v44   ;;  %v3347_v11 = vpop.eup %3346  ;;  %v880_v25 = vmul.f32 %v3345_v19, %v4308_v42  ;;  %v321_v19 = vadd.f32 %v4134_v17, %v4414_v14 }
 0x314   :  { %v4434_v20 = vpop.xlane.xlu0 %1276 }
 0x319   :  { %v4430_v46 = vpop.permute.xlu2 %1114 }
 0x31a   :  { %5726 = vst [vmem:[#allocation38_spill] sm:$0xff] %v4430_v46 }
 0x31b   :  { %1781 = vrot.lane.b32.xlu0 %v4189_v34, %s3810_s30 }
 0x321   :  { %v4436_v61 = vpop.permute.xlu2 %1118 }
 0x322   :  { %5727 = vst [vmem:[#allocation39_spill] sm:$0xff] %v4436_v61 }
 0x323   :  { %1126 = vperm.xlu0 %3318, %v4052_v51  }
 0x326   :  { %659 = vperm.xlu1 %3316, %v3969_v38  }
 0x327   :  { %v656_v36 = vpop.permute.xlu0 %655 }
 0x328   :  { %v695_v27 = vadd.f32 %v4068_v4, %v656_v36  ;;  %v879_v36 = vmul.f32 %v3347_v11, %v4221_v18 }
 0x329   :  { %v1351_v10 = vpop.permute.xlu2 %1350 }
 0x32a   :  { %1375 = vmatpush.bf16.msrb.mxu0 %v1351_v10  ;;  %v711_v60 = vmul.f32 0.2, %v695_v27  ;;  %v895_v10 = vpack.c.bf16 %v880_v25, %v879_v36 }
 0x32b   :  { %3320 = vset.pattern.permute.xlu0 %v5709_v33 }
 0x32c   :  { %267 = vperm.xlu0 %3320, %v3973_v39   ;;  %v4444_v61 = vmax.f32 %v695_v27, %v711_v60  ;;  %v1213_v39 = vsub.f32 %v4117_v7, %v4240_v16  ;;  %v4466_v16 = vunpack.c.l.bf16 %v4395_v8 }
 0x32e   :  { %663 = vperm.xlu1 %3316, %v4030_v44   ;;  %751 = vmax.xlane.f32.xlu2 %v4444_v61  ;;  %v1232_v42 = vmul.f32 1.442695, %v1213_v39  ;;  %5728 = vst [vmem:[#allocation40_spill] sm:$0xff] %v4466_v16 }
 0x32f   :  { %v912_v21 = vpop.permute.xlu0 %911 }
 0x330   :  { %942 = vmatpush.bf16.msrb.mxu3 %v912_v21  ;;  %3348 = vpow2.f32 %v1232_v42  ;;  %v337_v21 = vmul.f32 0.2, %v321_v19 }
 0x333   :  { %943 = vmatmul.bf16.vlgmr.msrb.gmra.mxu3 %v895_v10 }
 0x335   :  { %v4455_v60 = vpop.xlane.xlu1 %1190 }
 0x336   :  { %667 = vperm.xlu1 %3316, %v4035_v45   ;;  %v3349_v11 = vpop.eup %3348 }
 0x337   :  { %v1349_v46 = vpop.permute.xlu0 %1348  ;;  %v4460_v27 = vmul.f32 %v3349_v11, %v4402_v52 }
 0x338   :  { %1376 = vmatpush.bf16.msrb.mxu0 %v1349_v46 }
 0x33e   :  { %1785 = vrot.lane.b32.xlu1 %v4173_v12, %s3810_s30  ;;  %v769_v12 = vsub.f32 %v4127_v22, %v4258_v35  ;;  %v4478_v22 = vmax.f32 %v321_v19, %v337_v21  ;;  %v1138_v35 = vadd.f32 %v4071_v5, %v4048_v49 }
 0x33f   :  { %v4470_v25 = vpop.permute.xlu0 %679 }
 0x340   :  { %v787_v7 = vmul.f32 1.442695, %v769_v12  ;;  %5729 = vst [vmem:[#allocation41_spill] sm:$0xff] %v4478_v22  ;;  %v1154_v8 = vmul.f32 0.2, %v1138_v35  ;;  %v1574_v12 = vadd.f32 %v4074_v6, %v4061_v0 }
 0x342   :  { %3350 = vpow2.f32 %v787_v7  ;;  %v4483_v14 = vmax.f32 %v1138_v35, %v1154_v8  ;;  %v1590_v49 = vmul.f32 0.2, %v1574_v12  ;;  %v772_v8 = vsub.f32 %v4155_v23, %v4290_v57  ;;  %v3255_v23 = vld [vmem:[%s5636_s1 + $0x10] sm:$0xff]  }
 0x343   :  { %v4515_v57 = vunpack.c.h.bf16 %v3255_v23 }
 0x344   :  { %5730 = vst [vmem:[#allocation42_spill] sm:$0xff] %v4483_v14  ;;  %v4494_v7 = vmax.f32 %v1574_v12, %v1590_v49  ;;  %v793_v0 = vmul.f32 1.442695, %v772_v8 }
 0x345   :  { %5732 = vst [vmem:[#allocation44_spill] sm:$0xff] %v4515_v57 }
 0x346   :  { %683 = vperm.xlu1 %3316, %v4052_v51   ;;  %5731 = vst [vmem:[#allocation43_spill] sm:$0xff] %v4494_v7  ;;  %3352 = vpow2.f32 %v793_v0 }
 0x348   :  { %v3351_v46 = vpop.eup %3350 }
 0x34d   :  { %v1788_v18 = vpop.permute.xlu1 %1787 }
 0x34e   :  { %1809 = vmatpush.bf16.msrb.mxu1 %v1788_v18  ;;  %3319 = vset.pattern.permute.xlu1 %v5718_v37  ;;  %v4473_v37 = vmul.f32 %v3351_v46, %v4466_v16 }
 0x356   :  { %1280 = vadd.xlane.f32.xlu0 %v4460_v27 }
 0x36a   :  { %v4476_v36 = vpop.xlane.xlu0 %837 }
 0x370   :  { %835 = vadd.xlane.f32.xlu1 %v4473_v37 }
 0x378   :  { %374 = vmax.xlane.f32.xlu1 %v4478_v22  ;;  %v4487_v18 = vpop.xlane.xlu1 %1274 }
 0x37d   :  { %v1103_v10 = vpop.permute.xlu0 %1102 }
 0x37e   :  { %v1139_v39 = vadd.f32 %v4071_v5, %v1103_v10 }
 0x380   :  { %1194 = vmax.xlane.f32.xlu1 %v4483_v14  ;;  %v1155_v42 = vmul.f32 0.2, %v1139_v39  ;;  %v4496_v46 = vpop.xlane.xlu1 %1711 }
 0x382   :  { %v4489_v11 = vmax.f32 %v1139_v39, %v1155_v42 }
 0x388   :  { %1196 = vmax.xlane.f32.xlu1 %v4489_v11 }
 0x390   :  { %1631 = vmax.xlane.f32.xlu1 %v4494_v7 }
 0x398   :  { %v660_v19 = vpop.permute.xlu1 %659 }
 0x399   :  { %v696_v21 = vadd.f32 %v4068_v4, %v660_v19  ;;  %v3353_v19 = vpop.eup %3352 }
 0x39a   :  { %v4519_v8 = vmul.f32 %v3353_v19, %v4515_v57 }
 0x39b   :  { %v712_v35 = vmul.f32 0.2, %v696_v21 }
 0x39d   :  { %v4502_v10 = vmax.f32 %v696_v21, %v712_v35  ;;  %v1107_v21 = vpop.permute.xlu0 %1106 }
 0x39e   :  { %v1140_v35 = vadd.f32 %v4071_v5, %v1107_v21 }
 0x39f   :  { %753 = vmax.xlane.f32.xlu2 %v4502_v10 }
 0x3a0   :  { %v664_v39 = vpop.permute.xlu1 %663 }
 0x3a1   :  { %v697_v42 = vadd.f32 %v4068_v4, %v664_v39  ;;  %v1156_v39 = vmul.f32 0.2, %v1140_v35 }
 0x3a3   :  { %v713_v12 = vmul.f32 0.2, %v697_v42  ;;  %v4527_v14 = vmax.f32 %v1140_v35, %v1156_v39 }
 0x3a5   :  { %v4506_v49 = vmax.f32 %v697_v42, %v713_v12  ;;  %v396_v42 = vsub.f32 %v4144_v62, %v4273_v30  ;;  %v1576_v12 = vadd.f32 %v4074_v6, %v4344_v29 }
 0x3a7   :  { %755 = vmax.xlane.f32.xlu0 %v4506_v49  ;;  %v412_v19 = vmul.f32 1.442695, %v396_v42  ;;  %v1592_v21 = vmul.f32 0.2, %v1576_v12  ;;  %v5735_v42 = vld [vmem:[#allocation9_spill] sm:$0xff] }
 0x3a8   :  { %v4509_v7 = vpop.permute.xlu1 %667 }
 0x3a9   :  { %1110 = vperm.xlu1 %3319, %v4035_v45   ;;  %3354 = vpow2.f32 %v412_v19  ;;  %v4535_v62 = vmax.f32 %v1576_v12, %v1592_v21  ;;  %v4557_v21 = vunpack.c.l.bf16 %v3255_v23 }
 0x3af   :  { %841 = vadd.xlane.f32.xlu0 %v4519_v8  ;;  %v3355_v30 = vpop.eup %3354 }
 0x3b0   :  { %v1786_v0 = vpop.permute.xlu1 %1785  ;;  %v4544_v29 = vmul.f32 %v3355_v30, %v4218_v63 }
 0x3b1   :  { %1810 = vmatpush.bf16.msrb.mxu1 %v1786_v0  ;;  %1122 = vperm.xlu1 %3319, %v4045_v48   ;;  %v397_v0 = vsub.f32 %v4202_v31, %v4305_v13  ;;  %v5733_v13 = vld [vmem:[#allocation14_spill] sm:$0xff] }
 0x3b2   :  { %v1650_v35 = vsub.f32 %v5733_v13, %v4296_v15  ;;  %5736 = vst [vmem:[#allocation14_spill] sm:$0xff] %v4557_v21  ;;  %v5737_v15 = vld [vmem:[#allocation19_spill] sm:$0xff]  ;;  %v699_v13 = vadd.f32 %v4068_v4, %v4376_v3  ;;  %v700_v3 = vadd.f32 %v4068_v4, %v4384_v9 }
 0x3b7   :  { %1533 = vperm.xlu2 %3317, %v3942_v28   ;;  %1198 = vmax.xlane.f32.xlu0 %v4527_v14  ;;  %v414_v28 = vmul.f32 1.442695, %v397_v0 }
 0x3b9   :  { %3321 = vset.pattern.permute.xlu1 %v5702_v2  ;;  %v1214_v2 = vsub.f32 %v4161_v54, %v4293_v40  ;;  %3356 = vpow2.f32 %v414_v28  ;;  %v1671_v40 = vmul.f32 1.442695, %v1650_v35  ;;  %v5734_v54 = vld [vmem:[#allocation20_spill] sm:$0xff] }
 0x3ba   :  { %1561 = vperm.xlu1 %3321, %v4052_v51   ;;  %v1647_v12 = vsub.f32 %v5735_v42, %v5734_v54  ;;  %v5738_v28 = vld [vmem:[#allocation8_spill] sm:$0xff] }
 0x3bb   :  { %v1234_v31 = vmul.f32 1.442695, %v1214_v2  ;;  %v771_v30 = vsub.f32 %v5738_v28, %v5737_v15  ;;  %v320_v15 = vadd.f32 %v4134_v17, %v4317_v32  ;;  %v5741_v32 = vld [vmem:[#allocation25_spill] sm:$0xff] }
 0x3bd   :  { %3358 = vpow2.f32 %v1234_v31  ;;  %v4565_v31 = vpop.permute.xlu1 %683 }
 0x3be   :  { %3360 = vpow2.f32 %v1671_v40  ;;  %v715_v40 = vmul.f32 0.2, %v699_v13 }
 0x3bf   :  { %1783 = vrot.lane.b32.xlu2 %v4180_v24, %s3810_s30  ;;  %1635 = vmax.xlane.f32.xlu0 %v4535_v62  ;;  %v3357_v24 = vpop.eup %3356 }
 0x3c0   :  { %v4552_v39 = vmul.f32 %v3357_v24, %v4300_v43  ;;  %v791_v24 = vmul.f32 1.442695, %v771_v30 }
 0x3c2   :  { %3322 = vset.pattern.permute.xlu1 %v5709_v33 }
 0x3c3   :  { %v3359_v19 = vpop.eup %3358 }
 0x3c4   :  { %v4560_v0 = vmul.f32 %v3359_v19, %v4557_v21  ;;  %v3361_v2 = vpop.eup %3360 }
 0x3c5   :  { %v4570_v23 = vmul.f32 %v3361_v2, %v4515_v57  ;;  %v716_v2 = vmul.f32 0.2, %v700_v3 }
 0x3c7   :  { %1346 = vrot.lane.b32.xlu2 %v4189_v34, %s3809_s29  ;;  %476 = vadd.xlane.f32.xlu0 %v4544_v29  ;;  %v1665_v34 = vmul.f32 1.442695, %v1647_v12  ;;  %v5739_v12 = vld [vmem:[#allocation13_spill] sm:$0xff] }
 0x3c8   :  { %v773_v19 = vsub.f32 %v5739_v12, %v4331_v56  ;;  %v323_v56 = vadd.f32 %v4134_v17, %v4327_v41  ;;  %v3256_v41 = vld [vmem:[%s5636_s1 + $0x18] sm:$0xff]  }
 0x3c9   :  { %3362 = vpow2.f32 %v1665_v34  ;;  %v4582_v34 = vmax.f32 %v699_v13, %v715_v40  ;;  %v774_v40 = vsub.f32 %v5741_v32, %v4412_v55 }
 0x3ca   :  { %3364 = vpow2.f32 %v791_v24  ;;  %v795_v30 = vmul.f32 1.442695, %v773_v19  ;;  %v4597_v19 = vmax.f32 %v700_v3, %v716_v2  ;;  %v339_v43 = vmul.f32 0.2, %v323_v56 }
 0x3cb   :  { %3366 = vrcp.f32 %v4476_v36  ;;  %5740 = vst [vmem:[#allocation20_spill] sm:$0xff] %v4582_v34  ;;  %v1575_v3 = vadd.f32 %v4074_v6, %v4378_v53  ;;  %v4617_v2 = vunpack.c.h.bf16 %v3256_v41 }
 0x3cc   :  { %5742 = vst [vmem:[#allocation9_spill] sm:$0xff] %v4597_v19 }
 0x3cf   :  { %478 = vadd.xlane.f32.xlu0 %v4552_v39  ;;  %v3363_v35 = vpop.eup %3362 }
 0x3d0   :  { %v4575_v54 = vmul.f32 %v3363_v35, %v4466_v16  ;;  %v3365_v28 = vpop.eup %3364 }
 0x3d1   :  { %v3367_v36 = vpop.eup %3366  ;;  %v4590_v35 = vmul.f32 %v3365_v28, %v4557_v21  ;;  %v4608_v28 = vmax.f32 %v323_v56, %v339_v43  ;;  %v1710_v56 = vpop.xlane.xlu2 %1709 }
 0x3d2   :  { %v882_v13 = vmul.f32 %v3367_v36, %v4405_v50  ;;  %v797_v50 = vmul.f32 1.442695, %v774_v40  ;;  %v1591_v36 = vmul.f32 0.2, %v1575_v3 }
 0x3d3   :  { %5743 = vst [vmem:[#allocation19_spill] sm:$0xff] %v4608_v28 }
 0x3d7   :  { %1282 = vadd.xlane.f32.xlu0 %v4560_v0 }
 0x3df   :  { %1719 = vadd.xlane.f32.xlu0 %v4570_v23 }
 0x3e3   :  { %v836_v42 = vpop.xlane.xlu1 %835 }
 0x3e4   :  { %3368 = vrcp.f32 %v836_v42  ;;  %1713 = vadd.xlane.f32.xlu1 %v4575_v54  ;;  %v336_v42 = vmul.f32 0.2, %v320_v15 }
 0x3e5   :  { %3370 = vpow2.f32 %v795_v30  ;;  %v1782_v30 = vpop.permute.xlu0 %1781 }
 0x3e6   :  { %v4599_v63 = vmax.f32 %v320_v15, %v336_v42  ;;  %3372 = vpow2.f32 %v797_v50  ;;  %v4619_v42 = vmax.f32 %v1575_v3, %v1591_v36 }
 0x3e7   :  { %759 = vmax.xlane.f32.xlu0 %v4582_v34  ;;  %3374 = vrcp.f32 %v4496_v46 }
 0x3e8   :  { %5744 = vst [vmem:[#allocation8_spill] sm:$0xff] %v4619_v42  ;;  %3376 = vrcp.f32 %v1710_v56 }
 0x3e9   :  { %3378 = vrcp.f32 %v4487_v18 }
 0x3ea   :  { %v3369_v24 = vpop.eup %3368  ;;  %3380 = vrcp.f32 %v4434_v20 }
 0x3eb   :  { %v881_v9 = vmul.f32 %v3369_v24, %v4473_v37  ;;  %v4606_v37 = vunpack.c.l.bf16 %v3256_v41  ;;  %v3371_v55 = vpop.eup %3370 }
 0x3ec   :  { %839 = vadd.xlane.f32.xlu1 %v4590_v35  ;;  %v3373_v24 = vpop.eup %3372 }
 0x3ed   :  { %v896_v12 = vpack.c.bf16 %v882_v13, %v881_v9  ;;  %v4614_v15 = vmul.f32 %v3371_v55, %v4606_v37  ;;  %v4623_v43 = vmul.f32 %v3373_v24, %v4617_v2  ;;  %v4626_v53 = vpop.permute.xlu0 %1126  ;;  %v4630_v13 = vpop.xlane.xlu2 %751 }
 0x3ee   :  { %v3375_v34 = vpop.eup %3374 }
 0x3ef   :  { %948 = vmatmul.bf16.gmra.mxu3 %v896_v12  ;;  %761 = vmax.xlane.f32.xlu0 %v4597_v19  ;;  %v4636_v12 = vpop.xlane.xlu1 %374  ;;  %v3377_v46 = vpop.eup %3376  ;;  %v1758_v56 = vmul.f32 %v3375_v34, %v4423_v26 }
 0x3f0   :  { %372 = vmax.xlane.f32.xlu2 %v4599_v63  ;;  %5745 = vst [vmem:[#allocation13_spill] sm:$0xff] %v4636_v12 }
 0x3f4   :  { %378 = vmax.xlane.f32.xlu1 %v4608_v28 }
 0x3f5   :  { %v4628_v9 = vpop.permute.xlu0 %267 }
 0x3f7   :  { %843 = vadd.xlane.f32.xlu0 %v4614_v15  ;;  %v4645_v36 = vpop.xlane.xlu1 %1194 }
 0x3f8   :  { %5746 = vst [vmem:[#allocation25_spill] sm:$0xff] %v4645_v36 }
 0x3fc   :  { %1633 = vmax.xlane.f32.xlu1 %v4619_v42  ;;  %v1757_v42 = vmul.f32 %v3377_v46, %v4389_v58  ;;  %v5749_v58 = vld [vmem:[#allocation26_spill] sm:$0xff] }
 0x3fd   :  { %v4632_v32 = vpop.xlane.xlu0 %1280 }
 0x3fe   :  { %v1773_v18 = vpack.c.bf16 %v1758_v56, %v1757_v42 }
 0x3ff   :  { %845 = vadd.xlane.f32.xlu0 %v4623_v43 }
 0x412   :  { %v4634_v40 = vpop.xlane.xlu2 %753 }
 0x415   :  { %282 = vperm.xlu1 %3322, %v3969_v38  }
 0x41a   :  { %v1534_v41 = vpop.permute.xlu2 %1533  ;;  %v4639_v50 = vpop.xlane.xlu0 %755 }
 0x41b   :  { %v1573_v55 = vadd.f32 %v4074_v6, %v1534_v41  ;;  %v3379_v41 = vpop.eup %3378 }
 0x41c   :  { %v3381_v28 = vpop.eup %3380 }
 0x41d   :  { %302 = vperm.xlu1 %3322, %v4042_v47   ;;  %v1589_v3 = vmul.f32 0.2, %v1573_v55 }
 0x41f   :  { %v4647_v24 = vmax.f32 %v1573_v55, %v1589_v3  ;;  %v1322_v55 = vmul.f32 %v3379_v41, %v4417_v1  ;;  %v4654_v3 = vpop.xlane.xlu1 %1196 }
 0x421   :  { %5747 = vst [vmem:[#allocation45_spill] sm:$0xff] %v4647_v24  ;;  %1629 = vmax.xlane.f32.xlu2 %v4647_v24  ;;  %v1323_v24 = vmul.f32 %v3381_v28, %v4348_v59 }
 0x422   :  { %v1784_v38 = vpop.permute.xlu2 %1783  ;;  %v842_v19 = vpop.xlane.xlu0 %841 }
 0x423   :  { %1811 = vmatpush.bf16.msrb.mxu1 %v1784_v38  ;;  %v1338_v38 = vpack.c.bf16 %v1323_v24, %v1322_v55 }
 0x427   :  { %1812 = vmatpush.bf16.msrb.mxu1 %v1782_v30  ;;  %v4661_v34 = vpop.xlane.xlu1 %1631  ;;  %v5750_v30 = vld [vmem:[#allocation12_spill] sm:$0xff] }
 0x428   :  { %5748 = vst [vmem:[#allocation46_spill] sm:$0xff] %v4661_v34  ;;  %v1649_v42 = vsub.f32 %v5750_v30, %v5749_v58  ;;  %v5754_v34 = vld [vmem:[#allocation10_spill] sm:$0xff] }
 0x42a   :  { %v1347_v36 = vpop.permute.xlu2 %1346  ;;  %1813 = vmatmul.bf16.vlgmr.msrb.gmra.mxu1 %v1773_v18  ;;  %v4656_v20 = vpop.xlane.xlu0 %1198  ;;  %v1669_v46 = vmul.f32 1.442695, %v1649_v42 }
 0x42b   :  { %1377 = vmatpush.bf16.msrb.mxu0 %v1347_v36  ;;  %v5751_v36 = vld [vmem:[#allocation38_spill] sm:$0xff] }
 0x42c   :  { %3382 = vpow2.f32 %v1669_v46  ;;  %v1142_v24 = vadd.f32 %v4071_v5, %v5751_v36  ;;  %v5753_v36 = vld [vmem:[#allocation22_spill] sm:$0xff] }
 0x42d   :  { %v1212_v22 = vsub.f32 %v5754_v34, %v5753_v36 }
 0x42e   :  { %1378 = vmatmul.bf16.vlgmr.msrb.gmra.mxu0 %v1338_v38  ;;  %v1158_v38 = vmul.f32 0.2, %v1142_v24 }
 0x42f   :  { %v4666_v56 = vpop.permute.xlu1 %1110 }
 0x432   :  { %v4659_v26 = vpop.xlane.xlu0 %1635  ;;  %v3383_v59 = vpop.eup %3382 }
 0x433   :  { %v4674_v18 = vmul.f32 %v3383_v59, %v4557_v21 }
 0x437   :  { %v4671_v41 = vpop.permute.xlu1 %1122 }
 0x439   :  { %1553 = vperm.xlu2 %3317, %v4042_v47  }
 0x43a   :  { %v477_v1 = vpop.xlane.xlu0 %476 }
 0x43b   :  { %3384 = vrcp.f32 %v477_v1  ;;  %v4682_v1 = vmax.f32 %v1142_v24, %v1158_v38 }
 0x43d   :  { %5752 = vst [vmem:[#allocation26_spill] sm:$0xff] %v4682_v1 }
 0x441   :  { %1557 = vperm.xlu2 %3317, %v4045_v48   ;;  %v3385_v55 = vpop.eup %3384 }
 0x442   :  { %v479_v28 = vpop.xlane.xlu0 %478  ;;  %v524_v30 = vmul.f32 %v3385_v55, %v4544_v29  ;;  %v1230_v29 = vmul.f32 1.442695, %v1212_v22  ;;  %v5757_v55 = vld [vmem:[#allocation7_spill] sm:$0xff] }
 0x443   :  { %3386 = vrcp.f32 %v479_v28  ;;  %v4684_v28 = vpop.permute.xlu1 %1561 }
 0x444   :  { %3388 = vrcp.f32 %v842_v19 }
 0x445   :  { %3390 = vpow2.f32 %v1230_v29 }
 0x447   :  { %1717 = vadd.xlane.f32.xlu1 %v4674_v18 }
 0x449   :  { %v3387_v47 = vpop.eup %3386  ;;  %3323 = vset.pattern.permute.xlu2 %v5709_v33 }
 0x44a   :  { %v4678_v58 = vpop.xlane.xlu0 %1282  ;;  %v525_v42 = vmul.f32 %v3387_v47, %v4552_v39  ;;  %v5756_v39 = vld [vmem:[#allocation18_spill] sm:$0xff] }
 0x44b   :  { %v1648_v24 = vsub.f32 %v5757_v55, %v5756_v39  ;;  %v698_v55 = vadd.f32 %v4068_v4, %v4509_v7 }
 0x44c   :  { %v540_v46 = vpack.c.bf16 %v525_v42, %v524_v30  ;;  %v3389_v42 = vpop.eup %3388 }
 0x44d   :  { %v1667_v30 = vmul.f32 1.442695, %v1648_v24  ;;  %v884_v36 = vmul.f32 %v3389_v42, %v4519_v8  ;;  %v714_v8 = vmul.f32 0.2, %v698_v55 }
 0x44e   :  { %564 = vmatmul.bf16.vlgmr.msrb.gmra.mxu2 %v540_v46  ;;  %v3391_v46 = vpop.eup %3390 }
 0x44f   :  { %1202 = vmax.xlane.f32.xlu1 %v4682_v1  ;;  %v4702_v22 = vmul.f32 %v3391_v46, %v4466_v16  ;;  %v4715_v42 = vmax.f32 %v698_v55, %v714_v8 }
 0x451   :  { %5760 = vst [vmem:[#allocation10_spill] sm:$0xff] %v4715_v42 }
 0x452   :  { %v4687_v59 = vpop.xlane.xlu0 %1719 }
 0x457   :  { %v4691_v33 = vpop.xlane.xlu1 %1713 }
 0x45a   :  { %v4693_v12 = vpop.xlane.xlu0 %759 }
 0x45b   :  { %5755 = vst [vmem:[#allocation12_spill] sm:$0xff] %v4693_v12 }
 0x45f   :  { %v840_v47 = vpop.xlane.xlu1 %839 }
 0x460   :  { %3392 = vrcp.f32 %v840_v47 }
 0x461   :  { %3394 = vpow2.f32 %v1667_v30  ;;  %v322_v30 = vadd.f32 %v4134_v17, %v4628_v9  ;;  %v1141_v9 = vadd.f32 %v4071_v5, %v4666_v56 }
 0x462   :  { %v4697_v38 = vpop.xlane.xlu0 %761 }
 0x463   :  { %5758 = vst [vmem:[#allocation38_spill] sm:$0xff] %v4697_v38  ;;  %v1157_v8 = vmul.f32 0.2, %v1141_v9 }
 0x466   :  { %v3393_v1 = vpop.eup %3392 }
 0x467   :  { %v883_v34 = vmul.f32 %v3393_v1, %v4590_v35  ;;  %v3395_v39 = vpop.eup %3394  ;;  %v4711_v1 = vpop.xlane.xlu1 %378 }
 0x468   :  { %v4708_v24 = vmul.f32 %v3395_v39, %v4402_v52  ;;  %5759 = vst [vmem:[#allocation22_spill] sm:$0xff] %v4711_v1  ;;  %v5762_v39 = vld [vmem:[#allocation11_spill] sm:$0xff] }
 0x469   :  { %v897_v19 = vpack.c.bf16 %v884_v36, %v883_v34  ;;  %v338_v36 = vmul.f32 0.2, %v322_v30 }
 0x46a   :  { %1278 = vadd.xlane.f32.xlu2 %v4702_v22  ;;  %v844_v29 = vpop.xlane.xlu0 %843 }
 0x46b   :  { %953 = vmatmul.bf16.gmra.mxu3 %v897_v19  ;;  %3396 = vrcp.f32 %v844_v29  ;;  %v5761_v29 = vld [vmem:[#allocation24_spill] sm:$0xff]  ;;  %v4724_v38 = vmax.f32 %v322_v30, %v338_v36 }
 0x46d   :  { %5764 = vst [vmem:[#allocation7_spill] sm:$0xff] %v4724_v38 }
 0x46f   :  { %v4722_v12 = vpop.xlane.xlu1 %1633 }
 0x470   :  { %5763 = vst [vmem:[#allocation18_spill] sm:$0xff] %v4722_v12 }
 0x471   :  { %v3397_v47 = vpop.eup %3396 }
 0x472   :  { %1715 = vadd.xlane.f32.xlu2 %v4708_v24  ;;  %v846_v35 = vpop.xlane.xlu0 %845  ;;  %v885_v7 = vmul.f32 %v3397_v47, %v4614_v15 }
 0x473   :  { %3398 = vrcp.f32 %v846_v35  ;;  %v1215_v35 = vsub.f32 %v5762_v39, %v5761_v29 }
 0x475   :  { %v1236_v55 = vmul.f32 1.442695, %v1215_v35 }
 0x477   :  { %3400 = vpow2.f32 %v1236_v55 }
 0x479   :  { %v3399_v46 = vpop.eup %3398 }
 0x47a   :  { %757 = vmax.xlane.f32.xlu2 %v4715_v42  ;;  %v886_v34 = vmul.f32 %v3399_v46, %v4623_v43  ;;  %v4729_v43 = vmax.f32 %v1141_v9, %v1157_v8 }
 0x47c   :  { %v898_v19 = vpack.c.bf16 %v886_v34, %v885_v7  ;;  %5765 = vst [vmem:[#allocation24_spill] sm:$0xff] %v4729_v43  ;;  %v5766_v7 = vld [vmem:[#allocation37_spill] sm:$0xff]  ;;  %v4735_v34 = vpop.xlane.xlu2 %372 }
 0x47d   :  { %v1577_v30 = vadd.f32 %v4074_v6, %v5766_v7  ;;  %v3401_v56 = vpop.eup %3400 }
 0x47e   :  { %958 = vmatmul.bf16.gmra.mxu3 %v898_v19  ;;  %v5767_v19 = vld [vmem:[#allocation36_spill] sm:$0xff]  ;;  %v4743_v39 = vmul.f32 %v3401_v56, %v4515_v57 }
 0x47f   :  { %v324_v29 = vadd.f32 %v4134_v17, %v5767_v19  ;;  %v1593_v35 = vmul.f32 0.2, %v1577_v30 }
 0x481   :  { %v340_v9 = vmul.f32 0.2, %v324_v29  ;;  %v4748_v8 = vmax.f32 %v1577_v30, %v1593_v35  ;;  %v5772_v30 = vld [vmem:[#allocation30_spill] sm:$0xff]  ;;  %v5773_v35 = vld [vmem:[#allocation17_spill] sm:$0xff] }
 0x482   :  { %376 = vmax.xlane.f32.xlu2 %v4724_v38  ;;  %v399_v42 = vsub.f32 %v5773_v35, %v5772_v30  ;;  %v5777_v30 = vld [vmem:[#allocation35_spill] sm:$0xff] }
 0x483   :  { %5768 = vst [vmem:[#allocation11_spill] sm:$0xff] %v4748_v8  ;;  %v4753_v7 = vmax.f32 %v324_v29, %v340_v9  ;;  %v5774_v9 = vld [vmem:[#allocation31_spill] sm:$0xff] }
 0x487   :  { %v283_v15 = vpop.permute.xlu1 %282 }
 0x488   :  { %v325_v47 = vadd.f32 %v4134_v17, %v283_v15  ;;  %v5769_v15 = vld [vmem:[#allocation29_spill] sm:$0xff] }
 0x48a   :  { %1200 = vmax.xlane.f32.xlu2 %v4729_v43  ;;  %v341_v46 = vmul.f32 0.2, %v325_v47  ;;  %v5771_v43 = vld [vmem:[#allocation39_spill] sm:$0xff] }
 0x48b   :  { %v1143_v19 = vadd.f32 %v4071_v5, %v5771_v43  ;;  %v418_v43 = vmul.f32 1.442695, %v399_v42 }
 0x48c   :  { %v4737_v36 = vmax.f32 %v325_v47, %v341_v46  ;;  %v5770_v47 = vld [vmem:[#allocation16_spill] sm:$0xff] }
 0x48d   :  { %v398_v46 = vsub.f32 %v5770_v47, %v5769_v15  ;;  %v1159_v12 = vmul.f32 0.2, %v1143_v19  ;;  %v1216_v47 = vsub.f32 %v5774_v9, %v4455_v60 }
 0x48e   :  { %382 = vmax.xlane.f32.xlu0 %v4737_v36 }
 0x48f   :  { %v416_v56 = vmul.f32 1.442695, %v398_v46  ;;  %v5776_v46 = vld [vmem:[#allocation21_spill] sm:$0xff] }
 0x491   :  { %3402 = vpow2.f32 %v416_v56 }
 0x492   :  { %1284 = vadd.xlane.f32.xlu2 %v4743_v39  ;;  %3404 = vpow2.f32 %v418_v43 }
 0x494   :  { %v4746_v55 = vpop.xlane.xlu2 %1629 }
 0x496   :  { %1637 = vmax.xlane.f32.xlu0 %v4748_v8  ;;  %v4761_v8 = vmax.f32 %v1143_v19, %v1159_v12  ;;  %v1238_v12 = vmul.f32 1.442695, %v1216_v47  ;;  %v5779_v47 = vld [vmem:[#allocation6_spill] sm:$0xff] }
 0x497   :  { %v3403_v29 = vpop.eup %3402 }
 0x498   :  { %3406 = vpow2.f32 %v1238_v12 }
 0x49a   :  { %380 = vmax.xlane.f32.xlu2 %v4753_v7 }
 0x49c   :  { %v1554_v38 = vpop.permute.xlu2 %1553 }
 0x49d   :  { %v1578_v1 = vadd.f32 %v4074_v6, %v1554_v38  ;;  %v4770_v38 = vmul.f32 %v3403_v29, %v4466_v16 }
 0x49f   :  { %v1594_v57 = vmul.f32 0.2, %v1578_v1 }
 0x4a1   :  { %v4763_v15 = vmax.f32 %v1578_v1, %v1594_v57  ;;  %v3405_v57 = vpop.eup %3404  ;;  %v5775_v1 = vld [vmem:[#allocation32_spill] sm:$0xff] }
 0x4a2   :  { %1204 = vmax.xlane.f32.xlu2 %v4761_v8  ;;  %v1651_v19 = vsub.f32 %v5776_v46, %v5775_v1  ;;  %v4777_v42 = vmul.f32 %v3405_v57, %v4402_v52  ;;  %v3407_v56 = vpop.eup %3406  ;;  %v775_v57 = vsub.f32 %v4444_v61, %v4630_v13  ;;  %v702_v1 = vadd.f32 %v4068_v4, %v4565_v31 }
 0x4a3   :  { %1639 = vmax.xlane.f32.xlu1 %v4763_v15  ;;  %v4784_v43 = vmul.f32 %v3407_v56, %v4606_v37  ;;  %v400_v61 = vsub.f32 %v4599_v63, %v4735_v34  ;;  %v701_v13 = vadd.f32 %v4068_v4, %v4470_v25  ;;  %v1219_v4 = vsub.f32 %v4489_v11, %v4654_v3 }
 0x4a4   :  { %v1673_v60 = vmul.f32 1.442695, %v1651_v19  ;;  %v799_v46 = vmul.f32 1.442695, %v775_v57  ;;  %v718_v19 = vmul.f32 0.2, %v702_v1 }
 0x4a5   :  { %v717_v63 = vmul.f32 0.2, %v701_v13  ;;  %v5781_v57 = vld [vmem:[#allocation33_spill] sm:$0xff] }
 0x4a6   :  { %3408 = vpow2.f32 %v1673_v60  ;;  %v776_v60 = vsub.f32 %v4502_v10, %v4634_v40  ;;  %v4804_v56 = vmax.f32 %v702_v1, %v718_v19  ;;  %v4815_v10 = vpop.permute.xlu2 %1557  ;;  %v5782_v1 = vld [vmem:[#allocation27_spill] sm:$0xff]  ;;  %v777_v19 = vsub.f32 %v4506_v49, %v4639_v50 }
 0x4aa   :  { %292 = vperm.xlu0 %3320, %v4035_v45   ;;  %v5778_v45 = vld [vmem:[#allocation28_spill] sm:$0xff] }
 0x4ab   :  { %480 = vadd.xlane.f32.xlu1 %v4770_v38  ;;  %v1652_v35 = vsub.f32 %v5778_v45, %v5777_v30  ;;  %v801_v30 = vmul.f32 1.442695, %v776_v60  ;;  %v420_v45 = vmul.f32 1.442695, %v400_v61 }
 0x4ac   :  { %v3409_v9 = vpop.eup %3408 }
 0x4ad   :  { %v1675_v29 = vmul.f32 1.442695, %v1652_v35 }
 0x4af   :  { %3410 = vpow2.f32 %v1675_v29  ;;  %v4825_v29 = vmax.f32 %v701_v13, %v717_v63 }
 0x4b0   :  { %3412 = vpow2.f32 %v799_v46  ;;  %v1217_v46 = vsub.f32 %v5782_v1, %v5781_v57 }
 0x4b1   :  { %3414 = vpow2.f32 %v801_v30 }
 0x4b2   :  { %312 = vperm.xlu0 %3320, %v4052_v51   ;;  %v4789_v51 = vmul.f32 %v3409_v9, %v4606_v37  ;;  %3416 = vpow2.f32 %v420_v45  ;;  %v1244_v9 = vmul.f32 1.442695, %v1219_v4  ;;  %v1240_v13 = vmul.f32 1.442695, %v1217_v46 }
 0x4b3   :  { %482 = vadd.xlane.f32.xlu1 %v4777_v42  ;;  %3418 = vrcp.f32 %v4632_v32 }
 0x4b5   :  { %v3411_v12 = vpop.eup %3410 }
 0x4b6   :  { %v3413_v35 = vpop.eup %3412 }
 0x4ba   :  { %287 = vperm.xlu2 %3323, %v4030_v44   ;;  %v4798_v44 = vmul.f32 %v3411_v12, %v4617_v2  ;;  %v3415_v12 = vpop.eup %3414 }
 0x4bb   :  { %1286 = vadd.xlane.f32.xlu1 %v4784_v43  ;;  %v3417_v11 = vpop.eup %3416 }
 0x4bc   :  { %v3419_v32 = vpop.eup %3418  ;;  %v4840_v61 = vmul.f32 %v3417_v11, %v4557_v21 }
 0x4bd   :  { %v1325_v49 = vmul.f32 %v3419_v32, %v4460_v27 }
 0x4c2   :  { %297 = vperm.xlu2 %3323, %v5779_v47  }
 0x4c3   :  { %1721 = vadd.xlane.f32.xlu1 %v4789_v51 }
 0x4ca   :  { %307 = vperm.xlu2 %3323, %v4045_v48   ;;  %v3257_v48 = vld [vmem:[%s5636_s1 + $0x20] sm:$0xff]  }
 0x4cb   :  { %1723 = vadd.xlane.f32.xlu1 %v4798_v44  ;;  %v4817_v40 = vunpack.c.l.bf16 %v3257_v48  ;;  %v4830_v3 = vunpack.c.h.bf16 %v3257_v48  ;;  %v803_v48 = vmul.f32 1.442695, %v777_v19  ;;  %v1220_v19 = vsub.f32 %v4527_v14, %v4656_v20 }
 0x4cd   :  { %v4822_v34 = vmul.f32 %v3413_v35, %v4817_v40  ;;  %5780 = vst [vmem:[#allocation37_spill] sm:$0xff] %v4830_v3  ;;  %v4837_v60 = vmul.f32 %v3415_v12, %v4830_v3  ;;  %v303_v35 = vpop.permute.xlu1 %302 }
 0x4d1   :  { %v565_v31 = vpop.f32.mrf.mxu2 }
 0x4d2   :  { %606 = vst.msk [vmem:[#allocation2] sm:$0xff] %vm605_vm1, %v565_v31 }
 0x4d3   :  { %765 = vmax.xlane.f32.xlu1 %v4804_v56 }
 0x4d5   :  { %v1718_v1 = vpop.xlane.xlu1 %1717 }
 0x4d9   :  { %v567_v25 = vpop.f32.mrf.mxu2 }
 0x4da   :  { %607 = vst.msk [vmem:[#allocation2 + $0x8] sm:$0xff] %vm605_vm1, %v567_v25 }
 0x4db   :  { %847 = vadd.xlane.f32.xlu1 %v4822_v34 }
 0x4dc   :  { %763 = vmax.xlane.f32.xlu0 %v4825_v29 }
 0x4dd   :  { %v1279_v47 = vpop.xlane.xlu2 %1278 }
 0x4de   :  { %3420 = vrcp.f32 %v1279_v47 }
 0x4df   :  { %3422 = vpow2.f32 %v1244_v9 }
 0x4e0   :  { %3424 = vrcp.f32 %v4691_v33  ;;  %v3258_v33 = vld [vmem:[%s5636_s1 + $0x28] sm:$0xff]  }
 0x4e1   :  { %v4858_v11 = vunpack.c.l.bf16 %v3258_v33 }
 0x4e3   :  { %849 = vadd.xlane.f32.xlu1 %v4837_v60 }
 0x4e4   :  { %v3421_v31 = vpop.eup %3420  ;;  %484 = vadd.xlane.f32.xlu0 %v4840_v61 }
 0x4e5   :  { %v1716_v30 = vpop.xlane.xlu2 %1715  ;;  %v1324_v45 = vmul.f32 %v3421_v31, %v4702_v22  ;;  %v3423_v50 = vpop.eup %3422  ;;  %v329_v31 = vadd.f32 %v4134_v17, %v303_v35 }
 0x4e6   :  { %3426 = vrcp.f32 %v1716_v30  ;;  %v3425_v4 = vpop.eup %3424  ;;  %v4848_v25 = vmul.f32 %v3423_v50, %v4830_v3 }
 0x4e7   :  { %v1339_v63 = vpack.c.bf16 %v1325_v49, %v1324_v45  ;;  %3428 = vpow2.f32 %v1240_v13  ;;  %v1759_v27 = vmul.f32 %v3425_v4, %v4575_v54  ;;  %v345_v14 = vmul.f32 0.2, %v329_v31 }
 0x4e8   :  { %3430 = vpow2.f32 %v803_v48  ;;  %v1656_v48 = vsub.f32 %v4535_v62, %v4659_v26  ;;  %v4888_v26 = vunpack.c.h.bf16 %v3258_v33 }
 0x4e9   :  { %1383 = vmatmul.bf16.gmra.mxu0 %v1339_v63  ;;  %3432 = vrcp.f32 %v1718_v1  ;;  %v4876_v45 = vmax.f32 %v329_v31, %v345_v14  ;;  %v4896_v1 = vpop.xlane.xlu1 %1202 }
 0x4ea   :  { %3434 = vrcp.f32 %v4687_v59  ;;  %v1683_v50 = vmul.f32 1.442695, %v1656_v48 }
 0x4ec   :  { %v3427_v9 = vpop.eup %3426  ;;  %1292 = vadd.xlane.f32.xlu0 %v4848_v25 }
 0x4ed   :  { %v4854_v22 = vpop.xlane.xlu2 %757  ;;  %v1760_v47 = vmul.f32 %v3427_v9, %v4708_v24  ;;  %v3429_v12 = vpop.eup %3428  ;;  %v1246_v24 = vmul.f32 1.442695, %v1220_v19 }
 0x4ee   :  { %v3431_v57 = vpop.eup %3430  ;;  %v4863_v32 = vmul.f32 %v3429_v12, %v4617_v2 }
 0x4ef   :  { %v1774_v46 = vpack.c.bf16 %v1760_v47, %v1759_v27  ;;  %v4867_v54 = vmul.f32 %v3431_v57, %v4858_v11  ;;  %v3433_v20 = vpop.eup %3432  ;;  %3436 = vpow2.f32 %v1246_v24 }
 0x4f0   :  { %v3435_v30 = vpop.eup %3434  ;;  %v1761_v49 = vmul.f32 %v3433_v20, %v4674_v18  ;;  %3438 = vpow2.f32 %v1683_v50 }
 0x4f1   :  { %1818 = vmatmul.bf16.gmra.mxu1 %v1774_v46  ;;  %v1762_v35 = vmul.f32 %v3435_v30, %v4570_v23  ;;  %3440 = vrcp.f32 %v4678_v58 }
 0x4f3   :  { %1288 = vadd.xlane.f32.xlu2 %v4863_v32  ;;  %v1775_v4 = vpack.c.bf16 %v1762_v35, %v1761_v49 }
 0x4f4   :  { %851 = vadd.xlane.f32.xlu0 %v4867_v54 }
 0x4f5   :  { %v4872_v13 = vpop.xlane.xlu2 %376  ;;  %v3437_v63 = vpop.eup %3436 }
 0x4f6   :  { %v4884_v9 = vmul.f32 %v3437_v63, %v4858_v11  ;;  %v3439_v18 = vpop.eup %3438  ;;  %v1144_v63 = vadd.f32 %v4071_v5, %v4671_v41  ;;  %v1580_v41 = vadd.f32 %v4074_v6, %v4684_v28 }
 0x4f7   :  { %v4891_v47 = vmul.f32 %v3439_v18, %v4888_v26  ;;  %v3441_v23 = vpop.eup %3440 }
 0x4f8   :  { %v1326_v46 = vmul.f32 %v3441_v23, %v4560_v0  ;;  %v1145_v0 = vadd.f32 %v4071_v5, %v4626_v53  ;;  %v1160_v23 = vmul.f32 0.2, %v1144_v63 }
 0x4fc   :  { %390 = vmax.xlane.f32.xlu0 %v4876_v45 }
 0x4fd   :  { %v4880_v59 = vpop.xlane.xlu2 %1200 }
 0x501   :  { %1823 = vmatmul.bf16.gmra.mxu1 %v1775_v4  ;;  %v383_v27 = vpop.xlane.xlu0 %382 }
 0x504   :  { %1294 = vadd.xlane.f32.xlu0 %v4884_v9 }
 0x505   :  { %v1285_v62 = vpop.xlane.xlu2 %1284 }
 0x506   :  { %3442 = vrcp.f32 %v1285_v62  ;;  %v1161_v62 = vmul.f32 0.2, %v1145_v0 }
 0x508   :  { %v4922_v5 = vmax.f32 %v1145_v0, %v1161_v62  ;;  %v1596_v0 = vmul.f32 0.2, %v1580_v41 }
 0x509   :  { %v1638_v19 = vpop.xlane.xlu0 %1637 }
 0x50a   :  { %v4942_v21 = vmax.f32 %v1580_v41, %v1596_v0 }
 0x50c   :  { %1731 = vadd.xlane.f32.xlu0 %v4891_v47  ;;  %v3443_v12 = vpop.eup %3442 }
 0x50d   :  { %v4894_v57 = vpop.xlane.xlu2 %380  ;;  %v1327_v58 = vmul.f32 %v3443_v12, %v4743_v39 }
 0x50f   :  { %v1340_v33 = vpack.c.bf16 %v1327_v58, %v1326_v46  ;;  %v5783_v46 = vld [vmem:[#allocation13_spill] sm:$0xff] }
 0x510   :  { %v5784_v58 = vld [vmem:[#allocation41_spill] sm:$0xff] }
 0x511   :  { %1388 = vmatmul.bf16.gmra.mxu0 %v1340_v33  ;;  %v401_v53 = vsub.f32 %v5784_v58, %v5783_v46  ;;  %v5785_v33 = vld [vmem:[#allocation25_spill] sm:$0xff] }
 0x515   :  { %v4900_v31 = vpop.xlane.xlu2 %1204 }
 0x516   :  { %v4902_v24 = vpop.xlane.xlu1 %1639 }
 0x51c   :  { %v293_v14 = vpop.permute.xlu0 %292 }
 0x51d   :  { %v327_v20 = vadd.f32 %v4134_v17, %v293_v14  ;;  %v288_v48 = vpop.permute.xlu2 %287  ;;  %v5786_v14 = vld [vmem:[#allocation42_spill] sm:$0xff] }
 0x51e   :  { %v326_v30 = vadd.f32 %v4134_v17, %v288_v48  ;;  %v481_v49 = vpop.xlane.xlu1 %480  ;;  %v405_v48 = vsub.f32 %v4737_v36, %v383_v27 }
 0x51f   :  { %v343_v50 = vmul.f32 0.2, %v327_v20  ;;  %3444 = vrcp.f32 %v481_v49  ;;  %v1579_v49 = vadd.f32 %v4074_v6, %v4815_v10  ;;  %v5787_v10 = vld [vmem:[#allocation46_spill] sm:$0xff] }
 0x520   :  { %v342_v35 = vmul.f32 0.2, %v326_v30  ;;  %v430_v62 = vmul.f32 1.442695, %v405_v48 }
 0x521   :  { %v4908_v39 = vmax.f32 %v327_v20, %v343_v50  ;;  %v1218_v20 = vsub.f32 %v5786_v14, %v5785_v33  ;;  %v1595_v33 = vmul.f32 0.2, %v1579_v49 }
 0x522   :  { %v4912_v4 = vmax.f32 %v326_v30, %v342_v35  ;;  %v4927_v30 = vmax.f32 %v1144_v63, %v1160_v23  ;;  %v422_v35 = vmul.f32 1.442695, %v401_v53  ;;  %v5788_v63 = vld [vmem:[#allocation43_spill] sm:$0xff]  ;;  %v5789_v53 = vld [vmem:[#allocation45_spill] sm:$0xff] }
 0x523   :  { %386 = vmax.xlane.f32.xlu1 %v4908_v39  ;;  %v1654_v23 = vsub.f32 %v5788_v63, %v5787_v10  ;;  %v1653_v14 = vsub.f32 %v5789_v53, %v4746_v55  ;;  %v4945_v16 = vmax.f32 %v1579_v49, %v1595_v33  ;;  %v5794_v53 = vld [vmem:[#allocation19_spill] sm:$0xff] }
 0x524   :  { %384 = vmax.xlane.f32.xlu2 %v4912_v4 }
 0x525   :  { %v4916_v18 = vpop.permute.xlu2 %297  ;;  %v3445_v50 = vpop.eup %3444 }
 0x526   :  { %v483_v12 = vpop.xlane.xlu1 %482  ;;  %v526_v27 = vmul.f32 %v3445_v50, %v4770_v38  ;;  %v1677_v50 = vmul.f32 1.442695, %v1653_v14 }
 0x527   :  { %3446 = vrcp.f32 %v483_v12  ;;  %v1242_v12 = vmul.f32 1.442695, %v1218_v20 }
 0x528   :  { %3448 = vpow2.f32 %v422_v35 }
 0x529   :  { %3450 = vpow2.f32 %v1242_v12 }
 0x52a   :  { %3452 = vpow2.f32 %v430_v62  ;;  %v5792_v62 = vld [vmem:[#allocation44_spill] sm:$0xff] }
 0x52b   :  { %1208 = vmax.xlane.f32.xlu1 %v4922_v5 }
 0x52c   :  { %1206 = vmax.xlane.f32.xlu2 %v4927_v30 }
 0x52d   :  { %v3447_v46 = vpop.eup %3446  ;;  %v308_v58 = vpop.permute.xlu2 %307 }
 0x52e   :  { %v330_v28 = vadd.f32 %v4134_v17, %v308_v58  ;;  %v4934_v36 = vpop.xlane.xlu1 %1286  ;;  %v527_v6 = vmul.f32 %v3447_v46, %v4777_v42  ;;  %v5790_v58 = vld [vmem:[#allocation11_spill] sm:$0xff]  ;;  %v1679_v42 = vmul.f32 1.442695, %v1654_v23  ;;  %v3449_v55 = vpop.eup %3448  ;;  %v5793_v23 = vld [vmem:[#allocation22_spill] sm:$0xff] }
 0x52f   :  { %v1657_v52 = vsub.f32 %v5790_v58, %v1638_v19  ;;  %v3451_v41 = vpop.eup %3450  ;;  %v5791_v19 = vld [vmem:[#allocation10_spill] sm:$0xff]  ;;  %v4958_v33 = vmul.f32 %v3449_v55, %v5792_v62  ;;  %v403_v14 = vsub.f32 %v5794_v53, %v5793_v23 }
 0x530   :  { %v346_v20 = vmul.f32 0.2, %v330_v28  ;;  %v541_v48 = vpack.c.bf16 %v527_v6, %v526_v27  ;;  %v3453_v46 = vpop.eup %3452  ;;  %3454 = vpow2.f32 %v1679_v42  ;;  %v778_v49 = vsub.f32 %v5791_v19, %v4854_v22  ;;  %v4969_v22 = vld [vmem:[%s5636_s1 + $0x30] sm:$0xff]  }
 0x531   :  { %v1685_v35 = vmul.f32 1.442695, %v1657_v52  ;;  %3456 = vpow2.f32 %v1677_v50  ;;  %v4955_v0 = vmul.f32 %v3451_v41, %v4817_v40  ;;  %v328_v42 = vadd.f32 %v4134_v17, %v4916_v18 }
 0x532   :  { %v4947_v38 = vmax.f32 %v330_v28, %v346_v20  ;;  %569 = vmatmul.bf16.gmra.mxu2 %v541_v48  ;;  %v4961_v28 = vmul.f32 %v3453_v46, %v4830_v3  ;;  %v805_v27 = vmul.f32 1.442695, %v778_v49  ;;  %v4974_v20 = vunpack.c.l.bf16 %v4969_v22  ;;  %v5795_v48 = vld [vmem:[#allocation7_spill] sm:$0xff] }
 0x533   :  { %1643 = vmax.xlane.f32.xlu1 %v4942_v21  ;;  %3458 = vpow2.f32 %v1685_v35  ;;  %v402_v58 = vsub.f32 %v5795_v48, %v4872_v13  ;;  %v344_v18 = vmul.f32 0.2, %v328_v42 }
 0x534   :  { %1641 = vmax.xlane.f32.xlu2 %v4945_v16  ;;  %392 = vmax.xlane.f32.xlu0 %v4947_v38 }
 0x535   :  { %v424_v46 = vmul.f32 1.442695, %v402_v58 }
 0x536   :  { %v1722_v12 = vpop.xlane.xlu1 %1721  ;;  %v3455_v52 = vpop.eup %3454 }
 0x537   :  { %3460 = vrcp.f32 %v1722_v12  ;;  %v3457_v6 = vpop.eup %3456  ;;  %v4981_v50 = vmul.f32 %v3455_v52, %v4830_v3  ;;  %v426_v12 = vmul.f32 1.442695, %v403_v14  ;;  %v5798_v14 = vld [vmem:[#allocation24_spill] sm:$0xff]  ;;  %v4999_v3 = vmax.f32 %v328_v42, %v344_v18  ;;  %v5800_v18 = vld [vmem:[#allocation9_spill] sm:$0xff] }
 0x538   :  { %v4984_v55 = vmul.f32 %v3457_v6, %v4817_v40  ;;  %v1221_v48 = vsub.f32 %v5798_v14, %v4880_v59 }
 0x539   :  { %v3459_v63 = vpop.eup %3458 }
 0x53a   :  { %v4987_v35 = vmul.f32 %v3459_v63, %v4974_v20  ;;  %v5797_v63 = vld [vmem:[#allocation8_spill] sm:$0xff] }
 0x53b   :  { %1290 = vadd.xlane.f32.xlu1 %v4955_v0 }
 0x53c   :  { %486 = vadd.xlane.f32.xlu2 %v4958_v33  ;;  %494 = vadd.xlane.f32.xlu0 %v4961_v28 }
 0x53d   :  { %v3461_v41 = vpop.eup %3460 }
 0x53e   :  { %v1724_v10 = vpop.xlane.xlu1 %1723  ;;  %v1763_v49 = vmul.f32 %v3461_v41, %v4789_v51  ;;  %v1248_v41 = vmul.f32 1.442695, %v1221_v48 }
 0x53f   :  { %3462 = vrcp.f32 %v1724_v10  ;;  %v5796_v10 = vld [vmem:[#allocation18_spill] sm:$0xff] }
 0x540   :  { %3464 = vpow2.f32 %v805_v27  ;;  %v1655_v23 = vsub.f32 %v5797_v63, %v5796_v10 }
 0x541   :  { %3466 = vpow2.f32 %v426_v12 }
 0x542   :  { %3468 = vpow2.f32 %v424_v46  ;;  %v5799_v46 = vld [vmem:[#allocation38_spill] sm:$0xff] }
 0x543   :  { %1727 = vadd.xlane.f32.xlu1 %v4981_v50 }
 0x544   :  { %1725 = vadd.xlane.f32.xlu2 %v4984_v55  ;;  %1733 = vadd.xlane.f32.xlu0 %v4987_v35 }
 0x545   :  { %v3463_v13 = vpop.eup %3462 }
 0x546   :  { %v766_v19 = vpop.xlane.xlu1 %765  ;;  %v1764_v52 = vmul.f32 %v3463_v13, %v4798_v44  ;;  %v3465_v27 = vpop.eup %3464  ;;  %v5008_v44 = vld [vmem:[%s5636_s1 + $0x38] sm:$0xff]  }
 0x547   :  { %v782_v6 = vsub.f32 %v4804_v56, %v766_v19  ;;  %v5002_v51 = vmul.f32 %v3465_v27, %v4888_v26  ;;  %v1681_v56 = vmul.f32 1.442695, %v1655_v23  ;;  %v3467_v59 = vpop.eup %3466  ;;  %v5012_v12 = vunpack.c.h.bf16 %v5008_v44  ;;  %v5802_v27 = vld [vmem:[#allocation20_spill] sm:$0xff] }
 0x548   :  { %v1776_v53 = vpack.c.bf16 %v1764_v52, %v1763_v49  ;;  %v3469_v13 = vpop.eup %3468  ;;  %v780_v19 = vsub.f32 %v5800_v18, %v5799_v46  ;;  %v5801_v52 = vld [vmem:[#allocation12_spill] sm:$0xff]  ;;  %v5019_v10 = vmul.f32 %v3467_v59, %v4617_v2  ;;  %v313_v18 = vpop.permute.xlu0 %312 }
 0x549   :  { %v813_v58 = vmul.f32 1.442695, %v782_v6  ;;  %v779_v6 = vsub.f32 %v5802_v27, %v5801_v52  ;;  %v5022_v63 = vmul.f32 %v3469_v13, %v4606_v37 }
 0x54a   :  { %1828 = vmatmul.bf16.gmra.mxu1 %v1776_v53  ;;  %v809_v53 = vmul.f32 1.442695, %v780_v19 }
 0x54b   :  { %3470 = vpow2.f32 %v813_v58  ;;  %388 = vmax.xlane.f32.xlu1 %v4999_v3  ;;  %v807_v14 = vmul.f32 1.442695, %v779_v6  ;;  %v1223_v6 = vsub.f32 %v4761_v8, %v4900_v31 }
 0x54c   :  { %853 = vadd.xlane.f32.xlu2 %v5002_v51  ;;  %3472 = vpow2.f32 %v1681_v56 }
 0x54d   :  { %3474 = vpow2.f32 %v1248_v41  ;;  %v404_v41 = vsub.f32 %v4753_v7, %v4894_v57 }
 0x54e   :  { %v848_v42 = vpop.xlane.xlu1 %847 }
 0x54f   :  { %3476 = vrcp.f32 %v848_v42  ;;  %v428_v42 = vmul.f32 1.442695, %v404_v41 }
 0x551   :  { %v3471_v49 = vpop.eup %3470 }
 0x552   :  { %v5025_v23 = vmul.f32 %v3471_v49, %v5012_v12  ;;  %v3473_v48 = vpop.eup %3472  ;;  %v5041_v49 = vunpack.c.h.bf16 %v4969_v22  ;;  %v331_v22 = vadd.f32 %v4134_v17, %v313_v18 }
 0x553   :  { %490 = vadd.xlane.f32.xlu1 %v5019_v10  ;;  %v3475_v56 = vpop.eup %3474  ;;  %v5033_v59 = vmul.f32 %v3473_v48, %v4858_v11 }
 0x554   :  { %488 = vadd.xlane.f32.xlu2 %v5022_v63  ;;  %861 = vadd.xlane.f32.xlu0 %v5025_v23  ;;  %v5036_v13 = vmul.f32 %v3475_v56, %v4888_v26 }
 0x555   :  { %v3477_v46 = vpop.eup %3476 }
 0x556   :  { %v850_v58 = vpop.xlane.xlu1 %849  ;;  %v887_v7 = vmul.f32 %v3477_v46, %v4822_v34  ;;  %v764_v34 = vpop.xlane.xlu0 %763  ;;  %v1658_v46 = vsub.f32 %v4763_v15, %v4902_v24 }
 0x557   :  { %3478 = vrcp.f32 %v850_v58  ;;  %v781_v17 = vsub.f32 %v4825_v29, %v764_v34 }
 0x558   :  { %3480 = vpow2.f32 %v809_v53 }
 0x559   :  { %3482 = vpow2.f32 %v807_v14  ;;  %v5803_v14 = vld [vmem:[#allocation26_spill] sm:$0xff] }
 0x55a   :  { %3484 = vpow2.f32 %v428_v42  ;;  %v1222_v48 = vsub.f32 %v5803_v14, %v4896_v1  ;;  %v347_v1 = vmul.f32 0.2, %v331_v22 }
 0x55b   :  { %1729 = vadd.xlane.f32.xlu1 %v5033_v59  ;;  %3486 = vrcp.f32 %v4934_v36  ;;  %v811_v36 = vmul.f32 1.442695, %v781_v17 }
 0x55c   :  { %1296 = vadd.xlane.f32.xlu2 %v5036_v13  ;;  %v1250_v8 = vmul.f32 1.442695, %v1222_v48  ;;  %v5065_v42 = vmax.f32 %v331_v22, %v347_v1  ;;  %v5082_v48 = vunpack.c.l.bf16 %v5008_v44 }
 0x55d   :  { %v3479_v19 = vpop.eup %3478 }
 0x55e   :  { %v3481_v52 = vpop.eup %3480  ;;  %v888_v57 = vmul.f32 %v3479_v19, %v4837_v60  ;;  %v1252_v60 = vmul.f32 1.442695, %v1223_v6 }
 0x55f   :  { %v3483_v27 = vpop.eup %3482  ;;  %v5050_v58 = vmul.f32 %v3481_v52, %v5041_v49 }
 0x560   :  { %v899_v53 = vpack.c.bf16 %v888_v57, %v887_v7  ;;  %v5054_v56 = vmul.f32 %v3483_v27, %v4974_v20  ;;  %v3485_v31 = vpop.eup %3484  ;;  %v1687_v7 = vmul.f32 1.442695, %v1658_v46  ;;  %v5069_v57 = vpop.xlane.xlu0 %484 }
 0x561   :  { %v5063_v18 = vmul.f32 %v3485_v31, %v4817_v40  ;;  %v3487_v19 = vpop.eup %3486 }
 0x562   :  { %963 = vmatmul.bf16.gmra.mxu3 %v899_v53  ;;  %v1328_v27 = vmul.f32 %v3487_v19, %v4784_v43 }
 0x563   :  { %857 = vadd.xlane.f32.xlu1 %v5050_v58 }
 0x564   :  { %855 = vadd.xlane.f32.xlu2 %v5054_v56 }
 0x566   :  { %v1289_v41 = vpop.xlane.xlu2 %1288 }
 0x567   :  { %3488 = vrcp.f32 %v1289_v41 }
 0x568   :  { %3490 = vpow2.f32 %v1252_v60  ;;  %v1293_v22 = vpop.xlane.xlu0 %1292 }
 0x569   :  { %3492 = vpow2.f32 %v1250_v8 }
 0x56a   :  { %3494 = vpow2.f32 %v811_v36 }
 0x56b   :  { %492 = vadd.xlane.f32.xlu1 %v5063_v18  ;;  %3496 = vpow2.f32 %v1687_v7 }
 0x56c   :  { %394 = vmax.xlane.f32.xlu2 %v5065_v42 }
 0x56d   :  { %v3489_v52 = vpop.eup %3488 }
 0x56e   :  { %v3491_v29 = vpop.eup %3490  ;;  %v1329_v15 = vmul.f32 %v3489_v52, %v4863_v32 }
 0x56f   :  { %v3493_v24 = vpop.eup %3492  ;;  %v5074_v53 = vmul.f32 %v3491_v29, %v5041_v49 }
 0x570   :  { %v1341_v6 = vpack.c.bf16 %v1329_v15, %v1328_v27  ;;  %v5077_v14 = vmul.f32 %v3493_v24, %v4974_v20  ;;  %v3495_v43 = vpop.eup %3494  ;;  %v5092_v8 = vpop.xlane.xlu0 %851 }
 0x571   :  { %v3497_v32 = vpop.eup %3496  ;;  %v5085_v34 = vmul.f32 %v3495_v43, %v5082_v48 }
 0x572   :  { %1393 = vmatmul.bf16.gmra.mxu0 %v1341_v6  ;;  %v5088_v60 = vmul.f32 %v3497_v32, %v5041_v49 }
 0x573   :  { %1300 = vadd.xlane.f32.xlu1 %v5074_v53 }
 0x574   :  { %1298 = vadd.xlane.f32.xlu2 %v5077_v14 }
 0x578   :  { %v391_v31 = vpop.xlane.xlu0 %390 }
 0x57b   :  { %859 = vadd.xlane.f32.xlu1 %v5085_v34 }
 0x57c   :  { %1735 = vadd.xlane.f32.xlu2 %v5088_v60 }
 0x580   :  { %v5094_v1 = vpop.xlane.xlu0 %1294 }
 0x588   :  { %v5098_v7 = vpop.xlane.xlu0 %1731 }
 0x596   :  { %v387_v44 = vpop.xlane.xlu1 %386 }
 0x597   :  { %v407_v41 = vsub.f32 %v4908_v39, %v387_v44  ;;  %v385_v17 = vpop.xlane.xlu2 %384 }
 0x598   :  { %v406_v46 = vsub.f32 %v4912_v4, %v385_v17 }
 0x599   :  { %v434_v19 = vmul.f32 1.442695, %v407_v41 }
 0x59a   :  { %v432_v36 = vmul.f32 1.442695, %v406_v46 }
 0x59b   :  { %3498 = vpow2.f32 %v434_v19  ;;  %v409_v19 = vsub.f32 %v4876_v45, %v391_v31 }
 0x59c   :  { %3500 = vpow2.f32 %v432_v36 }
 0x59e   :  { %v1209_v52 = vpop.xlane.xlu1 %1208 }
 0x59f   :  { %v1225_v29 = vsub.f32 %v4922_v5, %v1209_v52  ;;  %v1207_v27 = vpop.xlane.xlu2 %1206 }
 0x5a0   :  { %v1224_v15 = vsub.f32 %v4927_v30, %v1207_v27 }
 0x5a1   :  { %v3499_v24 = vpop.eup %3498  ;;  %v1256_v6 = vmul.f32 1.442695, %v1225_v29 }
 0x5a2   :  { %v3501_v43 = vpop.eup %3500  ;;  %v1254_v32 = vmul.f32 1.442695, %v1224_v15  ;;  %v5103_v39 = vmul.f32 %v3499_v24, %v4888_v26 }
 0x5a3   :  { %3502 = vpow2.f32 %v1256_v6  ;;  %v5106_v4 = vmul.f32 %v3501_v43, %v4858_v11 }
 0x5a4   :  { %3504 = vpow2.f32 %v1254_v32  ;;  %498 = vadd.xlane.f32.xlu1 %v5103_v39 }
 0x5a5   :  { %496 = vadd.xlane.f32.xlu2 %v5106_v4 }
 0x5a6   :  { %v1644_v5 = vpop.xlane.xlu1 %1643 }
 0x5a7   :  { %v1660_v44 = vsub.f32 %v4942_v21, %v1644_v5  ;;  %v1642_v30 = vpop.xlane.xlu2 %1641  ;;  %v393_v41 = vpop.xlane.xlu0 %392  ;;  %v438_v21 = vmul.f32 1.442695, %v409_v19 }
 0x5a8   :  { %v1659_v17 = vsub.f32 %v4945_v16, %v1642_v30  ;;  %v410_v27 = vsub.f32 %v4947_v38, %v393_v41 }
 0x5a9   :  { %v3503_v46 = vpop.eup %3502  ;;  %v1691_v36 = vmul.f32 1.442695, %v1660_v44 }
 0x5aa   :  { %v3505_v52 = vpop.eup %3504  ;;  %v1689_v29 = vmul.f32 1.442695, %v1659_v17  ;;  %v5115_v15 = vmul.f32 %v3503_v46, %v5012_v12  ;;  %v440_v16 = vmul.f32 1.442695, %v410_v27 }
 0x5ab   :  { %3506 = vpow2.f32 %v1691_v36  ;;  %v5118_v24 = vmul.f32 %v3505_v52, %v5082_v48 }
 0x5ac   :  { %3508 = vpow2.f32 %v1689_v29 }
 0x5ad   :  { %3510 = vrcp.f32 %v1293_v22  ;;  %1302 = vadd.xlane.f32.xlu0 %v5118_v24  ;;  %1304 = vadd.xlane.f32.xlu2 %v5115_v15 }
 0x5ae   :  { %3512 = vrcp.f32 %v5069_v57  ;;  %v1291_v45 = vpop.xlane.xlu1 %1290 }
 0x5af   :  { %3514 = vrcp.f32 %v1291_v45  ;;  %v487_v38 = vpop.xlane.xlu2 %486 }
 0x5b0   :  { %3516 = vrcp.f32 %v487_v38 }
 0x5b1   :  { %v3507_v31 = vpop.eup %3506  ;;  %3518 = vpow2.f32 %v438_v21 }
 0x5b2   :  { %v3509_v6 = vpop.eup %3508  ;;  %3520 = vpow2.f32 %v440_v16  ;;  %v5124_v43 = vmul.f32 %v3507_v31, %v5012_v12 }
 0x5b3   :  { %v3511_v22 = vpop.eup %3510  ;;  %v5127_v32 = vmul.f32 %v3509_v6, %v5082_v48 }
 0x5b4   :  { %v3513_v5 = vpop.eup %3512  ;;  %v1331_v46 = vmul.f32 %v3511_v22, %v4848_v25 }
 0x5b5   :  { %v3515_v44 = vpop.eup %3514  ;;  %v570_v30 = vpop.f32.mrf.mxu2  ;;  %1739 = vadd.xlane.f32.xlu0 %v5124_v43  ;;  %1737 = vadd.xlane.f32.xlu1 %v5127_v32  ;;  %v528_v52 = vmul.f32 %v3513_v5, %v4840_v61 }
 0x5b6   :  { %v3517_v57 = vpop.eup %3516  ;;  %608 = vst.msk [vmem:[#allocation2 + $0x10] sm:$0xff] %vm605_vm1, %v570_v30  ;;  %v1728_v41 = vpop.xlane.xlu1 %1727  ;;  %v1330_v17 = vmul.f32 %v3515_v44, %v4955_v0 }
 0x5b7   :  { %v3519_v19 = vpop.eup %3518  ;;  %3522 = vrcp.f32 %v1728_v41  ;;  %v1726_v36 = vpop.xlane.xlu2 %1725  ;;  %v529_v29 = vmul.f32 %v3517_v57, %v4958_v33 }
 0x5b8   :  { %v3521_v27 = vpop.eup %3520  ;;  %3524 = vrcp.f32 %v1726_v36  ;;  %v1342_v21 = vpack.c.bf16 %v1331_v46, %v1330_v17  ;;  %v5137_v45 = vmul.f32 %v3519_v19, %v5041_v49  ;;  %v944_v57 = vpop.f32.mrf.mxu3 }
 0x5b9   :  { %v542_v16 = vpack.c.bf16 %v529_v29, %v528_v52  ;;  %v5140_v0 = vmul.f32 %v3521_v27, %v5082_v48  ;;  %3526 = vrcp.f32 %v5092_v8  ;;  %v1814_v27 = vpop.f32.mrf.mxu1 }
 0x5ba   :  { %1398 = vmatmul.bf16.gmra.mxu0 %v1342_v21 }
 0x5bb   :  { %574 = vmatmul.bf16.gmra.mxu2 %v542_v16  ;;  %v5156_v16 = vpop.f32.mrf.mxu0 }
 0x5bd   :  { %v3523_v25 = vpop.eup %3522  ;;  %v572_v38 = vpop.f32.mrf.mxu2  ;;  %502 = vadd.xlane.f32.xlu1 %v5137_v45  ;;  %504 = vadd.xlane.f32.xlu0 %v5140_v0 }
 0x5be   :  { %v3525_v61 = vpop.eup %3524  ;;  %609 = vst.msk [vmem:[#allocation2 + $0x18] sm:$0xff] %vm605_vm1, %v572_v38  ;;  %v389_v33 = vpop.xlane.xlu1 %388  ;;  %v1766_v31 = vmul.f32 %v3523_v25, %v4981_v50 }
 0x5bf   :  { %v408_v6 = vsub.f32 %v4999_v3, %v389_v33  ;;  %v854_v22 = vpop.xlane.xlu2 %853  ;;  %v1765_v5 = vmul.f32 %v3525_v61, %v4984_v55  ;;  %v3527_v41 = vpop.eup %3526 }
 0x5c0   :  { %3528 = vrcp.f32 %v854_v22  ;;  %v889_v19 = vmul.f32 %v3527_v41, %v4867_v54  ;;  %v946_v29 = vpop.f32.mrf.mxu3 }
 0x5c1   :  { %v436_v44 = vmul.f32 1.442695, %v408_v6  ;;  %v1777_v30 = vpack.c.bf16 %v1766_v31, %v1765_v5 }
 0x5c3   :  { %3530 = vpow2.f32 %v436_v44  ;;  %1833 = vmatmul.bf16.gmra.mxu1 %v1777_v30  ;;  %v1816_v44 = vpop.f32.mrf.mxu1 }
 0x5c6   :  { %v3529_v17 = vpop.eup %3528  ;;  %v491_v46 = vpop.xlane.xlu1 %490 }
 0x5c7   :  { %3532 = vrcp.f32 %v491_v46  ;;  %v489_v8 = vpop.xlane.xlu2 %488  ;;  %v890_v50 = vmul.f32 %v3529_v17, %v5002_v51  ;;  %v1381_v17 = vpop.f32.mrf.mxu0 }
 0x5c8   :  { %3534 = vrcp.f32 %v489_v8  ;;  %v5162_v6 = vpop.f32.mrf.mxu3  ;;  %v495_v46 = vpop.xlane.xlu0 %494 }
 0x5c9   :  { %v3531_v3 = vpop.eup %3530  ;;  %v900_v36 = vpack.c.bf16 %v890_v50, %v889_v19  ;;  %3536 = vrcp.f32 %v5098_v7 }
 0x5ca   :  { %v5152_v55 = vmul.f32 %v3531_v3, %v4974_v20  ;;  %3538 = vrcp.f32 %v5094_v1 }
 0x5cb   :  { %968 = vmatmul.bf16.gmra.mxu3 %v900_v36  ;;  %v1819_v36 = vpop.f32.mrf.mxu1 }
 0x5cc   :  { %500 = vadd.xlane.f32.xlu2 %v5152_v55 }
 0x5cd   :  { %v3533_v52 = vpop.eup %3532 }
 0x5ce   :  { %v3535_v21 = vpop.eup %3534  ;;  %v1730_v54 = vpop.xlane.xlu1 %1729  ;;  %v531_v51 = vmul.f32 %v3533_v52, %v5019_v10 }
 0x5cf   :  { %3540 = vrcp.f32 %v1730_v54  ;;  %v1297_v25 = vpop.xlane.xlu2 %1296  ;;  %v530_v38 = vmul.f32 %v3535_v21, %v5022_v63  ;;  %v3537_v33 = vpop.eup %3536 }
 0x5d0   :  { %3542 = vrcp.f32 %v1297_v25  ;;  %v3539_v31 = vpop.eup %3538  ;;  %v1768_v1 = vmul.f32 %v3537_v33, %v4891_v47  ;;  %v1734_v21 = vpop.xlane.xlu0 %1733 }
 0x5d1   :  { %1002 = vrot.lane.b32.xlu0 %v946_v29, %s3810_s30  ;;  %v543_v61 = vpack.c.bf16 %v531_v51, %v530_v38  ;;  %v1332_v30 = vmul.f32 %v3539_v31, %v4884_v9  ;;  %v951_v9 = vpop.f32.mrf.mxu3  ;;  %v1384_v25 = vpop.f32.mrf.mxu0 }
 0x5d3   :  { %579 = vmatmul.bf16.gmra.mxu2 %v543_v61 }
 0x5d5   :  { %v3541_v7 = vpop.eup %3540 }
 0x5d6   :  { %v3543_v22 = vpop.eup %3542  ;;  %v858_v5 = vpop.xlane.xlu1 %857  ;;  %1000 = vrot.lane.b32.xlu1 %v944_v57, %s3810_s30  ;;  %v1767_v10 = vmul.f32 %v3541_v7, %v5033_v59 }
 0x5d7   :  { %3544 = vrcp.f32 %v858_v5  ;;  %v856_v63 = vpop.xlane.xlu2 %855  ;;  %v1333_v41 = vmul.f32 %v3543_v22, %v5036_v13  ;;  %v1821_v7 = vpop.f32.mrf.mxu1 }
 0x5d8   :  { %3546 = vrcp.f32 %v856_v63  ;;  %v1778_v8 = vpack.c.bf16 %v1768_v1, %v1767_v10  ;;  %v862_v22 = vpop.xlane.xlu0 %861 }
 0x5d9   :  { %1437 = vrot.lane.b32.xlu0 %v1381_v17, %s3809_s29  ;;  %v1343_v19 = vpack.c.bf16 %v1333_v41, %v1332_v30  ;;  %3548 = vrcp.f32 %v495_v46  ;;  %v5178_v61 = vpop.f32.mrf.mxu3 }
 0x5da   :  { %1838 = vmatmul.bf16.gmra.mxu1 %v1778_v8 }
 0x5db   :  { %1403 = vmatmul.bf16.gmra.mxu0 %v1343_v19 }
 0x5dd   :  { %v3545_v57 = vpop.eup %3544 }
 0x5de   :  { %v3547_v59 = vpop.eup %3546  ;;  %v493_v47 = vpop.xlane.xlu1 %492  ;;  %1870 = vrot.lane.b32.xlu1 %v1814_v27, %s3808_s2  ;;  %v892_v50 = vmul.f32 %v3545_v57, %v5050_v58 }
 0x5df   :  { %3550 = vrcp.f32 %v493_v47  ;;  %v395_v13 = vpop.xlane.xlu2 %394  ;;  %v891_v3 = vmul.f32 %v3547_v59, %v5054_v56  ;;  %v3549_v51 = vpop.eup %3548 }
 0x5e0   :  { %v411_v52 = vsub.f32 %v5065_v42, %v395_v13  ;;  %v533_v56 = vmul.f32 %v3549_v51, %v4961_v28  ;;  %v1824_v19 = vpop.f32.mrf.mxu1  ;;  %v2087_v51 = vld [vmem:[%s5639_s4 + $0x60] sm:$0xff] }
 0x5e1   :  { %1872 = vrot.lane.b32.xlu0 %v1816_v44, %s3808_s2  ;;  %v901_v29 = vpack.c.bf16 %v892_v50, %v891_v3  ;;  %v956_v41 = vpop.f32.mrf.mxu3 }
 0x5e2   :  { %v442_v54 = vmul.f32 1.442695, %v411_v52  ;;  %v2089_v52 = vld [vmem:[%s5639_s4 + $0x70] sm:$0xff] }
 0x5e3   :  { %973 = vmatmul.bf16.gmra.mxu3 %v901_v29 }
 0x5e4   :  { %3552 = vpow2.f32 %v442_v54 }
 0x5e5   :  { %v3551_v27 = vpop.eup %3550 }
 0x5e6   :  { %v1301_v38 = vpop.xlane.xlu1 %1300  ;;  %1006 = vrot.lane.b32.xlu1 %v951_v9, %s3810_s30  ;;  %v532_v58 = vmul.f32 %v3551_v27, %v5063_v18  ;;  %v1386_v18 = vpop.f32.mrf.mxu0 }
 0x5e7   :  { %3554 = vrcp.f32 %v1301_v38  ;;  %v1299_v42 = vpop.xlane.xlu2 %1298 }
 0x5e8   :  { %3556 = vrcp.f32 %v1299_v42  ;;  %v544_v33 = vpack.c.bf16 %v533_v56, %v532_v58 }
 0x5e9   :  { %1439 = vrot.lane.b32.xlu0 %v1384_v25, %s3809_s29  ;;  %3558 = vrcp.f32 %v862_v22  ;;  %v5194_v3 = vpop.f32.mrf.mxu3  ;;  %v2088_v25 = vld [vmem:[%s5639_s4 + $0x68] sm:$0xff] }
 0x5ea   :  { %v3553_v31 = vpop.eup %3552  ;;  %584 = vmatmul.bf16.gmra.mxu2 %v544_v33  ;;  %3560 = vrcp.f32 %v1734_v21  ;;  %v2097_v38 = vpack.c.bf16 %v2088_v25, %v2087_v51  ;;  %v2085_v33 = vld [vmem:[%s5639_s4 + $0x50] sm:$0xff] }
 0x5eb   :  { %v5182_v5 = vmul.f32 %v3553_v31, %v5012_v12 }
 0x5ed   :  { %v3555_v10 = vpop.eup %3554  ;;  %506 = vadd.xlane.f32.xlu2 %v5182_v5 }
 0x5ee   :  { %v3557_v28 = vpop.eup %3556  ;;  %v860_v1 = vpop.xlane.xlu1 %859  ;;  %1874 = vrot.lane.b32.xlu1 %v1819_v36, %s3808_s2  ;;  %v1335_v44 = vmul.f32 %v3555_v10, %v5074_v53 }
 0x5ef   :  { %3562 = vrcp.f32 %v860_v1  ;;  %v1736_v63 = vpop.xlane.xlu2 %1735  ;;  %v1334_v30 = vmul.f32 %v3557_v28, %v5077_v14  ;;  %v3559_v46 = vpop.eup %3558 }
 0x5f0   :  { %3564 = vrcp.f32 %v1736_v63  ;;  %v3561_v8 = vpop.eup %3560  ;;  %v1389_v47 = vpop.f32.mrf.mxu0  ;;  %v894_v50 = vmul.f32 %v3559_v46, %v5025_v23 }
 0x5f1   :  { %1876 = vrot.lane.b32.xlu0 %v1821_v7, %s3808_s2  ;;  %v1344_v17 = vpack.c.bf16 %v1335_v44, %v1334_v30  ;;  %v1769_v14 = vmul.f32 %v3561_v8, %v4987_v35  ;;  %v1826_v35 = vpop.f32.mrf.mxu1  ;;  %v961_v29 = vpop.f32.mrf.mxu3 }
 0x5f3   :  { %1408 = vmatmul.bf16.gmra.mxu0 %v1344_v17 }
 0x5f5   :  { %v3563_v57 = vpop.eup %3562 }
 0x5f6   :  { %v3565_v59 = vpop.eup %3564  ;;  %1010 = vrot.lane.b32.xlu1 %v956_v41, %s3810_s30  ;;  %v893_v53 = vmul.f32 %v3563_v57, %v5085_v34  ;;  %v2090_v34 = vld [vmem:[%s5639_s4 + $0x78] sm:$0xff] }
 0x5f7   :  { %v1770_v9 = vmul.f32 %v3565_v59, %v5088_v60  ;;  %v2098_v23 = vpack.c.bf16 %v2090_v34, %v2089_v52 }
 0x5f8   :  { %v902_v13 = vpack.c.bf16 %v894_v50, %v893_v53  ;;  %v1391_v60 = vpop.f32.mrf.mxu0 }
 0x5f9   :  { %1443 = vrot.lane.b32.xlu0 %v1389_v47, %s3809_s29  ;;  %v1779_v36 = vpack.c.bf16 %v1770_v9, %v1769_v14  ;;  %2099 = vmatpush.bf16.msra.mxu2 %v2098_v23  ;;  %v1829_v21 = vpop.f32.mrf.mxu1  ;;  %v964_v27 = vpop.f32.mrf.mxu3  ;;  %v2081_v14 = vld [vmem:[%s5639_s4 + $0x30] sm:$0xff]  ;;  %v2082_v9 = vld [vmem:[%s5639_s4 + $0x38] sm:$0xff] }
 0x5fa   :  { %978 = vmatmul.bf16.gmra.mxu3 %v902_v13  ;;  %v2094_v13 = vpack.c.bf16 %v2082_v9, %v2081_v14 }
 0x5fb   :  { %1843 = vmatmul.bf16.gmra.mxu1 %v1779_v36 }
 0x5fd   :  { %2100 = vmatpush.bf16.msra.mxu2 %v2097_v38 }
 0x5fe   :  { %1878 = vrot.lane.b32.xlu1 %v1824_v19, %s3808_s2 }
 0x600   :  { %v1394_v54 = vpop.f32.mrf.mxu0 }
 0x601   :  { %1880 = vrot.lane.b32.xlu0 %v1826_v35, %s3808_s2  ;;  %v966_v58 = vpop.f32.mrf.mxu3 }
 0x605   :  { %1435 = vrot.lane.b32.xlu2 %v5156_v16, %s3809_s29  ;;  %v1831_v16 = vpop.f32.mrf.mxu1 }
 0x606   :  { %1014 = vrot.lane.b32.xlu1 %v961_v29, %s3810_s30 }
 0x608   :  { %v1396_v57 = vpop.f32.mrf.mxu0 }
 0x609   :  { %1447 = vrot.lane.b32.xlu0 %v1394_v54, %s3809_s29 }
 0x60d   :  { %1004 = vrot.lane.b32.xlu2 %v5162_v6, %s3810_s30  ;;  %v2086_v6 = vld [vmem:[%s5639_s4 + $0x58] sm:$0xff] }
 0x60e   :  { %1882 = vrot.lane.b32.xlu1 %v1829_v21, %s3808_s2  ;;  %v2096_v31 = vpack.c.bf16 %v2086_v6, %v2085_v33 }
 0x610   :  { %2101 = vmatpush.bf16.msra.mxu2 %v2096_v31 }
 0x611   :  { %1884 = vrot.lane.b32.xlu0 %v1831_v16, %s3808_s2  ;;  %v2079_v16 = vld [vmem:[%s5639_s4 + $0x20] sm:$0xff] }
 0x615   :  { %1441 = vrot.lane.b32.xlu2 %v1386_v18, %s3809_s29 }
 0x616   :  { %1018 = vrot.lane.b32.xlu1 %v966_v58, %s3810_s30 }
 0x617   :  { %v499_v56 = vpop.xlane.xlu1 %498 }
 0x618   :  { %3566 = vrcp.f32 %v499_v56  ;;  %v497_v42 = vpop.xlane.xlu2 %496 }
 0x619   :  { %3568 = vrcp.f32 %v497_v42 }
 0x61d   :  { %1008 = vrot.lane.b32.xlu2 %v5178_v61, %s3810_s30 }
 0x61e   :  { %v3567_v7 = vpop.eup %3566 }
 0x61f   :  { %v3569_v22 = vpop.eup %3568  ;;  %v535_v10 = vmul.f32 %v3567_v7, %v5103_v39  ;;  %v2083_v39 = vld [vmem:[%s5639_s4 + $0x40] sm:$0xff] }
 0x620   :  { %v1305_v28 = vpop.xlane.xlu2 %1304  ;;  %v1303_v18 = vpop.xlane.xlu0 %1302  ;;  %v534_v1 = vmul.f32 %v3569_v22, %v5106_v4  ;;  %v2084_v4 = vld [vmem:[%s5639_s4 + $0x48] sm:$0xff] }
 0x621   :  { %3570 = vrcp.f32 %v1305_v28  ;;  %v2095_v8 = vpack.c.bf16 %v2084_v4, %v2083_v39  ;;  %v2078_v28 = vld [vmem:[%s5639_s4 + $0x18] sm:$0xff]  ;;  %v5294_v39 = vld [vmem:[%s5638_s3] ss:$0 sm:$0xff] }
 0x622   :  { %3572 = vrcp.f32 %v1303_v18  ;;  %v545_v44 = vpack.c.bf16 %v535_v10, %v534_v1  ;;  %v2077_v10 = vld [vmem:[%s5639_s4 + $0x10] sm:$0xff] }
 0x623   :  { %2102 = vmatpush.bf16.msra.mxu2 %v2095_v8  ;;  %v2092_v18 = vpack.c.bf16 %v2078_v28, %v2077_v10 }
 0x624   :  { %589 = vmatmul.bf16.gmra.mxu2 %v545_v44 }
 0x625   :  { %1445 = vrot.lane.b32.xlu2 %v1391_v60, %s3809_s29 }
 0x627   :  { %v3571_v63 = vpop.eup %3570  ;;  %2103 = vmatpush.bf16.msra.mxu2 %v2094_v13 }
 0x628   :  { %v3573_v30 = vpop.eup %3572  ;;  %v1738_v41 = vpop.xlane.xlu1 %1737  ;;  %v1337_v61 = vmul.f32 %v3571_v63, %v5115_v15 }
 0x629   :  { %v1740_v17 = vpop.xlane.xlu0 %1739  ;;  %3574 = vrcp.f32 %v1738_v41  ;;  %v1336_v46 = vmul.f32 %v3573_v30, %v5118_v24 }
 0x62a   :  { %3576 = vrcp.f32 %v1740_v17  ;;  %v2075_v17 = vld [vmem:[%s5639_s4] sm:$0xff] }
 0x62b   :  { %v1345_v19 = vpack.c.bf16 %v1337_v61, %v1336_v46  ;;  %v2076_v61 = vld [vmem:[%s5639_s4 + $0x8] sm:$0xff] }
 0x62c   :  { %v2091_v46 = vpack.c.bf16 %v2076_v61, %v2075_v17 }
 0x62d   :  { %1413 = vmatmul.bf16.gmra.mxu0 %v1345_v19  ;;  %1012 = vrot.lane.b32.xlu2 %v5194_v3, %s3810_s30 }
 0x62f   :  { %v3575_v15 = vpop.eup %3574 }
 0x630   :  { %v3577_v59 = vpop.eup %3576  ;;  %v1771_v24 = vmul.f32 %v3575_v15, %v5127_v32  ;;  %v503_v3 = vpop.xlane.xlu1 %502 }
 0x631   :  { %v1772_v47 = vmul.f32 %v3577_v59, %v5124_v43  ;;  %v505_v32 = vpop.xlane.xlu0 %504  ;;  %3578 = vrcp.f32 %v503_v3 }
 0x633   :  { %v1780_v53 = vpack.c.bf16 %v1772_v47, %v1771_v24 }
 0x635   :  { %1848 = vmatmul.bf16.gmra.mxu1 %v1780_v53  ;;  %1449 = vrot.lane.b32.xlu2 %v1396_v57, %s3809_s29 }
 0x637   :  { %v1399_v50 = vpop.f32.mrf.mxu0  ;;  %v3579_v23 = vpop.eup %3578 }
 0x638   :  { %1451 = vrot.lane.b32.xlu0 %v1399_v50, %s3809_s29  ;;  %v537_v54 = vmul.f32 %v3579_v23, %v5137_v45 }
 0x63d   :  { %1016 = vrot.lane.b32.xlu2 %v964_v27, %s3810_s30 }
 0x63e   :  { %v575_v43 = vpop.f32.mrf.mxu2 }
 0x63f   :  { %610 = vst.msk [vmem:[#allocation2 + $0x20] sm:$0xff] %vm605_vm1, %v575_v43  ;;  %v501_v36 = vpop.xlane.xlu2 %500  ;;  %v1401_v35 = vpop.f32.mrf.mxu0 }
 0x640   :  { %3580 = vrcp.f32 %v501_v36  ;;  %v1834_v52 = vpop.f32.mrf.mxu1 }
 0x641   :  { %1886 = vrot.lane.b32.xlu1 %v1834_v52, %s3808_s2  ;;  %3582 = vrcp.f32 %v505_v32 }
 0x643   :  { %v1003_v34 = vpop.permute.xlu0 %1002 }
 0x644   :  { %1050 = vst.msk [vmem:[#allocation2 + $0x8] sm:$0xff] %vm1048_vm2, %v1003_v34 }
 0x645   :  { %1453 = vrot.lane.b32.xlu2 %v1401_v35, %s3809_s29 }
 0x646   :  { %v3581_v60 = vpop.eup %3580  ;;  %v577_v29 = vpop.f32.mrf.mxu2 }
 0x647   :  { %611 = vst.msk [vmem:[#allocation2 + $0x28] sm:$0xff] %vm605_vm1, %v577_v29  ;;  %v536_v21 = vmul.f32 %v3581_v60, %v5152_v55  ;;  %v2080_v55 = vld [vmem:[%s5639_s4 + $0x28] sm:$0xff]  ;;  %v3583_v4 = vpop.eup %3582 }
 0x648   :  { %v1836_v51 = vpop.f32.mrf.mxu1  ;;  %v1001_v25 = vpop.permute.xlu1 %1000  ;;  %v2093_v45 = vpack.c.bf16 %v2080_v55, %v2079_v16  ;;  %v538_v47 = vmul.f32 %v3583_v4, %v5140_v0 }
 0x649   :  { %1049 = vst.msk [vmem:[#allocation2] sm:$0xff] %vm1048_vm2, %v1001_v25  ;;  %1888 = vrot.lane.b32.xlu0 %v1836_v51, %s3808_s2  ;;  %v546_v27 = vpack.c.bf16 %v537_v54, %v536_v21 }
 0x64a   :  { %2104 = vmatpush.bf16.msra.mxu2 %v2093_v45 }
 0x64b   :  { %594 = vmatmul.bf16.gmra.mxu2 %v546_v27  ;;  %v1438_v38 = vpop.permute.xlu0 %1437 }
 0x64c   :  { %1485 = vst.msk [vmem:[#allocation2 + $0x8] sm:$0xff] %vm1483_vm3, %v1438_v38 }
 0x64e   :  { %v969_v58 = vpop.f32.mrf.mxu3  ;;  %2105 = vmatpush.bf16.msra.mxu2 %v2092_v18 }
 0x64f   :  { %1020 = vrot.lane.b32.xlu2 %v969_v58, %s3810_s30 }
 0x650   :  { %v1871_v56 = vpop.permute.xlu1 %1870 }
 0x652   :  { %2106 = vmatpush.bf16.msra.mxu2 %v2091_v46  ;;  %v2156_v46 = vld [vmem:[%s5640_s5] sm:$0xff] }
 0x653   :  { %v1873_v42 = vpop.permute.xlu0 %1872  ;;  %v2157_v4 = vpack.c.bf16 %v2156_v46, %v2156_v46 }
 0x654   :  { %1920 = vst.msk [vmem:[#allocation2 + $0x8] sm:$0xff] %vm1918_vm4, %v1873_v42 }
 0x656   :  { %v580_v33 = vpop.f32.mrf.mxu2  ;;  %v971_v6 = vpop.f32.mrf.mxu3 }
 0x657   :  { %612 = vst.msk [vmem:[#allocation2 + $0x30] sm:$0xff] %vm605_vm1, %v580_v33  ;;  %1022 = vrot.lane.b32.xlu1 %v971_v6, %s3810_s30  ;;  %v1839_v31 = vpop.f32.mrf.mxu1 }
 0x658   :  { %v1007_v7 = vpop.permute.xlu1 %1006  ;;  %v1404_v22 = vpop.f32.mrf.mxu0 }
 0x659   :  { %1052 = vst.msk [vmem:[#allocation2 + $0x18] sm:$0xff] %vm1048_vm2, %v1007_v7  ;;  %1455 = vrot.lane.b32.xlu0 %v1404_v22, %s3809_s29 }
 0x65b   :  { %v1936_v8 = vld [vmem:[#allocation2 + $0x8] sm:$0xff]  ;;  %v1440_v57 = vpop.permute.xlu0 %1439 }
 0x65c   :  { %v1956_v50 = vadd.f32 %v5294_v39, %v1936_v8 }
 0x65e   :  { %v582_v1 = vpop.f32.mrf.mxu2  ;;  %v1988_v9 = vmin.f32 %v1956_v50, 0.0  ;;  %vm1972_vm6 = vcmp.gt.f32.partialorder %v1956_v50, 0.0 }
 0x65f   :  { %613 = vst.msk [vmem:[#allocation2 + $0x38] sm:$0xff] %vm605_vm1, %v582_v1  ;;  %1890 = vrot.lane.b32.xlu1 %v1839_v31, %s3808_s2  ;;  %v1841_v44 = vpop.f32.mrf.mxu1 }
 0x660   :  { %v507_v63 = vpop.xlane.xlu2 %506  ;;  %v1875_v30 = vpop.permute.xlu1 %1874  ;;  %v2005_v32 = vmul.f32 1.442695, %v1988_v9 }
 0x661   :  { %3584 = vrcp.f32 %v507_v63  ;;  %v1406_v41 = vpop.f32.mrf.mxu0  ;;  %1892 = vrot.lane.b32.xlu0 %v1841_v44, %s3808_s2 }
 0x662   :  { %1457 = vrot.lane.b32.xlu2 %v1406_v41, %s3809_s29  ;;  %3586 = vpow2.f32 %v2005_v32 }
 0x663   :  { %v1877_v43 = vpop.permute.xlu0 %1876 }
 0x666   :  { %v974_v19 = vpop.f32.mrf.mxu3 }
 0x667   :  { %v3585_v15 = vpop.eup %3584 }
 0x668   :  { %v1436_v59 = vpop.permute.xlu2 %1435  ;;  %v1011_v24 = vpop.permute.xlu1 %1010  ;;  %v539_v53 = vmul.f32 %v3585_v15, %v5182_v5 }
 0x669   :  { %1484 = vst.msk [vmem:[#allocation2] sm:$0xff] %vm1483_vm3, %v1436_v59  ;;  %v3587_v25 = vpop.eup %3586 }
 0x66a   :  { %1919 = vst.msk [vmem:[#allocation2] sm:$0xff] %vm1918_vm4, %v1871_v56  ;;  %1024 = vrot.lane.b32.xlu2 %v974_v19, %s3810_s30  ;;  %v547_v14 = vpack.c.bf16 %v539_v53, %v538_v47  ;;  %v3159_v45 = vadd.f32 -1.0, %v3587_v25 }
 0x66b   :  { %1054 = vst.msk [vmem:[#allocation2 + $0x28] sm:$0xff] %vm1048_vm2, %v1011_v24  ;;  %v1444_v38 = vpop.permute.xlu0 %1443 }
 0x66c   :  { %599 = vmatmul.bf16.gmra.mxu2 %v547_v14  ;;  %v2052_v10 = vsel %vm1972_vm6, %v1956_v50, %v3159_v45 }
 0x66d   :  { %v585_v13 = vpop.f32.mrf.mxu2 }
 0x66e   :  { %614 = vst.msk [vmem:[#allocation2 + $0x40] sm:$0xff] %vm605_vm1, %v585_v13  ;;  %v976_v3 = vpop.f32.mrf.mxu3 }
 0x66f   :  { %1026 = vrot.lane.b32.xlu1 %v976_v3, %s3810_s30 }
 0x670   :  { %v1005_v0 = vpop.permute.xlu2 %1004  ;;  %v1879_v5 = vpop.permute.xlu1 %1878 }
 0x671   :  { %1051 = vst.msk [vmem:[#allocation2 + $0x10] sm:$0xff] %vm1048_vm2, %v1005_v0  ;;  %v1409_v36 = vpop.f32.mrf.mxu0  ;;  %v1935_v52 = vld [vmem:[#allocation2] sm:$0xff] }
 0x672   :  { %1486 = vst.msk [vmem:[#allocation2 + $0x10] sm:$0xff] %vm1483_vm3, %v1440_v57  ;;  %1459 = vrot.lane.b32.xlu0 %v1409_v36, %s3809_s29  ;;  %v1955_v34 = vadd.f32 %v5294_v39, %v1935_v52  ;;  %v2185_v57 = vsel %vm2183_vm7, %v2157_v4, 0 }
 0x673   :  { %1921 = vst.msk [vmem:[#allocation2 + $0x10] sm:$0xff] %vm1918_vm4, %v1875_v30  ;;  %v1881_v63 = vpop.permute.xlu0 %1880  ;;  %2194 = vmatpush.bf16.msra.mxu3 %v2185_v57 }
 0x674   :  { %v1987_v23 = vmin.f32 %v1955_v34, 0.0  ;;  %vm1971_vm5 = vcmp.gt.f32.partialorder %v1955_v34, 0.0 }
 0x675   :  { %v587_v35 = vpop.f32.mrf.mxu2 }
 0x676   :  { %615 = vst.msk [vmem:[#allocation2 + $0x48] sm:$0xff] %vm605_vm1, %v587_v35  ;;  %v2003_v60 = vmul.f32 1.442695, %v1987_v23 }
 0x678   :  { %v1442_v29 = vpop.permute.xlu2 %1441  ;;  %v1015_v21 = vpop.permute.xlu1 %1014  ;;  %3588 = vpow2.f32 %v2003_v60 }
 0x679   :  { %1487 = vst.msk [vmem:[#allocation2 + $0x18] sm:$0xff] %vm1483_vm3, %v1442_v29  ;;  %v1411_v54 = vpop.f32.mrf.mxu0  ;;  %v1844_v51 = vpop.f32.mrf.mxu1 }
 0x67a   :  { %1922 = vst.msk [vmem:[#allocation2 + $0x18] sm:$0xff] %vm1918_vm4, %v1877_v43  ;;  %1461 = vrot.lane.b32.xlu2 %v1411_v54, %s3809_s29  ;;  %1894 = vrot.lane.b32.xlu1 %v1844_v51, %s3808_s2  ;;  %v1937_v27 = vld [vmem:[#allocation2 + $0x10] sm:$0xff] }
 0x67b   :  { %1056 = vst.msk [vmem:[#allocation2 + $0x38] sm:$0xff] %vm1048_vm2, %v1015_v21  ;;  %v1957_v16 = vadd.f32 %v5294_v39, %v1937_v27  ;;  %v1448_v53 = vpop.permute.xlu0 %1447 }
 0x67d   :  { %v979_v55 = vpop.f32.mrf.mxu3  ;;  %v1989_v58 = vmin.f32 %v1957_v16, 0.0  ;;  %vm1973_vm8 = vcmp.gt.f32.partialorder %v1957_v16, 0.0 }
 0x67e   :  { %v3589_v56 = vpop.eup %3588 }
 0x67f   :  { %v3158_v42 = vadd.f32 -1.0, %v3589_v56  ;;  %v2007_v31 = vmul.f32 1.442695, %v1989_v58 }
 0x680   :  { %v1009_v33 = vpop.permute.xlu2 %1008  ;;  %v1883_v6 = vpop.permute.xlu1 %1882 }
 0x681   :  { %1053 = vst.msk [vmem:[#allocation2 + $0x20] sm:$0xff] %vm1048_vm2, %v1009_v33  ;;  %v1846_v7 = vpop.f32.mrf.mxu1  ;;  %v2051_v22 = vsel %vm1971_vm5, %v1955_v34, %v3158_v42  ;;  %v1938_v28 = vld [vmem:[#allocation2 + $0x18] sm:$0xff]  ;;  %3590 = vpow2.f32 %v2007_v31 }
 0x682   :  { %1488 = vst.msk [vmem:[#allocation2 + $0x20] sm:$0xff] %vm1483_vm3, %v1444_v38  ;;  %1896 = vrot.lane.b32.xlu0 %v1846_v7, %s3808_s2  ;;  %1028 = vrot.lane.b32.xlu2 %v979_v55, %s3810_s30  ;;  %v2067_v18 = vpack.c.bf16 %v2052_v10, %v2051_v22  ;;  %v1958_v1 = vadd.f32 %v5294_v39, %v1938_v28 }
 0x683   :  { %1923 = vst.msk [vmem:[#allocation2 + $0x20] sm:$0xff] %vm1918_vm4, %v1879_v5  ;;  %v1885_v34 = vpop.permute.xlu0 %1884 }
 0x684   :  { %2107 = vmatmul.bf16.vlgmr.msra.gmra.mxu2 %v2067_v18  ;;  %v1990_v44 = vmin.f32 %v1958_v1, 0.0  ;;  %vm1974_vm9 = vcmp.gt.f32.partialorder %v1958_v1, 0.0 }
 0x685   :  { %v981_v30 = vpop.f32.mrf.mxu3 }
 0x686   :  { %1030 = vrot.lane.b32.xlu1 %v981_v30, %s3810_s30  ;;  %v2009_v41 = vmul.f32 1.442695, %v1990_v44 }
 0x687   :  { %v3591_v8 = vpop.eup %3590 }
 0x688   :  { %v1446_v17 = vpop.permute.xlu2 %1445  ;;  %v1019_v61 = vpop.permute.xlu1 %1018  ;;  %3592 = vpow2.f32 %v2009_v41  ;;  %v3160_v59 = vadd.f32 -1.0, %v3591_v8 }
 0x689   :  { %1489 = vst.msk [vmem:[#allocation2 + $0x28] sm:$0xff] %vm1483_vm3, %v1446_v17 }
 0x68a   :  { %1924 = vst.msk [vmem:[#allocation2 + $0x28] sm:$0xff] %vm1918_vm4, %v1881_v63  ;;  %v1939_v19 = vld [vmem:[#allocation2 + $0x20] sm:$0xff]  ;;  %v2053_v13 = vsel %vm1973_vm8, %v1957_v16, %v3160_v59 }
 0x68b   :  { %1058 = vst.msk [vmem:[#allocation2 + $0x48] sm:$0xff] %vm1048_vm2, %v1019_v61  ;;  %v1959_v15 = vadd.f32 %v5294_v39, %v1939_v19 }
 0x68d   :  { %v1991_v24 = vmin.f32 %v1959_v15, 0.0  ;;  %vm1975_vm10 = vcmp.gt.f32.partialorder %v1959_v15, 0.0 }
 0x68e   :  { %v3593_v47 = vpop.eup %3592 }
 0x68f   :  { %v3161_v50 = vadd.f32 -1.0, %v3593_v47  ;;  %v2011_v9 = vmul.f32 1.442695, %v1991_v24 }
 0x690   :  { %v1013_v14 = vpop.permute.xlu2 %1012 }
 0x691   :  { %1055 = vst.msk [vmem:[#allocation2 + $0x30] sm:$0xff] %vm1048_vm2, %v1013_v14  ;;  %v2054_v3 = vsel %vm1974_vm9, %v1958_v1, %v3161_v50  ;;  %v1940_v0 = vld [vmem:[#allocation2 + $0x28] sm:$0xff]  ;;  %3594 = vpow2.f32 %v2011_v9 }
 0x692   :  { %1490 = vst.msk [vmem:[#allocation2 + $0x30] sm:$0xff] %vm1483_vm3, %v1448_v53  ;;  %v2068_v5 = vpack.c.bf16 %v2054_v3, %v2053_v13  ;;  %v1960_v32 = vadd.f32 %v5294_v39, %v1940_v0 }
 0x693   :  { %1925 = vst.msk [vmem:[#allocation2 + $0x30] sm:$0xff] %vm1918_vm4, %v1883_v6 }
 0x694   :  { %2112 = vmatmul.bf16.gmra.mxu2 %v2068_v5  ;;  %v1992_v43 = vmin.f32 %v1960_v32, 0.0  ;;  %vm1976_vm11 = vcmp.gt.f32.partialorder %v1960_v32, 0.0 }
 0x696   :  { %v2013_v36 = vmul.f32 1.442695, %v1992_v43 }
 0x697   :  { %v3595_v23 = vpop.eup %3594 }
 0x698   :  { %v1450_v52 = vpop.permute.xlu2 %1449  ;;  %3596 = vpow2.f32 %v2013_v36  ;;  %v3162_v29 = vadd.f32 -1.0, %v3595_v23 }
 0x699   :  { %1491 = vst.msk [vmem:[#allocation2 + $0x38] sm:$0xff] %vm1483_vm3, %v1450_v52 }
 0x69a   :  { %1926 = vst.msk [vmem:[#allocation2 + $0x38] sm:$0xff] %vm1918_vm4, %v1885_v34  ;;  %v1941_v35 = vld [vmem:[#allocation2 + $0x30] sm:$0xff]  ;;  %v2055_v38 = vsel %vm1975_vm10, %v1959_v15, %v3162_v29 }
 0x69b   :  { %v1961_v60 = vadd.f32 %v5294_v39, %v1941_v35 }
 0x69d   :  { %v1993_v21 = vmin.f32 %v1961_v60, 0.0  ;;  %vm1977_vm12 = vcmp.gt.f32.partialorder %v1961_v60, 0.0 }
 0x69e   :  { %v3597_v54 = vpop.eup %3596 }
 0x69f   :  { %v3163_v51 = vadd.f32 -1.0, %v3597_v54  ;;  %v2015_v27 = vmul.f32 1.442695, %v1993_v21 }
 0x6a0   :  { %v1017_v25 = vpop.permute.xlu2 %1016 }
 0x6a1   :  { %1057 = vst.msk [vmem:[#allocation2 + $0x40] sm:$0xff] %vm1048_vm2, %v1017_v25  ;;  %v2056_v16 = vsel %vm1976_vm11, %v1960_v32, %v3163_v51  ;;  %v1942_v55 = vld [vmem:[#allocation2 + $0x38] sm:$0xff]  ;;  %3598 = vpow2.f32 %v2015_v27 }
 0x6a2   :  { %v2069_v45 = vpack.c.bf16 %v2056_v16, %v2055_v38  ;;  %v1962_v58 = vadd.f32 %v5294_v39, %v1942_v55 }
 0x6a4   :  { %2117 = vmatmul.bf16.gmra.mxu2 %v2069_v45  ;;  %v1994_v56 = vmin.f32 %v1962_v58, 0.0  ;;  %vm1978_vm13 = vcmp.gt.f32.partialorder %v1962_v58, 0.0 }
 0x6a6   :  { %v2017_v42 = vmul.f32 1.442695, %v1994_v56 }
 0x6a7   :  { %v590_v33 = vpop.f32.mrf.mxu2  ;;  %v3599_v31 = vpop.eup %3598 }
 0x6a8   :  { %616 = vst.msk [vmem:[#allocation2 + $0x50] sm:$0xff] %vm605_vm1, %v590_v33  ;;  %v1454_v6 = vpop.permute.xlu2 %1453  ;;  %3600 = vpow2.f32 %v2017_v42  ;;  %v3164_v10 = vadd.f32 -1.0, %v3599_v31 }
 0x6a9   :  { %1493 = vst.msk [vmem:[#allocation2 + $0x48] sm:$0xff] %vm1483_vm3, %v1454_v6 }
 0x6aa   :  { %v1414_v7 = vpop.f32.mrf.mxu0  ;;  %v1452_v22 = vpop.permute.xlu0 %1451  ;;  %v2057_v63 = vsel %vm1977_vm12, %v1961_v60, %v3164_v10 }
 0x6ab   :  { %1463 = vrot.lane.b32.xlu0 %v1414_v7, %s3809_s29  ;;  %1492 = vst.msk [vmem:[#allocation2 + $0x40] sm:$0xff] %vm1483_vm3, %v1452_v22 }
 0x6ae   :  { %v3601_v28 = vpop.eup %3600 }
 0x6af   :  { %v592_v18 = vpop.f32.mrf.mxu2  ;;  %v3165_v1 = vadd.f32 -1.0, %v3601_v28 }
 0x6b0   :  { %617 = vst.msk [vmem:[#allocation2 + $0x58] sm:$0xff] %vm605_vm1, %v592_v18  ;;  %v1021_v44 = vpop.permute.xlu2 %1020 }
 0x6b1   :  { %1059 = vst.msk [vmem:[#allocation2 + $0x50] sm:$0xff] %vm1048_vm2, %v1021_v44  ;;  %v2058_v30 = vsel %vm1978_vm13, %v1962_v58, %v3165_v1 }
 0x6b2   :  { %v1416_v41 = vpop.f32.mrf.mxu0  ;;  %v1849_v17 = vpop.f32.mrf.mxu1  ;;  %v2070_v61 = vpack.c.bf16 %v2058_v30, %v2057_v63 }
 0x6b3   :  { %1465 = vrot.lane.b32.xlu2 %v1416_v41, %s3809_s29  ;;  %1898 = vrot.lane.b32.xlu1 %v1849_v17, %s3808_s2  ;;  %v1887_v46 = vpop.permute.xlu1 %1886 }
 0x6b4   :  { %1927 = vst.msk [vmem:[#allocation2 + $0x40] sm:$0xff] %vm1918_vm4, %v1887_v46  ;;  %2122 = vmatmul.bf16.gmra.mxu2 %v2070_v61 }
 0x6ba   :  { %v1851_v4 = vpop.f32.mrf.mxu1 }
 0x6bb   :  { %1900 = vrot.lane.b32.xlu0 %v1851_v4, %s3808_s2  ;;  %v1889_v8 = vpop.permute.xlu0 %1888  ;;  %v1943_v19 = vld [vmem:[#allocation2 + $0x40] sm:$0xff] }
 0x6bc   :  { %1928 = vst.msk [vmem:[#allocation2 + $0x48] sm:$0xff] %vm1918_vm4, %v1889_v8  ;;  %v1963_v15 = vadd.f32 %v5294_v39, %v1943_v19  ;;  %v1458_v53 = vpop.permute.xlu2 %1457 }
 0x6be   :  { %v1995_v57 = vmin.f32 %v1963_v15, 0.0  ;;  %vm1979_vm14 = vcmp.gt.f32.partialorder %v1963_v15, 0.0 }
 0x6c0   :  { %v2019_v59 = vmul.f32 1.442695, %v1995_v57 }
 0x6c2   :  { %3602 = vpow2.f32 %v2019_v59 }
 0x6c3   :  { %v1944_v24 = vld [vmem:[#allocation2 + $0x48] sm:$0xff] }
 0x6c4   :  { %v1964_v47 = vadd.f32 %v5294_v39, %v1944_v24  ;;  %v1025_v5 = vpop.permute.xlu2 %1024 }
 0x6c6   :  { %v1996_v50 = vmin.f32 %v1964_v47, 0.0  ;;  %vm1980_vm15 = vcmp.gt.f32.partialorder %v1964_v47, 0.0 }
 0x6c8   :  { %v2021_v14 = vmul.f32 1.442695, %v1996_v50  ;;  %v3603_v3 = vpop.eup %3602 }
 0x6c9   :  { %v1023_v9 = vpop.permute.xlu1 %1022  ;;  %v3166_v32 = vadd.f32 -1.0, %v3603_v3 }
 0x6ca   :  { %1060 = vst.msk [vmem:[#allocation2 + $0x58] sm:$0xff] %vm1048_vm2, %v1023_v9  ;;  %3604 = vpow2.f32 %v2021_v14 }
 0x6cb   :  { %1495 = vst.msk [vmem:[#allocation2 + $0x58] sm:$0xff] %vm1483_vm3, %v1458_v53  ;;  %v1456_v13 = vpop.permute.xlu0 %1455  ;;  %v2059_v23 = vsel %vm1979_vm14, %v1963_v15, %v3166_v32 }
 0x6cc   :  { %1494 = vst.msk [vmem:[#allocation2 + $0x50] sm:$0xff] %vm1483_vm3, %v1456_v13 }
 0x6ce   :  { %v595_v0 = vpop.f32.mrf.mxu2 }
 0x6cf   :  { %618 = vst.msk [vmem:[#allocation2 + $0x60] sm:$0xff] %vm605_vm1, %v595_v0 }
 0x6d0   :  { %v3605_v43 = vpop.eup %3604  ;;  %1061 = vst.msk [vmem:[#allocation2 + $0x60] sm:$0xff] %vm1048_vm2, %v1025_v5 }
 0x6d1   :  { %v1891_v36 = vpop.permute.xlu1 %1890  ;;  %v3167_v52 = vadd.f32 -1.0, %v3605_v43 }
 0x6d2   :  { %1929 = vst.msk [vmem:[#allocation2 + $0x50] sm:$0xff] %vm1918_vm4, %v1891_v36 }
 0x6d3   :  { %v1893_v34 = vpop.permute.xlu0 %1892  ;;  %v2060_v35 = vsel %vm1980_vm15, %v1964_v47, %v3167_v52 }
 0x6d4   :  { %1930 = vst.msk [vmem:[#allocation2 + $0x58] sm:$0xff] %vm1918_vm4, %v1893_v34  ;;  %v2071_v60 = vpack.c.bf16 %v2060_v35, %v2059_v23  ;;  %v1462_v58 = vpop.permute.xlu2 %1461 }
 0x6d6   :  { %v597_v29 = vpop.f32.mrf.mxu2  ;;  %2127 = vmatmul.bf16.gmra.mxu2 %v2071_v60 }
 0x6d7   :  { %619 = vst.msk [vmem:[#allocation2 + $0x68] sm:$0xff] %vm605_vm1, %v597_v29 }
 0x6d9   :  { %v1945_v21 = vld [vmem:[#allocation2 + $0x50] sm:$0xff] }
 0x6da   :  { %v1965_v54 = vadd.f32 %v5294_v39, %v1945_v21 }
 0x6db   :  { %v1946_v51 = vld [vmem:[#allocation2 + $0x58] sm:$0xff] }
 0x6dc   :  { %v1966_v25 = vadd.f32 %v5294_v39, %v1946_v51  ;;  %v1997_v27 = vmin.f32 %v1965_v54, 0.0  ;;  %vm1981_vm0 = vcmp.gt.f32.partialorder %v1965_v54, 0.0  ;;  %v1029_v1 = vpop.permute.xlu2 %1028 }
 0x6de   :  { %v1998_v38 = vmin.f32 %v1966_v25, 0.0  ;;  %v2023_v16 = vmul.f32 1.442695, %v1997_v27  ;;  %vm1982_vm5 = vcmp.gt.f32.partialorder %v1966_v25, 0.0 }
 0x6e0   :  { %3606 = vpow2.f32 %v2023_v16  ;;  %v2025_v55 = vmul.f32 1.442695, %v1998_v38 }
 0x6e1   :  { %v1027_v45 = vpop.permute.xlu1 %1026 }
 0x6e2   :  { %1062 = vst.msk [vmem:[#allocation2 + $0x68] sm:$0xff] %vm1048_vm2, %v1027_v45  ;;  %3608 = vpow2.f32 %v2025_v55 }
 0x6e3   :  { %1497 = vst.msk [vmem:[#allocation2 + $0x68] sm:$0xff] %vm1483_vm3, %v1462_v58 }
 0x6e4   :  { %v1460_v56 = vpop.permute.xlu0 %1459 }
 0x6e5   :  { %1496 = vst.msk [vmem:[#allocation2 + $0x60] sm:$0xff] %vm1483_vm3, %v1460_v56 }
 0x6e6   :  { %v3607_v42 = vpop.eup %3606 }
 0x6e7   :  { %v3168_v33 = vadd.f32 -1.0, %v3607_v42 }
 0x6e8   :  { %v3609_v6 = vpop.eup %3608 }
 0x6e9   :  { %v3169_v31 = vadd.f32 -1.0, %v3609_v6  ;;  %v2061_v7 = vsel %vm1981_vm0, %v1965_v54, %v3168_v33 }
 0x6eb   :  { %v2062_v22 = vsel %vm1982_vm5, %v1966_v25, %v3169_v31 }
 0x6ec   :  { %v1895_v10 = vpop.permute.xlu1 %1894  ;;  %v2072_v28 = vpack.c.bf16 %v2062_v22, %v2061_v7 }
 0x6ed   :  { %1931 = vst.msk [vmem:[#allocation2 + $0x60] sm:$0xff] %vm1918_vm4, %v1895_v10 }
 0x6ee   :  { %2132 = vmatmul.bf16.gmra.mxu2 %v2072_v28 }
 0x6ef   :  { %v600_v18 = vpop.f32.mrf.mxu2 }
 0x6f0   :  { %620 = vst.msk [vmem:[#allocation2 + $0x70] sm:$0xff] %vm605_vm1, %v600_v18 }
 0x6f1   :  { %1063 = vst.msk [vmem:[#allocation2 + $0x70] sm:$0xff] %vm1048_vm2, %v1029_v1  ;;  %v3811_v1 = vmov 1  }
 0x6f2   :  { %3324 = vset.pattern.permute.xlu2 %v3811_v1  ;;  %3325 = vset.pattern.permute.xlu1 %v3811_v1 }
 0x6f3   :  { %3326 = vset.pattern.permute.xlu0 %v3811_v1 }
 0x6f4   :  { %v1897_v44 = vpop.permute.xlu0 %1896  ;;  %v1947_v63 = vld [vmem:[#allocation2 + $0x60] sm:$0xff] }
 0x6f5   :  { %1932 = vst.msk [vmem:[#allocation2 + $0x68] sm:$0xff] %vm1918_vm4, %v1897_v44  ;;  %v1967_v30 = vadd.f32 %v5294_v39, %v1947_v63 }
 0x6f7   :  { %v602_v41 = vpop.f32.mrf.mxu2  ;;  %v1999_v17 = vmin.f32 %v1967_v30, 0.0  ;;  %vm1983_vm6 = vcmp.gt.f32.partialorder %v1967_v30, 0.0 }
 0x6f8   :  { %621 = vst.msk [vmem:[#allocation2 + $0x78] sm:$0xff] %vm605_vm1, %v602_v41  ;;  %v1031_v61 = vpop.permute.xlu1 %1030  ;;  %vm2158_vm1 = vcmask 64512  }
 0x6f9   :  { %1064 = vst.msk [vmem:[#allocation2 + $0x78] sm:$0xff] %vm1048_vm2, %v1031_v61  ;;  %v2027_v46 = vmul.f32 1.442695, %v1999_v17 }
 0x6fb   :  { %3610 = vpow2.f32 %v2027_v46 }
 0x6fc   :  { %v1948_v4 = vld [vmem:[#allocation2 + $0x68] sm:$0xff] }
 0x6fd   :  { %v1968_v8 = vadd.f32 %v5294_v39, %v1948_v4 }
 0x6ff   :  { %v2000_v19 = vmin.f32 %v1968_v8, 0.0  ;;  %vm1984_vm8 = vcmp.gt.f32.partialorder %v1968_v8, 0.0 }
 0x701   :  { %v2029_v15 = vmul.f32 1.442695, %v2000_v19  ;;  %v3611_v57 = vpop.eup %3610 }
 0x702   :  { %v3170_v24 = vadd.f32 -1.0, %v3611_v57 }
 0x703   :  { %3612 = vpow2.f32 %v2029_v15 }
 0x704   :  { %v2063_v50 = vsel %vm1983_vm6, %v1967_v30, %v3170_v24 }
 0x707   :  { %v2108_v59 = vpop.f32.mrf.mxu2 }
 0x709   :  { %v3613_v47 = vpop.eup %3612 }
 0x70a   :  { %v3171_v53 = vadd.f32 -1.0, %v3613_v47 }
 0x70c   :  { %v2064_v14 = vsel %vm1984_vm8, %v1968_v8, %v3171_v53 }
 0x70d   :  { %v1466_v9 = vpop.permute.xlu2 %1465  ;;  %v2073_v13 = vpack.c.bf16 %v2064_v14, %v2063_v50 }
 0x70e   :  { %1499 = vst.msk [vmem:[#allocation2 + $0x78] sm:$0xff] %vm1483_vm3, %v1466_v9 }
 0x70f   :  { %2137 = vmatmul.bf16.gmra.mxu2 %v2073_v13  ;;  %v2110_v3 = vpop.f32.mrf.mxu2 }
 0x710   :  { %v5376_v0 = vpack.c.bf16 %v2110_v3, %v2108_v59 }
 0x712   :  { %3174 = vmatmul.msk.bf16.vlgmr.msra.gmra.mxu3 %vm2158_vm1, %v5376_v0 }
 0x717   :  { %v2113_v5 = vpop.f32.mrf.mxu2 }
 0x71d   :  { %v1464_v32 = vpop.permute.xlu0 %1463 }
 0x71e   :  { %1498 = vst.msk [vmem:[#allocation2 + $0x70] sm:$0xff] %vm1483_vm3, %v1464_v32 }
 0x71f   :  { %v2115_v43 = vpop.f32.mrf.mxu2 }
 0x720   :  { %v5381_v36 = vpack.c.bf16 %v2115_v43, %v2113_v5 }
 0x722   :  { %3175 = vmatmul.msk.bf16.gmra.mxu3 %vm2158_vm1, %v5381_v36 }
 0x725   :  { %v1899_v52 = vpop.permute.xlu1 %1898 }
 0x726   :  { %1933 = vst.msk [vmem:[#allocation2 + $0x70] sm:$0xff] %vm1918_vm4, %v1899_v52 }
 0x727   :  { %v2118_v34 = vpop.f32.mrf.mxu2 }
 0x72d   :  { %v1901_v23 = vpop.permute.xlu0 %1900  ;;  %v1949_v35 = vld [vmem:[#allocation2 + $0x70] sm:$0xff] }
 0x72e   :  { %1934 = vst.msk [vmem:[#allocation2 + $0x78] sm:$0xff] %vm1918_vm4, %v1901_v23  ;;  %v1969_v60 = vadd.f32 %v5294_v39, %v1949_v35 }
 0x72f   :  { %v2120_v29 = vpop.f32.mrf.mxu2 }
 0x730   :  { %v5388_v21 = vpack.c.bf16 %v2120_v29, %v2118_v34  ;;  %v2001_v54 = vmin.f32 %v1969_v60, 0.0  ;;  %vm1985_vm2 = vcmp.gt.f32.partialorder %v1969_v60, 0.0 }
 0x732   :  { %3176 = vmatmul.msk.bf16.gmra.mxu3 %vm2158_vm1, %v5388_v21  ;;  %v2031_v51 = vmul.f32 1.442695, %v2001_v54 }
 0x734   :  { %3614 = vpow2.f32 %v2031_v51 }
 0x735   :  { %v1950_v25 = vld [vmem:[#allocation2 + $0x78] sm:$0xff] }
 0x736   :  { %v1970_v27 = vadd.f32 %v5294_v39, %v1950_v25 }
 0x737   :  { %v2123_v38 = vpop.f32.mrf.mxu2 }
 0x738   :  { %v2002_v16 = vmin.f32 %v1970_v27, 0.0  ;;  %vm1986_vm3 = vcmp.gt.f32.partialorder %v1970_v27, 0.0 }
 0x73a   :  { %v2033_v55 = vmul.f32 1.442695, %v2002_v16  ;;  %v3615_v45 = vpop.eup %3614 }
 0x73b   :  { %v3172_v42 = vadd.f32 -1.0, %v3615_v45 }
 0x73c   :  { %3616 = vpow2.f32 %v2033_v55 }
 0x73d   :  { %v2065_v31 = vsel %vm1985_vm2, %v1969_v60, %v3172_v42 }
 0x73f   :  { %v2125_v58 = vpop.f32.mrf.mxu2 }
 0x740   :  { %v2151_v56 = vpack.c.bf16 %v2125_v58, %v2123_v38 }
 0x742   :  { %v3617_v33 = vpop.eup %3616  ;;  %3177 = vmatmul.msk.bf16.gmra.mxu3 %vm2158_vm1, %v2151_v56 }
 0x743   :  { %v3173_v6 = vadd.f32 -1.0, %v3617_v33 }
 0x745   :  { %v2066_v7 = vsel %vm1986_vm3, %v1970_v27, %v3173_v6 }
 0x746   :  { %v2074_v22 = vpack.c.bf16 %v2066_v7, %v2065_v31 }
 0x748   :  { %2142 = vmatmul.bf16.gmra.mxu2 %v2074_v22 }
 0x759   :  { %v2128_v39 = vpop.f32.mrf.mxu2 }
 0x761   :  { %v2130_v10 = vpop.f32.mrf.mxu2 }
 0x762   :  { %v2152_v28 = vpack.c.bf16 %v2130_v10, %v2128_v39 }
 0x764   :  { %3178 = vmatmul.msk.bf16.gmra.mxu3 %vm2158_vm1, %v2152_v28 }
 0x771   :  { %v2133_v18 = vpop.f32.mrf.mxu2 }
 0x779   :  { %v2135_v44 = vpop.f32.mrf.mxu2 }
 0x77a   :  { %v2153_v63 = vpack.c.bf16 %v2135_v44, %v2133_v18 }
 0x77c   :  { %3179 = vmatmul.msk.bf16.gmra.mxu3 %vm2158_vm1, %v2153_v63 }
 0x792   :  { %v2138_v30 = vpop.f32.mrf.mxu2 }
 0x795   :  { %v2196_v41 = vpop.f32.mrf.mxu3 }
 0x796   :  { %2270 = vperm.xlu2 %3324, %v2196_v41  }
 0x79a   :  { %v2140_v17 = vpop.f32.mrf.mxu2 }
 0x79b   :  { %v2154_v61 = vpack.c.bf16 %v2140_v17, %v2138_v30 }
 0x79d   :  { %3180 = vmatmul.msk.bf16.gmra.mxu3 %vm2158_vm1, %v2154_v61  ;;  %v2198_v46 = vpop.f32.mrf.mxu3 }
 0x79e   :  { %2275 = vperm.xlu1 %3325, %v2198_v46  }
 0x7a5   :  { %v5397_v4 = vpop.f32.mrf.mxu3 }
 0x7ad   :  { %v2203_v8 = vpop.f32.mrf.mxu3 }
 0x7ae   :  { %2285 = vperm.xlu2 %3324, %v2203_v8  }
 0x7b5   :  { %v2206_v19 = vpop.f32.mrf.mxu3 }
 0x7b6   :  { %2290 = vperm.xlu2 %3324, %v2206_v19  }
 0x7bd   :  { %v2208_v24 = vpop.f32.mrf.mxu3 }
 0x7c5   :  { %v2211_v47 = vpop.f32.mrf.mxu3 }
 0x7cb   :  { %v2143_v15 = vpop.f32.mrf.mxu2 }
 0x7cd   :  { %v2213_v53 = vpop.f32.mrf.mxu3 }
 0x7d3   :  { %v2145_v57 = vpop.f32.mrf.mxu2  ;;  %2236 = vxpose.xlu1.b32.start [1/16] (narrow) %v2196_v41, 8 }
 0x7d4   :  { %v2155_v59 = vpack.c.bf16 %v2145_v57, %v2143_v15 }
 0x7d6   :  { %3181 = vmatmul.msk.bf16.gmra.mxu3 %vm2158_vm1, %v2155_v59  ;;  %2569 = vmatpush.bf16.msra.mxu0 %v2155_v59 }
 0x7d7   :  { %3263 = vmatpush.bf16.msrb.mxu2 %v2155_v59 }
 0x7da   :  { %2570 = vmatpush.bf16.msra.mxu0 %v2154_v61 }
 0x7db   :  { %3264 = vmatpush.bf16.msrb.mxu2 %v2154_v61  ;;  %2237 = vxpose.xlu1.b32.cont [2/16] (narrow) %v2198_v46, 8 }
 0x7de   :  { %2571 = vmatpush.bf16.msra.mxu0 %v2153_v63 }
 0x7df   :  { %3265 = vmatpush.bf16.msrb.mxu2 %v2153_v63  ;;  %v5804_v63 = vld [vmem:[#allocation15_spill] sm:$0xff] }
 0x7e2   :  { %2572 = vmatpush.bf16.msra.mxu0 %v2152_v28 }
 0x7e3   :  { %3266 = vmatpush.bf16.msrb.mxu2 %v2152_v28  ;;  %2238 = vxpose.xlu1.b32.cont [3/16] (narrow) %v5397_v4, 8 }
 0x7e6   :  { %2573 = vmatpush.bf16.msra.mxu0 %v2151_v56 }
 0x7e7   :  { %3267 = vmatpush.bf16.msrb.mxu2 %v2151_v56  ;;  %v2216_v50 = vpop.f32.mrf.mxu3 }
 0x7ea   :  { %2574 = vmatpush.bf16.msra.mxu0 %v5388_v21 }
 0x7eb   :  { %3268 = vmatpush.bf16.msrb.mxu2 %v5388_v21  ;;  %2239 = vxpose.xlu1.b32.cont [4/16] (narrow) %v2203_v8, 8 }
 0x7ee   :  { %2575 = vmatpush.bf16.msra.mxu0 %v5381_v36 }
 0x7ef   :  { %3269 = vmatpush.bf16.msrb.mxu2 %v5381_v36  ;;  %v5407_v14 = vpop.f32.mrf.mxu3 }
 0x7f0   :  { %v2271_v34 = vpop.permute.xlu2 %2270 }
 0x7f2   :  { %2576 = vmatpush.bf16.msra.mxu0 %v5376_v0 }
 0x7f3   :  { %3270 = vmatpush.bf16.msrb.mxu2 %v5376_v0  ;;  %2240 = vxpose.xlu1.b32.cont [5/16] (narrow) %v2206_v19, 8 }
 0x7fb   :  { %2241 = vxpose.xlu1.b32.cont [6/16] (narrow) %v2208_v24, 8 }
 0x7ff   :  { %v2221_v9 = vpop.f32.mrf.mxu3 }
 0x803   :  { %2242 = vxpose.xlu1.b32.cont [7/16] (narrow) %v2211_v47, 8 }
 0x807   :  { %v2223_v13 = vpop.f32.mrf.mxu3 }
 0x808   :  { %v2286_v51 = vpop.permute.xlu2 %2285 }
 0x80b   :  { %2243 = vxpose.xlu1.b32.cont [8/16] (narrow) %v2213_v53, 8 }
 0x810   :  { %v2276_v43 = vpop.permute.xlu1 %2275  ;;  %v2291_v56 = vpop.permute.xlu2 %2290 }
 0x813   :  { %2244 = vxpose.xlu1.b32.cont [9/16] (narrow) %v2216_v50, 8 }
 0x81b   :  { %2245 = vxpose.xlu1.b32.cont [10/16] (narrow) %v5407_v14, 8 }
 0x820   :  { %v5410_v3 = vpop.f32.mrf.mxu3 }
 0x823   :  { %2246 = vxpose.xlu1.b32.cont [11/16] (narrow) %v2221_v9, 8 }
 0x828   :  { %v2228_v0 = vpop.f32.mrf.mxu3 }
 0x82b   :  { %2247 = vxpose.xlu1.b32.cont [12/16] (narrow) %v2223_v13, 8 }
 0x833   :  { %2248 = vxpose.xlu1.b32.cont [13/16] (narrow) %v5410_v3, 8 }
 0x83b   :  { %2249 = vxpose.xlu1.b32.cont [14/16] (narrow) %v2228_v0, 8 }
 0x859   :  { %v2231_v5 = vpop.f32.mrf.mxu3 }
 0x85a   :  { %2250 = vxpose.xlu1.b32.cont [15/16] (narrow) %v2231_v5, 8 }
 0x861   :  { %v2233_v32 = vpop.f32.mrf.mxu3 }
 0x862   :  { %2251 = vxpose.xlu1.b32.end [16/16] (narrow) %v2233_v32, 8 }
 0x88e   :  { %v2252_v36 = vpop.trf.xlu1 }
 0x88f   :  { %v5413_v52 = vperm.slane %v2252_v36, 0 }
 0x891   :  { %v2350_v23 = vadd.f32 %v5413_v52, %v2276_v43  ;;  %v2349_v35 = vadd.f32 %v5413_v52, %v2271_v34  ;;  %v2352_v25 = vadd.f32 %v5413_v52, %v2286_v51  ;;  %v2353_v33 = vadd.f32 %v5413_v52, %v2291_v56 }
 0x893   :  { %v2366_v60 = vmul.f32 0.2, %v2350_v23  ;;  %v2365_v29 = vmul.f32 0.2, %v2349_v35  ;;  %v2368_v27 = vmul.f32 0.2, %v2352_v25 }
 0x894   :  { %v2369_v7 = vmul.f32 0.2, %v2353_v33 }
 0x895   :  { %v5417_v21 = vmax.f32 %v2350_v23, %v2366_v60  ;;  %v2381_v54 = vmax.f32 %v2349_v35, %v2365_v29  ;;  %v5422_v38 = vmax.f32 %v2352_v25, %v2368_v27  ;;  %v5805_v35 = vld [vmem:[#allocation23_spill] sm:$0xff] }
 0x896   :  { %v5430_v10 = vmax.f32 %v2353_v33, %v2369_v7 }
 0x897   :  { %2399 = vmax.xlane.f32.xlu0 %v5417_v21  ;;  %2397 = vmax.xlane.f32.xlu2 %v2381_v54 }
 0x8ab   :  { %2280 = vperm.xlu0 %3326, %v5397_v4  }
 0x8b3   :  { %2295 = vperm.xlu0 %3326, %v2208_v24  }
 0x8bb   :  { %2305 = vperm.xlu0 %3326, %v2213_v53  }
 0x8bc   :  { %2320 = vperm.xlu1 %3325, %v2221_v9  }
 0x8c4   :  { %2345 = vperm.xlu1 %3325, %v2233_v32  }
 0x8e5   :  { %2403 = vmax.xlane.f32.xlu0 %v5422_v38 }
 0x90a   :  { %v2400_v16 = vpop.xlane.xlu0 %2399  ;;  %v2398_v28 = vpop.xlane.xlu2 %2397 }
 0x90b   :  { %v2429_v18 = vsub.f32 %v2381_v54, %v2398_v28 }
 0x90d   :  { %v2445_v1 = vmul.f32 1.442695, %v2429_v18 }
 0x90f   :  { %3618 = vpow2.f32 %v2445_v1 }
 0x915   :  { %v3619_v44 = vpop.eup %3618 }
 0x916   :  { %v5435_v30 = vmul.f32 %v3619_v44, %v5804_v63 }
 0x91d   :  { %v2281_v55 = vpop.permute.xlu0 %2280 }
 0x91e   :  { %v2351_v45 = vadd.f32 %v5413_v52, %v2281_v55 }
 0x920   :  { %v2367_v58 = vmul.f32 0.2, %v2351_v45 }
 0x922   :  { %v2383_v42 = vmax.f32 %v2351_v45, %v2367_v58  ;;  %v5806_v58 = vld [vmem:[#allocation40_spill] sm:$0xff] }
 0x924   :  { %2401 = vmax.xlane.f32.xlu2 %v2383_v42 }
 0x925   :  { %v2296_v6 = vpop.permute.xlu0 %2295 }
 0x926   :  { %v2354_v31 = vadd.f32 %v5413_v52, %v2296_v6  ;;  %v5807_v6 = vld [vmem:[#allocation34_spill] sm:$0xff] }
 0x928   :  { %v2370_v22 = vmul.f32 0.2, %v2354_v31 }
 0x92a   :  { %v5428_v39 = vmax.f32 %v2354_v31, %v2370_v22 }
 0x92c   :  { %2407 = vmax.xlane.f32.xlu0 %v5428_v39  ;;  %2405 = vmax.xlane.f32.xlu2 %v5430_v10 }
 0x92d   :  { %v2306_v4 = vpop.permute.xlu0 %2305 }
 0x92e   :  { %v2356_v19 = vadd.f32 %v5413_v52, %v2306_v4  ;;  %v2321_v24 = vpop.permute.xlu1 %2320 }
 0x930   :  { %v2372_v57 = vmul.f32 0.2, %v2356_v19 }
 0x932   :  { %v5443_v59 = vmax.f32 %v2356_v19, %v2372_v57 }
 0x944   :  { %2300 = vperm.xlu2 %3324, %v2211_v47   ;;  %v2359_v47 = vadd.f32 %v5413_v52, %v2321_v24 }
 0x946   :  { %v2375_v53 = vmul.f32 0.2, %v2359_v47 }
 0x94c   :  { %2310 = vperm.xlu2 %3324, %v2216_v50   ;;  %v5447_v50 = vmax.f32 %v2359_v47, %v2375_v53 }
 0x954   :  { %2325 = vperm.xlu2 %3324, %v2223_v13  }
 0x97d   :  { %2493 = vadd.xlane.f32.xlu2 %v5435_v30 }
 0x995   :  { %2335 = vperm.xlu2 %3324, %v2228_v0   ;;  %v2430_v0 = vsub.f32 %v5417_v21, %v2400_v16 }
 0x997   :  { %v2402_v41 = vpop.xlane.xlu2 %2401 }
 0x998   :  { %v2431_v34 = vsub.f32 %v2383_v42, %v2402_v41 }
 0x99d   :  { %2340 = vperm.xlu2 %3324, %v2231_v5   ;;  %v2447_v5 = vmul.f32 1.442695, %v2430_v0 }
 0x99f   :  { %v2406_v17 = vpop.xlane.xlu2 %2405  ;;  %3620 = vpow2.f32 %v2447_v5 }
 0x9a0   :  { %v2433_v42 = vsub.f32 %v5430_v10, %v2406_v17  ;;  %v5808_v10 = vld [vmem:[#allocation14_spill] sm:$0xff] }
 0x9a2   :  { %v2453_v7 = vmul.f32 1.442695, %v2433_v42 }
 0x9a5   :  { %v3621_v43 = vpop.eup %3620 }
 0x9a6   :  { %v5457_v60 = vmul.f32 %v3621_v43, %v5805_v35  ;;  %v2346_v35 = vpop.permute.xlu1 %2345 }
 0x9a7   :  { %v2301_v61 = vpop.permute.xlu2 %2300 }
 0x9a8   :  { %v2355_v46 = vadd.f32 %v5413_v52, %v2301_v61 }
 0x9aa   :  { %v2371_v8 = vmul.f32 0.2, %v2355_v46 }
 0x9ac   :  { %v5440_v15 = vmax.f32 %v2355_v46, %v2371_v8 }
 0x9ae   :  { %2409 = vmax.xlane.f32.xlu0 %v5440_v15 }
 0x9af   :  { %v2311_v9 = vpop.permute.xlu2 %2310 }
 0x9b0   :  { %v2357_v23 = vadd.f32 %v5413_v52, %v2311_v9 }
 0x9b2   :  { %v2373_v29 = vmul.f32 0.2, %v2357_v23 }
 0x9b4   :  { %v5462_v25 = vmax.f32 %v2357_v23, %v2373_v29 }
 0x9b6   :  { %2411 = vmax.xlane.f32.xlu0 %v5443_v59 }
 0x9b7   :  { %v2326_v13 = vpop.permute.xlu2 %2325 }
 0x9b8   :  { %v2360_v33 = vadd.f32 %v5413_v52, %v2326_v13 }
 0x9ba   :  { %v2376_v28 = vmul.f32 0.2, %v2360_v33 }
 0x9bc   :  { %v5479_v1 = vmax.f32 %v2360_v33, %v2376_v28 }
 0x9c6   :  { %2417 = vmax.xlane.f32.xlu2 %v5447_v50 }
 0x9ca   :  { %2315 = vperm.xlu0 %3326, %v5407_v14   ;;  %v2449_v14 = vmul.f32 1.442695, %v2431_v34 }
 0x9cc   :  { %3622 = vpow2.f32 %v2449_v14 }
 0x9d2   :  { %2330 = vperm.xlu0 %3326, %v5410_v3   ;;  %v2404_v3 = vpop.xlane.xlu0 %2403  ;;  %v3623_v45 = vpop.eup %3622 }
 0x9d3   :  { %v2432_v21 = vsub.f32 %v5422_v38, %v2404_v3  ;;  %v5469_v56 = vmul.f32 %v3623_v45, %v5806_v58  ;;  %v2364_v3 = vadd.f32 %v5413_v52, %v2346_v35 }
 0x9d5   :  { %v2451_v16 = vmul.f32 1.442695, %v2432_v21 }
 0x9d7   :  { %3624 = vpow2.f32 %v2451_v16 }
 0x9d8   :  { %3626 = vpow2.f32 %v2453_v7 }
 0x9da   :  { %v2408_v22 = vpop.xlane.xlu0 %2407 }
 0x9db   :  { %v2434_v18 = vsub.f32 %v5428_v39, %v2408_v22 }
 0x9dd   :  { %v3625_v38 = vpop.eup %3624  ;;  %v2455_v44 = vmul.f32 1.442695, %v2434_v18 }
 0x9de   :  { %v5475_v31 = vmul.f32 %v3625_v38, %v5807_v6  ;;  %v3627_v63 = vpop.eup %3626 }
 0x9df   :  { %3628 = vpow2.f32 %v2455_v44  ;;  %v5483_v41 = vmul.f32 %v3627_v63, %v5808_v10 }
 0x9e5   :  { %v3629_v17 = vpop.eup %3628 }
 0x9e6   :  { %v5487_v46 = vmul.f32 %v3629_v17, %v5792_v62 }
 0x9f0   :  { %v5453_v32 = vpop.xlane.xlu2 %2493 }
 0x9f8   :  { %v2336_v36 = vpop.permute.xlu2 %2335 }
 0x9f9   :  { %v2362_v47 = vadd.f32 %v5413_v52, %v2336_v36 }
 0x9fb   :  { %v2378_v0 = vmul.f32 0.2, %v2362_v47 }
 0x9fc   :  { %2495 = vadd.xlane.f32.xlu0 %v5457_v60 }
 0x9fd   :  { %v5498_v34 = vmax.f32 %v2362_v47, %v2378_v0 }
 0xa00   :  { %v2341_v54 = vpop.permute.xlu2 %2340 }
 0xa01   :  { %v2363_v51 = vadd.f32 %v5413_v52, %v2341_v54 }
 0xa03   :  { %v2379_v27 = vmul.f32 0.2, %v2363_v51 }
 0xa04   :  { %2413 = vmax.xlane.f32.xlu0 %v5462_v25 }
 0xa05   :  { %v5465_v55 = vmax.f32 %v2363_v51, %v2379_v27  ;;  %v2380_v51 = vmul.f32 0.2, %v2364_v3 }
 0xa07   :  { %2425 = vmax.xlane.f32.xlu2 %v5465_v55  ;;  %v5514_v27 = vmax.f32 %v2364_v3, %v2380_v51 }
 0xa0c   :  { %2497 = vadd.xlane.f32.xlu0 %v5469_v56 }
 0xa14   :  { %2499 = vadd.xlane.f32.xlu0 %v5475_v31 }
 0xa1c   :  { %2419 = vmax.xlane.f32.xlu0 %v5479_v1 }
 0xa21   :  { %v2410_v61 = vpop.xlane.xlu0 %2409 }
 0xa22   :  { %v2435_v19 = vsub.f32 %v5440_v15, %v2410_v61 }
 0xa24   :  { %2501 = vadd.xlane.f32.xlu0 %v5483_v41  ;;  %v2457_v9 = vmul.f32 1.442695, %v2435_v19 }
 0xa26   :  { %3630 = vpow2.f32 %v2457_v9 }
 0xa29   :  { %v2412_v39 = vpop.xlane.xlu0 %2411 }
 0xa2a   :  { %v2436_v24 = vsub.f32 %v5443_v59, %v2412_v39 }
 0xa2c   :  { %2503 = vadd.xlane.f32.xlu0 %v5487_v46  ;;  %v2459_v62 = vmul.f32 1.442695, %v2436_v24  ;;  %v3631_v59 = vpop.eup %3630 }
 0xa2d   :  { %v5507_v29 = vmul.f32 %v3631_v59, %v4606_v37 }
 0xa2e   :  { %3632 = vpow2.f32 %v2459_v62 }
 0xa34   :  { %v3633_v23 = vpop.eup %3632 }
 0xa35   :  { %v5510_v54 = vmul.f32 %v3633_v23, %v4617_v2  ;;  %v5809_v23 = vld [vmem:[#allocation37_spill] sm:$0xff] }
 0xa39   :  { %v2418_v36 = vpop.xlane.xlu2 %2417 }
 0xa3a   :  { %v2439_v14 = vsub.f32 %v5447_v50, %v2418_v36 }
 0xa3c   :  { %v2316_v4 = vpop.permute.xlu0 %2315  ;;  %v2465_v21 = vmul.f32 1.442695, %v2439_v14 }
 0xa3d   :  { %v2358_v8 = vadd.f32 %v5413_v52, %v2316_v4 }
 0xa3e   :  { %3634 = vpow2.f32 %v2465_v21 }
 0xa3f   :  { %v2374_v57 = vmul.f32 0.2, %v2358_v8  ;;  %3636 = vrcp.f32 %v5453_v32 }
 0xa41   :  { %v5494_v53 = vmax.f32 %v2358_v8, %v2374_v57 }
 0xa43   :  { %2415 = vmax.xlane.f32.xlu1 %v5494_v53 }
 0xa44   :  { %v2331_v13 = vpop.permute.xlu0 %2330  ;;  %v3635_v50 = vpop.eup %3634 }
 0xa45   :  { %v2361_v5 = vadd.f32 %v5413_v52, %v2331_v13  ;;  %v5518_v52 = vmul.f32 %v3635_v50, %v4858_v11  ;;  %v3637_v2 = vpop.eup %3636 }
 0xa46   :  { %v2541_v45 = vmul.f32 %v3637_v2, %v5435_v30 }
 0xa47   :  { %v2377_v43 = vmul.f32 0.2, %v2361_v5 }
 0xa49   :  { %v5500_v15 = vmax.f32 %v2361_v5, %v2377_v43 }
 0xa4b   :  { %2421 = vmax.xlane.f32.xlu0 %v5500_v15  ;;  %2423 = vmax.xlane.f32.xlu1 %v5498_v34 }
 0xa53   :  { %2505 = vadd.xlane.f32.xlu0 %v5507_v29  ;;  %2507 = vadd.xlane.f32.xlu1 %v5510_v54 }
 0xa5b   :  { %2427 = vmax.xlane.f32.xlu0 %v5514_v27 }
 0xa63   :  { %2513 = vadd.xlane.f32.xlu0 %v5518_v52 }
 0xa6f   :  { %v2496_v37 = vpop.xlane.xlu0 %2495 }
 0xa70   :  { %3638 = vrcp.f32 %v2496_v37 }
 0xa76   :  { %v3639_v16 = vpop.eup %3638 }
 0xa77   :  { %v2542_v58 = vmul.f32 %v3639_v16, %v5457_v60  ;;  %v2414_v38 = vpop.xlane.xlu0 %2413 }
 0xa78   :  { %v2437_v42 = vsub.f32 %v5462_v25, %v2414_v38 }
 0xa79   :  { %v2557_v33 = vpack.c.bf16 %v2542_v58, %v2541_v45  ;;  %v5568_v58 = vld [vmem:[%s5641_s6] ss:$0 sm:$0xff] }
 0xa7a   :  { %v2461_v6 = vmul.f32 1.442695, %v2437_v42  ;;  %v2426_v60 = vpop.xlane.xlu2 %2425 }
 0xa7b   :  { %2577 = vmatmul.bf16.vlgmr.msra.gmra.mxu0 %v2557_v33  ;;  %v2443_v17 = vsub.f32 %v5465_v55, %v2426_v60 }
 0xa7c   :  { %3640 = vpow2.f32 %v2461_v6 }
 0xa7d   :  { %v2473_v61 = vmul.f32 1.442695, %v2443_v17 }
 0xa7f   :  { %v2498_v11 = vpop.xlane.xlu0 %2497 }
 0xa80   :  { %3642 = vrcp.f32 %v2498_v11 }
 0xa82   :  { %v3641_v7 = vpop.eup %3640 }
 0xa83   :  { %v5526_v22 = vmul.f32 %v3641_v7, %v4817_v40 }
 0xa85   :  { %2509 = vadd.xlane.f32.xlu1 %v5526_v22 }
 0xa86   :  { %v3643_v30 = vpop.eup %3642 }
 0xa87   :  { %v2500_v32 = vpop.xlane.xlu0 %2499  ;;  %v2543_v25 = vmul.f32 %v3643_v30, %v5469_v56 }
 0xa88   :  { %3644 = vrcp.f32 %v2500_v32 }
 0xa8e   :  { %v3645_v28 = vpop.eup %3644 }
 0xa8f   :  { %v2420_v18 = vpop.xlane.xlu0 %2419  ;;  %v2544_v44 = vmul.f32 %v3645_v28, %v5475_v31 }
 0xa90   :  { %v2440_v63 = vsub.f32 %v5479_v1, %v2420_v18 }
 0xa91   :  { %v2558_v10 = vpack.c.bf16 %v2544_v44, %v2543_v25 }
 0xa92   :  { %v2467_v40 = vmul.f32 1.442695, %v2440_v63 }
 0xa93   :  { %2582 = vmatmul.bf16.gmra.mxu0 %v2558_v10 }
 0xa94   :  { %3646 = vpow2.f32 %v2467_v40 }
 0xa95   :  { %3648 = vpow2.f32 %v2473_v61 }
 0xa97   :  { %v2502_v39 = vpop.xlane.xlu0 %2501 }
 0xa98   :  { %3650 = vrcp.f32 %v2502_v39 }
 0xa9a   :  { %v3647_v4 = vpop.eup %3646 }
 0xa9b   :  { %v5534_v8 = vmul.f32 %v3647_v4, %v4888_v26  ;;  %v3649_v31 = vpop.eup %3648 }
 0xa9c   :  { %v5538_v1 = vmul.f32 %v3649_v31, %v5082_v48 }
 0xa9d   :  { %2515 = vadd.xlane.f32.xlu1 %v5534_v8 }
 0xa9e   :  { %v3651_v55 = vpop.eup %3650 }
 0xa9f   :  { %v2504_v56 = vpop.xlane.xlu0 %2503  ;;  %v2545_v57 = vmul.f32 %v3651_v55, %v5483_v41 }
 0xaa0   :  { %3652 = vrcp.f32 %v2504_v56 }
 0xaa5   :  { %2521 = vadd.xlane.f32.xlu1 %v5538_v1 }
 0xaa6   :  { %v3653_v19 = vpop.eup %3652 }
 0xaa7   :  { %v2546_v24 = vmul.f32 %v3653_v19, %v5487_v46 }
 0xaa9   :  { %v2559_v47 = vpack.c.bf16 %v2546_v24, %v2545_v57 }
 0xaab   :  { %2587 = vmatmul.bf16.gmra.mxu0 %v2559_v47 }
 0xab6   :  { %v2416_v26 = vpop.xlane.xlu1 %2415 }
 0xab7   :  { %v2438_v9 = vsub.f32 %v5494_v53, %v2416_v26 }
 0xab9   :  { %v2463_v62 = vmul.f32 1.442695, %v2438_v9 }
 0xabb   :  { %3654 = vpow2.f32 %v2463_v62 }
 0xabe   :  { %v2422_v13 = vpop.xlane.xlu0 %2421  ;;  %v2424_v0 = vpop.xlane.xlu1 %2423 }
 0xabf   :  { %v2441_v48 = vsub.f32 %v5500_v15, %v2422_v13  ;;  %v2442_v5 = vsub.f32 %v5498_v34, %v2424_v0 }
 0xac1   :  { %v3655_v43 = vpop.eup %3654  ;;  %v2469_v59 = vmul.f32 1.442695, %v2441_v48  ;;  %v2471_v36 = vmul.f32 1.442695, %v2442_v5 }
 0xac2   :  { %v5547_v41 = vmul.f32 %v3655_v43, %v5809_v23 }
 0xac3   :  { %3656 = vpow2.f32 %v2469_v59 }
 0xac4   :  { %3658 = vpow2.f32 %v2471_v36  ;;  %2511 = vadd.xlane.f32.xlu2 %v5547_v41 }
 0xac6   :  { %v2506_v46 = vpop.xlane.xlu0 %2505  ;;  %v2508_v53 = vpop.xlane.xlu1 %2507 }
 0xac7   :  { %3660 = vrcp.f32 %v2506_v46 }
 0xac8   :  { %3662 = vrcp.f32 %v2508_v53 }
 0xac9   :  { %v3657_v35 = vpop.eup %3656 }
 0xaca   :  { %v3659_v14 = vpop.eup %3658  ;;  %v5551_v15 = vmul.f32 %v3657_v35, %v4974_v20 }
 0xacb   :  { %v5554_v34 = vmul.f32 %v3659_v14, %v5041_v49 }
 0xacc   :  { %2517 = vadd.xlane.f32.xlu2 %v5551_v15 }
 0xacd   :  { %v3661_v3 = vpop.eup %3660  ;;  %2519 = vadd.xlane.f32.xlu0 %v5554_v34 }
 0xace   :  { %v3663_v21 = vpop.eup %3662  ;;  %v2428_v51 = vpop.xlane.xlu0 %2427  ;;  %v2547_v50 = vmul.f32 %v3661_v3, %v5507_v29 }
 0xacf   :  { %v2444_v37 = vsub.f32 %v5514_v27, %v2428_v51  ;;  %v2548_v2 = vmul.f32 %v3663_v21, %v5510_v54  ;;  %v2722_v54 = vld [vmem:[%s5642_s7] sm:$0xff] }
 0xad0   :  { %v2723_v33 = vpack.c.bf16 %v2722_v54, %v2722_v54 }
 0xad1   :  { %v2475_v16 = vmul.f32 1.442695, %v2444_v37  ;;  %v2560_v45 = vpack.c.bf16 %v2548_v2, %v2547_v50 }
 0xad2   :  { %v2753_v11 = vsel %vm2183_vm7, %v2723_v33, 0 }
 0xad3   :  { %3664 = vpow2.f32 %v2475_v16  ;;  %2592 = vmatmul.bf16.gmra.mxu0 %v2560_v45  ;;  %2762 = vmatpush.bf16.msra.mxu1 %v2753_v11 }
 0xad9   :  { %v3665_v20 = vpop.eup %3664 }
 0xada   :  { %v5562_v49 = vmul.f32 %v3665_v20, %v5012_v12 }
 0xadc   :  { %2523 = vadd.xlane.f32.xlu2 %v5562_v49 }
 0xaf8   :  { %v2578_v29 = vpop.f32.mrf.mxu0  ;;  %v2510_v59 = vpop.xlane.xlu1 %2509 }
 0xaf9   :  { %v2579_v27 = vadd.f32 %v5568_v58, %v2578_v29 }
 0xafb   :  { %v2634_v38 = vmin.f32 %v2579_v27, 0.0  ;;  %vm2618_vm4 = vcmp.gt.f32.partialorder %v2579_v27, 0.0 }
 0xafd   :  { %v2650_v42 = vmul.f32 1.442695, %v2634_v38 }
 0xaff   :  { %3666 = vpow2.f32 %v2650_v42 }
 0xb00   :  { %v2580_v6 = vpop.f32.mrf.mxu0 }
 0xb01   :  { %v2581_v12 = vadd.f32 %v5568_v58, %v2580_v6 }
 0xb03   :  { %v2635_v7 = vmin.f32 %v2581_v12, 0.0  ;;  %vm2619_vm9 = vcmp.gt.f32.partialorder %v2581_v12, 0.0 }
 0xb05   :  { %v2652_v32 = vmul.f32 1.442695, %v2635_v7  ;;  %v3667_v30 = vpop.eup %3666 }
 0xb06   :  { %v3182_v28 = vadd.f32 -1.0, %v3667_v30 }
 0xb07   :  { %3668 = vpow2.f32 %v2652_v32 }
 0xb08   :  { %v2698_v25 = vsel %vm2618_vm4, %v2579_v27, %v3182_v28  ;;  %v2514_v27 = vpop.xlane.xlu0 %2513 }
 0xb0d   :  { %v3669_v60 = vpop.eup %3668 }
 0xb0e   :  { %v3183_v18 = vadd.f32 -1.0, %v3669_v60 }
 0xb10   :  { %v2699_v44 = vsel %vm2619_vm9, %v2581_v12, %v3183_v18  ;;  %v2583_v63 = vpop.f32.mrf.mxu0  ;;  %v2516_v45 = vpop.xlane.xlu1 %2515 }
 0xb11   :  { %v2714_v10 = vpack.c.bf16 %v2699_v44, %v2698_v25  ;;  %v2584_v17 = vadd.f32 %v5568_v58, %v2583_v63 }
 0xb13   :  { %v2636_v40 = vmin.f32 %v2584_v17, 0.0  ;;  %3198 = vmatmul.msk.bf16.vlgmr.msra.gmra.mxu1 %vm2158_vm1, %v2714_v10  ;;  %vm2620_vm7 = vcmp.gt.f32.partialorder %v2584_v17, 0.0 }
 0xb15   :  { %v2654_v61 = vmul.f32 1.442695, %v2636_v40 }
 0xb17   :  { %3670 = vpow2.f32 %v2654_v61 }
 0xb18   :  { %v2585_v39 = vpop.f32.mrf.mxu0  ;;  %v2522_v42 = vpop.xlane.xlu1 %2521 }
 0xb19   :  { %v2586_v4 = vadd.f32 %v5568_v58, %v2585_v39 }
 0xb1b   :  { %v2637_v56 = vmin.f32 %v2586_v4, 0.0  ;;  %vm2621_vm10 = vcmp.gt.f32.partialorder %v2586_v4, 0.0 }
 0xb1d   :  { %v2656_v31 = vmul.f32 1.442695, %v2637_v56  ;;  %v3671_v55 = vpop.eup %3670 }
 0xb1e   :  { %v3184_v19 = vadd.f32 -1.0, %v3671_v55 }
 0xb1f   :  { %3672 = vpow2.f32 %v2656_v31 }
 0xb20   :  { %v2700_v47 = vsel %vm2620_vm7, %v2584_v17, %v3184_v19 }
 0xb25   :  { %v3673_v57 = vpop.eup %3672 }
 0xb26   :  { %v3185_v24 = vadd.f32 -1.0, %v3673_v57 }
 0xb28   :  { %v2701_v26 = vsel %vm2621_vm10, %v2586_v4, %v3185_v24  ;;  %v2588_v9 = vpop.f32.mrf.mxu0 }
 0xb29   :  { %v2715_v62 = vpack.c.bf16 %v2701_v26, %v2700_v47  ;;  %v2589_v13 = vadd.f32 %v5568_v58, %v2588_v9 }
 0xb2b   :  { %v2638_v0 = vmin.f32 %v2589_v13, 0.0  ;;  %3199 = vmatmul.msk.bf16.gmra.mxu1 %vm2158_vm1, %v2715_v62  ;;  %vm2622_vm11 = vcmp.gt.f32.partialorder %v2589_v13, 0.0 }
 0xb2d   :  { %v2658_v48 = vmul.f32 1.442695, %v2638_v0 }
 0xb2f   :  { %3674 = vpow2.f32 %v2658_v48 }
 0xb30   :  { %v2590_v5 = vpop.f32.mrf.mxu0  ;;  %3676 = vrcp.f32 %v2510_v59 }
 0xb31   :  { %v2591_v43 = vadd.f32 %v5568_v58, %v2590_v5 }
 0xb33   :  { %v2639_v36 = vmin.f32 %v2591_v43, 0.0  ;;  %vm2623_vm12 = vcmp.gt.f32.partialorder %v2591_v43, 0.0 }
 0xb35   :  { %v2660_v23 = vmul.f32 1.442695, %v2639_v36  ;;  %v3675_v53 = vpop.eup %3674 }
 0xb36   :  { %v3677_v35 = vpop.eup %3676  ;;  %v3186_v14 = vadd.f32 -1.0, %v3675_v53 }
 0xb37   :  { %3678 = vpow2.f32 %v2660_v23  ;;  %v2512_v46 = vpop.xlane.xlu2 %2511  ;;  %v2549_v50 = vmul.f32 %v3677_v35, %v5526_v22 }
 0xb38   :  { %3680 = vrcp.f32 %v2512_v46  ;;  %v2702_v2 = vsel %vm2622_vm11, %v2589_v13, %v3186_v14 }
 0xb39   :  { %3682 = vrcp.f32 %v2516_v45 }
 0xb3a   :  { %3684 = vrcp.f32 %v2514_v27 }
 0xb3b   :  { %3686 = vrcp.f32 %v2522_v42 }
 0xb3d   :  { %v3679_v3 = vpop.eup %3678 }
 0xb3e   :  { %v3681_v21 = vpop.eup %3680  ;;  %v3187_v51 = vadd.f32 -1.0, %v3679_v3 }
 0xb3f   :  { %v2550_v37 = vmul.f32 %v3681_v21, %v5547_v41  ;;  %v2518_v38 = vpop.xlane.xlu2 %2517  ;;  %v3683_v54 = vpop.eup %3682 }
 0xb40   :  { %v2703_v16 = vsel %vm2623_vm12, %v2591_v43, %v3187_v51  ;;  %v3685_v33 = vpop.eup %3684  ;;  %v2552_v6 = vmul.f32 %v3683_v54, %v5534_v8  ;;  %v2520_v11 = vpop.xlane.xlu0 %2519 }
 0xb41   :  { %v2716_v20 = vpack.c.bf16 %v2703_v16, %v2702_v2  ;;  %v2561_v29 = vpack.c.bf16 %v2550_v37, %v2549_v50  ;;  %v2551_v41 = vmul.f32 %v3685_v33, %v5518_v52  ;;  %v3687_v28 = vpop.eup %3686 }
 0xb42   :  { %v2555_v18 = vmul.f32 %v3687_v28, %v5538_v1 }
 0xb43   :  { %2597 = vmatmul.bf16.gmra.mxu0 %v2561_v29  ;;  %3200 = vmatmul.msk.bf16.gmra.mxu1 %vm2158_vm1, %v2716_v20  ;;  %v2562_v32 = vpack.c.bf16 %v2552_v6, %v2551_v41 }
 0xb4f   :  { %v2524_v22 = vpop.xlane.xlu2 %2523 }
 0xb50   :  { %3688 = vrcp.f32 %v2524_v22  ;;  %v2593_v12 = vpop.f32.mrf.mxu0 }
 0xb51   :  { %v2594_v7 = vadd.f32 %v5568_v58, %v2593_v12  ;;  %3690 = vrcp.f32 %v2518_v38 }
 0xb52   :  { %3692 = vrcp.f32 %v2520_v11 }
 0xb53   :  { %v2640_v30 = vmin.f32 %v2594_v7, 0.0  ;;  %2602 = vmatmul.bf16.gmra.mxu0 %v2562_v32  ;;  %vm2624_vm13 = vcmp.gt.f32.partialorder %v2594_v7, 0.0 }
 0xb55   :  { %v2662_v25 = vmul.f32 1.442695, %v2640_v30 }
 0xb56   :  { %v3689_v60 = vpop.eup %3688 }
 0xb57   :  { %v2556_v8 = vmul.f32 %v3689_v60, %v5562_v49  ;;  %v3691_v63 = vpop.eup %3690  ;;  %3694 = vpow2.f32 %v2662_v25 }
 0xb58   :  { %v2595_v44 = vpop.f32.mrf.mxu0  ;;  %v3693_v17 = vpop.eup %3692  ;;  %v2553_v39 = vmul.f32 %v3691_v63, %v5551_v15  ;;  %v5597_v15 = vld [vmem:[%s5643_s8] ss:$0 sm:$0xff]  ;;  %s3812_s8 = smov [#allocation3]  }
 0xb59   :  { %v2564_v52 = vpack.c.bf16 %v2556_v8, %v2555_v18  ;;  %v2596_v10 = vadd.f32 %v5568_v58, %v2595_v44  ;;  %v2554_v4 = vmul.f32 %v3693_v17, %v5554_v34  ;;  %s3128_s16 = sshll.u32 %s3812_s8, 4  ;;  %s3129_s16 = int_to_ptr.vmem [resolvable:$true] %s3128_s16 }
 0xb5b   :  { %v2641_v40 = vmin.f32 %v2596_v10, 0.0  ;;  %2612 = vmatmul.bf16.vlgmr.msrb.gmra.mxu2 %v2564_v52  ;;  %v2563_v1 = vpack.c.bf16 %v2554_v4, %v2553_v39  ;;  %vm2625_vm14 = vcmp.gt.f32.partialorder %v2596_v10, 0.0 }
 0xb5d   :  { %v2664_v61 = vmul.f32 1.442695, %v2641_v40  ;;  %v3695_v56 = vpop.eup %3694 }
 0xb5e   :  { %v3188_v49 = vadd.f32 -1.0, %v3695_v56 }
 0xb5f   :  { %3696 = vpow2.f32 %v2664_v61 }
 0xb60   :  { %v2704_v19 = vsel %vm2624_vm13, %v2594_v7, %v3188_v49 }
 0xb63   :  { %2607 = vmatmul.bf16.gmra.mxu0 %v2563_v1 }
 0xb65   :  { %v3697_v31 = vpop.eup %3696 }
 0xb66   :  { %v3189_v55 = vadd.f32 -1.0, %v3697_v31 }
 0xb68   :  { %v2705_v57 = vsel %vm2625_vm14, %v2596_v10, %v3189_v55 }
 0xb69   :  { %v2717_v24 = vpack.c.bf16 %v2705_v57, %v2704_v19 }
 0xb6b   :  { %3201 = vmatmul.msk.bf16.gmra.mxu1 %vm2158_vm1, %v2717_v24 }
 0xb90   :  { %v2764_v34 = vpop.f32.mrf.mxu1 }
 0xb91   :  { %v2765_v47 = vadd.f32 %v5597_v15, %v2764_v34 }
 0xb93   :  { %v3206_v26 = vmul.f32 -1.442695, %v2765_v47 }
 0xb95   :  { %3698 = vpow2.f32 %v3206_v26 }
 0xb98   :  { %v2766_v9 = vpop.f32.mrf.mxu1 }
 0xb99   :  { %v2767_v62 = vadd.f32 %v5597_v15, %v2766_v9 }
 0xb9b   :  { %v3699_v13 = vpop.eup %3698  ;;  %v3207_v0 = vmul.f32 -1.442695, %v2767_v62 }
 0xb9c   :  { %v2852_v48 = vadd.f32 1.0, %v3699_v13 }
 0xb9d   :  { %3700 = vpow2.f32 %v3207_v0 }
 0xb9e   :  { %3702 = vrcp.f32 %v2852_v48  ;;  %v2879_v46 = vand.u32 2147483648, %v2852_v48  ;;  %v2877_v14 = vand.u32 2147483647, %v2852_v48  ;;  %vm2873_vm0 = vweird.f32 %v2852_v48 }
 0xba0   :  { %v2880_v37 = vor.u32 1.1754944e-38, %v2879_v46  ;;  %vm2878_vm6 = vcmp.eq.f32.partialorder %v2877_v14, 8.507059e+37 }
 0xba3   :  { %v3701_v5 = vpop.eup %3700 }
 0xba4   :  { %v3703_v43 = vpop.eup %3702  ;;  %v2853_v59 = vadd.f32 1.0, %v3701_v5 }
 0xba5   :  { %v2869_v36 = vmul.f32 %v3703_v43, %v2852_v48  ;;  %vm2874_vm15 = vweird.f32 %v3703_v43 }
 0xba6   :  { %3704 = vrcp.f32 %v2853_v59  ;;  %vm2875_vm5 = vmor %vm2873_vm0, %vm2874_vm15  ;;  %v2894_v29 = vand.u32 2147483648, %v2853_v59  ;;  %v2892_v54 = vand.u32 2147483647, %v2853_v59  ;;  %vm2888_vm2 = vweird.f32 %v2853_v59 }
 0xba7   :  { %v2870_v23 = vsub.f32 1.0, %v2869_v36 }
 0xba8   :  { %v2769_v53 = vpop.f32.mrf.mxu1  ;;  %v2895_v41 = vor.u32 1.1754944e-38, %v2894_v29  ;;  %vm2893_vm4 = vcmp.eq.f32.partialorder %v2892_v54, 8.507059e+37 }
 0xba9   :  { %v2871_v35 = vmul.f32 %v3703_v43, %v2870_v23  ;;  %v2770_v3 = vadd.f32 %v5597_v15, %v2769_v53 }
 0xbab   :  { %v2872_v21 = vadd.f32 %v3703_v43, %v2871_v35  ;;  %v3208_v51 = vmul.f32 -1.442695, %v2770_v3 }
 0xbac   :  { %v3705_v50 = vpop.eup %3704 }
 0xbad   :  { %v2876_v2 = vsel %vm2875_vm5, %v3703_v43, %v2872_v21  ;;  %v2884_v16 = vmul.f32 %v3705_v50, %v2853_v59  ;;  %3706 = vpow2.f32 %v3208_v51  ;;  %vm2889_vm8 = vweird.f32 %v3705_v50 }
 0xbae   :  { %v2881_v45 = vsel %vm2878_vm6, %v2880_v37, %v2876_v2  ;;  %vm2890_vm3 = vmor %vm2888_vm2, %vm2889_vm8 }
 0xbaf   :  { %3108 = vst [vmem:[#allocation3] sm:$0xff] %v2881_v45  ;;  %v2885_v20 = vsub.f32 1.0, %v2884_v16 }
 0xbb0   :  { %v2771_v27 = vpop.f32.mrf.mxu1 }
 0xbb1   :  { %v2886_v38 = vmul.f32 %v3705_v50, %v2885_v20  ;;  %v2772_v42 = vadd.f32 %v5597_v15, %v2771_v27 }
 0xbb3   :  { %v3707_v33 = vpop.eup %3706  ;;  %v2887_v6 = vadd.f32 %v3705_v50, %v2886_v38  ;;  %v3209_v22 = vmul.f32 -1.442695, %v2772_v42 }
 0xbb4   :  { %v2854_v12 = vadd.f32 1.0, %v3707_v33 }
 0xbb5   :  { %v2891_v11 = vsel %vm2890_vm3, %v3705_v50, %v2887_v6  ;;  %3708 = vpow2.f32 %v3209_v22 }
 0xbb6   :  { %v2896_v7 = vsel %vm2893_vm4, %v2895_v41, %v2891_v11  ;;  %3710 = vrcp.f32 %v2854_v12  ;;  %v2907_v8 = vand.u32 2147483647, %v2854_v12  ;;  %v2909_v25 = vand.u32 2147483648, %v2854_v12 }
 0xbb7   :  { %3109 = vst [vmem:[#allocation3 + $0x8] sm:$0xff] %v2896_v7  ;;  %vm2903_vm7 = vweird.f32 %v2854_v12 }
 0xbb8   :  { %v2910_v4 = vor.u32 1.1754944e-38, %v2909_v25  ;;  %vm2908_vm11 = vcmp.eq.f32.partialorder %v2907_v8, 8.507059e+37 }
 0xbbb   :  { %v3709_v32 = vpop.eup %3708 }
 0xbbc   :  { %v3711_v30 = vpop.eup %3710  ;;  %v2855_v28 = vadd.f32 1.0, %v3709_v32 }
 0xbbd   :  { %v2899_v60 = vmul.f32 %v3711_v30, %v2854_v12  ;;  %vm2904_vm9 = vweird.f32 %v3711_v30 }
 0xbbe   :  { %3712 = vrcp.f32 %v2855_v28  ;;  %vm2905_vm10 = vmor %vm2903_vm7, %vm2904_vm9  ;;  %v2922_v19 = vand.u32 2147483647, %v2855_v28  ;;  %v2924_v57 = vand.u32 2147483648, %v2855_v28  ;;  %vm2918_vm13 = vweird.f32 %v2855_v28 }
 0xbbf   :  { %v2900_v18 = vsub.f32 1.0, %v2899_v60 }
 0xbc0   :  { %v2598_v44 = vpop.f32.mrf.mxu0  ;;  %v2774_v63 = vpop.f32.mrf.mxu1  ;;  %vm2923_vm15 = vcmp.eq.f32.partialorder %v2922_v19, 8.507059e+37  ;;  %v2925_v43 = vor.u32 1.1754944e-38, %v2924_v57 }
 0xbc1   :  { %v2901_v52 = vmul.f32 %v3711_v30, %v2900_v18  ;;  %v2599_v10 = vadd.f32 %v5568_v58, %v2598_v44  ;;  %v2775_v17 = vadd.f32 %v5597_v15, %v2774_v63 }
 0xbc3   :  { %v2902_v40 = vadd.f32 %v3711_v30, %v2901_v52  ;;  %v3210_v61 = vmul.f32 -1.442695, %v2775_v17  ;;  %v2642_v56 = vmin.f32 %v2599_v10, 0.0  ;;  %vm2626_vm0 = vcmp.gt.f32.partialorder %v2599_v10, 0.0 }
 0xbc4   :  { %v3713_v39 = vpop.eup %3712 }
 0xbc5   :  { %v2906_v1 = vsel %vm2905_vm10, %v3711_v30, %v2902_v40  ;;  %v2914_v49 = vmul.f32 %v3713_v39, %v2855_v28  ;;  %3714 = vpow2.f32 %v3210_v61  ;;  %v2666_v24 = vmul.f32 1.442695, %v2642_v56 }
 0xbc6   :  { %v2911_v31 = vsel %vm2908_vm11, %v2910_v4, %v2906_v1  ;;  %vm2919_vm12 = vweird.f32 %v3713_v39 }
 0xbc7   :  { %3110 = vst [vmem:[#allocation3 + $0x10] sm:$0xff] %v2911_v31  ;;  %v2915_v55 = vsub.f32 1.0, %v2914_v49  ;;  %vm2920_vm14 = vmor %vm2918_vm13, %vm2919_vm12  ;;  %3716 = vpow2.f32 %v2666_v24 }
 0xbc8   :  { %v2600_v34 = vpop.f32.mrf.mxu0  ;;  %v2776_v47 = vpop.f32.mrf.mxu1 }
 0xbc9   :  { %v2916_v26 = vmul.f32 %v3713_v39, %v2915_v55  ;;  %v2601_v9 = vadd.f32 %v5568_v58, %v2600_v34  ;;  %v2777_v62 = vadd.f32 %v5597_v15, %v2776_v47 }
 0xbcb   :  { %v2917_v13 = vadd.f32 %v3713_v39, %v2916_v26  ;;  %v2643_v0 = vmin.f32 %v2601_v9, 0.0  ;;  %v3211_v48 = vmul.f32 -1.442695, %v2777_v62  ;;  %v3715_v5 = vpop.eup %3714  ;;  %vm2627_vm5 = vcmp.gt.f32.partialorder %v2601_v9, 0.0 }
 0xbcc   :  { %v2856_v36 = vadd.f32 1.0, %v3715_v5 }
 0xbcd   :  { %v2921_v59 = vsel %vm2920_vm14, %v3713_v39, %v2917_v13  ;;  %v2668_v23 = vmul.f32 1.442695, %v2643_v0  ;;  %3718 = vpow2.f32 %v3211_v48  ;;  %v3717_v14 = vpop.eup %3716 }
 0xbce   :  { %v2926_v46 = vsel %vm2923_vm15, %v2925_v43, %v2921_v59  ;;  %3720 = vrcp.f32 %v2856_v36  ;;  %v3190_v37 = vadd.f32 -1.0, %v3717_v14  ;;  %v2939_v54 = vand.u32 2147483648, %v2856_v36 }
 0xbcf   :  { %3111 = vst [vmem:[#allocation3 + $0x18] sm:$0xff] %v2926_v46  ;;  %3722 = vpow2.f32 %v2668_v23  ;;  %v2937_v22 = vand.u32 2147483647, %v2856_v36  ;;  %vm2933_vm8 = vweird.f32 %v2856_v36 }
 0xbd0   :  { %v2603_v53 = vpop.f32.mrf.mxu0  ;;  %v2706_v38 = vsel %vm2626_vm0, %v2599_v10, %v3190_v37  ;;  %v2940_v32 = vor.u32 1.1754944e-38, %v2939_v54 }
 0xbd1   :  { %v5608_v35 = vadd.f32 %v5568_v58, %v2603_v53  ;;  %vm2938_vm3 = vcmp.eq.f32.partialorder %v2937_v22, 8.507059e+37 }
 0xbd3   :  { %v3719_v3 = vpop.eup %3718  ;;  %v2644_v21 = vmin.f32 %v5608_v35, 0.0  ;;  %vm2628_vm11 = vcmp.gt.f32.partialorder %v5608_v35, 0.0 }
 0xbd4   :  { %v2857_v51 = vadd.f32 1.0, %v3719_v3  ;;  %v3721_v50 = vpop.eup %3720 }
 0xbd5   :  { %v3723_v2 = vpop.eup %3722  ;;  %v2929_v16 = vmul.f32 %v3721_v50, %v2856_v36  ;;  %v2670_v20 = vmul.f32 1.442695, %v2644_v21  ;;  %vm2934_vm6 = vweird.f32 %v3721_v50 }
 0xbd6   :  { %3724 = vrcp.f32 %v2857_v51  ;;  %v3191_v45 = vadd.f32 -1.0, %v3723_v2  ;;  %vm2935_vm2 = vmor %vm2933_vm8, %vm2934_vm6  ;;  %v2954_v25 = vand.u32 2147483648, %v2857_v51  ;;  %v2952_v10 = vand.u32 2147483647, %v2857_v51 }
 0xbd7   :  { %v2930_v29 = vsub.f32 1.0, %v2929_v16  ;;  %3726 = vpow2.f32 %v2670_v20  ;;  %vm2948_vm9 = vweird.f32 %v2857_v51 }
 0xbd8   :  { %v2605_v27 = vpop.f32.mrf.mxu0  ;;  %v2707_v42 = vsel %vm2627_vm5, %v2601_v9, %v3191_v45  ;;  %v2955_v39 = vor.u32 1.1754944e-38, %v2954_v25  ;;  %vm2953_vm10 = vcmp.eq.f32.partialorder %v2952_v10, 8.507059e+37 }
 0xbd9   :  { %v2606_v33 = vadd.f32 %v5568_v58, %v2605_v27  ;;  %v2931_v6 = vmul.f32 %v3721_v50, %v2930_v29  ;;  %v2718_v41 = vpack.c.bf16 %v2707_v42, %v2706_v38 }
 0xbdb   :  { %v2645_v12 = vmin.f32 %v2606_v33, 0.0  ;;  %v2932_v7 = vadd.f32 %v3721_v50, %v2931_v6  ;;  %3202 = vmatmul.msk.bf16.gmra.mxu1 %vm2158_vm1, %v2718_v41  ;;  %vm2629_vm12 = vcmp.gt.f32.partialorder %v2606_v33, 0.0 }
 0xbdc   :  { %v3725_v11 = vpop.eup %3724 }
 0xbdd   :  { %v2944_v30 = vmul.f32 %v3725_v11, %v2857_v51  ;;  %v2672_v28 = vmul.f32 1.442695, %v2645_v12  ;;  %v2936_v60 = vsel %vm2935_vm2, %v3721_v50, %v2932_v7  ;;  %v3727_v63 = vpop.eup %3726  ;;  %vm2949_vm4 = vweird.f32 %v3725_v11 }
 0xbde   :  { %v2941_v18 = vsel %vm2938_vm3, %v2940_v32, %v2936_v60  ;;  %v2613_v40 = vpop.f32.mrf.mxu2  ;;  %vm2950_vm7 = vmor %vm2948_vm9, %vm2949_vm4  ;;  %v3192_v4 = vadd.f32 -1.0, %v3727_v63 }
 0xbdf   :  { %v2945_v8 = vsub.f32 1.0, %v2944_v30  ;;  %3728 = vpow2.f32 %v2672_v28  ;;  %3112 = vst [vmem:[#allocation3 + $0x20] sm:$0xff] %v2941_v18  ;;  %v2614_v36 = vadd.f32 %v5568_v58, %v2613_v40 }
 0xbe0   :  { %v2608_v44 = vpop.f32.mrf.mxu0  ;;  %v2708_v19 = vsel %vm2628_vm11, %v5608_v35, %v3192_v4 }
 0xbe1   :  { %v2946_v52 = vmul.f32 %v3725_v11, %v2945_v8  ;;  %v2609_v17 = vadd.f32 %v5568_v58, %v2608_v44  ;;  %v2648_v3 = vmin.f32 %v2614_v36, 0.0  ;;  %vm2632_vm2 = vcmp.gt.f32.partialorder %v2614_v36, 0.0 }
 0xbe3   :  { %v2947_v61 = vadd.f32 %v3725_v11, %v2946_v52  ;;  %v2646_v49 = vmin.f32 %v2609_v17, 0.0  ;;  %v2678_v16 = vmul.f32 1.442695, %v2648_v3  ;;  %vm2630_vm13 = vcmp.gt.f32.partialorder %v2609_v17, 0.0 }
 0xbe5   :  { %v3729_v56 = vpop.eup %3728  ;;  %v2951_v1 = vsel %vm2950_vm7, %v3725_v11, %v2947_v61  ;;  %v2674_v26 = vmul.f32 1.442695, %v2646_v49 }
 0xbe6   :  { %v2956_v31 = vsel %vm2953_vm10, %v2955_v39, %v2951_v1  ;;  %v3193_v55 = vadd.f32 -1.0, %v3729_v56  ;;  %v2615_v0 = vpop.f32.mrf.mxu2 }
 0xbe7   :  { %3113 = vst [vmem:[#allocation3 + $0x28] sm:$0xff] %v2956_v31  ;;  %3730 = vpow2.f32 %v2674_v26  ;;  %v2616_v43 = vadd.f32 %v5568_v58, %v2615_v0 }
 0xbe8   :  { %v2709_v57 = vsel %vm2629_vm12, %v2606_v33, %v3193_v55  ;;  %v2779_v24 = vpop.f32.mrf.mxu1  ;;  %v2610_v34 = vpop.f32.mrf.mxu0 }
 0xbe9   :  { %v2719_v47 = vpack.c.bf16 %v2709_v57, %v2708_v19  ;;  %v2780_v9 = vadd.f32 %v5597_v15, %v2779_v24  ;;  %v2611_v62 = vadd.f32 %v5568_v58, %v2610_v34  ;;  %v2649_v53 = vmin.f32 %v2616_v43, 0.0 }
 0xbea   :  { %vm2633_vm8 = vcmp.gt.f32.partialorder %v2616_v43, 0.0 }
 0xbeb   :  { %v3212_v13 = vmul.f32 -1.442695, %v2780_v9  ;;  %v2647_v48 = vmin.f32 %v2611_v62, 0.0  ;;  %3203 = vmatmul.msk.bf16.gmra.mxu1 %vm2158_vm1, %v2719_v47  ;;  %v2680_v37 = vmul.f32 1.442695, %v2649_v53  ;;  %vm2631_vm14 = vcmp.gt.f32.partialorder %v2611_v62, 0.0 }
 0xbed   :  { %3732 = vpow2.f32 %v3212_v13  ;;  %v2676_v5 = vmul.f32 1.442695, %v2647_v48  ;;  %v3731_v46 = vpop.eup %3730 }
 0xbee   :  { %v3194_v50 = vadd.f32 -1.0, %v3731_v46 }
 0xbef   :  { %3734 = vpow2.f32 %v2676_v5 }
 0xbf0   :  { %v2781_v59 = vpop.f32.mrf.mxu1  ;;  %v2710_v45 = vsel %vm2630_vm13, %v2609_v17, %v3194_v50 }
 0xbf1   :  { %v2782_v23 = vadd.f32 %v5597_v15, %v2781_v59 }
 0xbf3   :  { %v3213_v35 = vmul.f32 -1.442695, %v2782_v23  ;;  %v3733_v14 = vpop.eup %3732 }
 0xbf4   :  { %v2858_v21 = vadd.f32 1.0, %v3733_v14 }
 0xbf5   :  { %3736 = vpow2.f32 %v3213_v35  ;;  %v3735_v51 = vpop.eup %3734 }
 0xbf6   :  { %3738 = vrcp.f32 %v2858_v21  ;;  %v3195_v2 = vadd.f32 -1.0, %v3735_v51  ;;  %v2969_v6 = vand.u32 2147483648, %v2858_v21  ;;  %v2967_v41 = vand.u32 2147483647, %v2858_v21 }
 0xbf7   :  { %3740 = vpow2.f32 %v2680_v37  ;;  %vm2963_vm0 = vweird.f32 %v2858_v21 }
 0xbf8   :  { %v2711_v20 = vsel %vm2631_vm14, %v2611_v62, %v3195_v2  ;;  %3742 = vpow2.f32 %v2678_v16  ;;  %v2970_v30 = vor.u32 1.1754944e-38, %v2969_v6  ;;  %vm2968_vm6 = vcmp.eq.f32.partialorder %v2967_v41, 8.507059e+37 }
 0xbf9   :  { %v2720_v29 = vpack.c.bf16 %v2711_v20, %v2710_v45 }
 0xbfb   :  { %v3737_v58 = vpop.eup %3736  ;;  %3204 = vmatmul.msk.bf16.gmra.mxu1 %vm2158_vm1, %v2720_v29 }
 0xbfc   :  { %v2859_v27 = vadd.f32 1.0, %v3737_v58  ;;  %v3739_v38 = vpop.eup %3738 }
 0xbfd   :  { %v2959_v54 = vmul.f32 %v3739_v38, %v2858_v21  ;;  %v3741_v33 = vpop.eup %3740  ;;  %vm2964_vm15 = vweird.f32 %v3739_v38 }
 0xbfe   :  { %3744 = vrcp.f32 %v2859_v27  ;;  %v3743_v12 = vpop.eup %3742  ;;  %v3197_v7 = vadd.f32 -1.0, %v3741_v33  ;;  %vm2965_vm5 = vmor %vm2963_vm0, %vm2964_vm15  ;;  %v2984_v63 = vand.u32 2147483648, %v2859_v27  ;;  %v2982_v10 = vand.u32 2147483647, %v2859_v27 }
 0xbff   :  { %v2960_v42 = vsub.f32 1.0, %v2959_v54  ;;  %v3196_v60 = vadd.f32 -1.0, %v3743_v12  ;;  %vm2978_vm4 = vweird.f32 %v2859_v27 }
 0xc00   :  { %v2713_v44 = vsel %vm2633_vm8, %v2616_v43, %v3197_v7  ;;  %v2985_v39 = vor.u32 1.1754944e-38, %v2984_v63  ;;  %vm2983_vm7 = vcmp.eq.f32.partialorder %v2982_v10, 8.507059e+37 }
 0xc01   :  { %v2961_v22 = vmul.f32 %v3739_v38, %v2960_v42  ;;  %v2712_v17 = vsel %vm2632_vm2, %v2614_v36, %v3196_v60 }
 0xc02   :  { %v2721_v40 = vpack.c.bf16 %v2713_v44, %v2712_v17 }
 0xc03   :  { %v2962_v32 = vadd.f32 %v3739_v38, %v2961_v22 }
 0xc04   :  { %v3745_v11 = vpop.eup %3744 }
 0xc05   :  { %v2974_v28 = vmul.f32 %v3745_v11, %v2859_v27  ;;  %v2966_v18 = vsel %vm2965_vm5, %v3739_v38, %v2962_v32  ;;  %vm2979_vm3 = vweird.f32 %v3745_v11 }
 0xc06   :  { %v2971_v8 = vsel %vm2968_vm6, %v2970_v30, %v2966_v18  ;;  %vm2980_vm9 = vmor %vm2978_vm4, %vm2979_vm3 }
 0xc07   :  { %v2975_v25 = vsub.f32 1.0, %v2974_v28  ;;  %3114 = vst [vmem:[#allocation3 + $0x30] sm:$0xff] %v2971_v8 }
 0xc09   :  { %v2976_v52 = vmul.f32 %v3745_v11, %v2975_v25 }
 0xc0b   :  { %v2977_v61 = vadd.f32 %v3745_v11, %v2976_v52  ;;  %3205 = vmatmul.msk.bf16.gmra.mxu1 %vm2158_vm1, %v2721_v40 }
 0xc0d   :  { %v2981_v4 = vsel %vm2980_vm9, %v3745_v11, %v2977_v61 }
 0xc0e   :  { %v2986_v56 = vsel %vm2983_vm7, %v2985_v39, %v2981_v4 }
 0xc0f   :  { %3115 = vst [vmem:[#allocation3 + $0x38] sm:$0xff] %v2986_v56 }
 0xc58   :  { %v2784_v1 = vpop.f32.mrf.mxu1 }
 0xc59   :  { %v2785_v49 = vadd.f32 %v5597_v15, %v2784_v1 }
 0xc5b   :  { %v3214_v31 = vmul.f32 -1.442695, %v2785_v49 }
 0xc5d   :  { %3746 = vpow2.f32 %v3214_v31 }
 0xc60   :  { %v2786_v55 = vpop.f32.mrf.mxu1 }
 0xc61   :  { %v2787_v19 = vadd.f32 %v5597_v15, %v2786_v55 }
 0xc63   :  { %v3747_v57 = vpop.eup %3746  ;;  %v3215_v24 = vmul.f32 -1.442695, %v2787_v19 }
 0xc64   :  { %v2860_v34 = vadd.f32 1.0, %v3747_v57 }
 0xc65   :  { %3748 = vpow2.f32 %v3215_v24 }
 0xc66   :  { %3750 = vrcp.f32 %v2860_v34  ;;  %v2999_v43 = vand.u32 2147483648, %v2860_v34  ;;  %v2997_v23 = vand.u32 2147483647, %v2860_v34  ;;  %vm2993_vm10 = vweird.f32 %v2860_v34 }
 0xc68   :  { %v2789_v47 = vpop.f32.mrf.mxu1  ;;  %v3000_v21 = vor.u32 1.1754944e-38, %v2999_v43  ;;  %vm2998_vm12 = vcmp.eq.f32.partialorder %v2997_v23, 8.507059e+37 }
 0xc69   :  { %v2790_v26 = vadd.f32 %v5597_v15, %v2789_v47 }
 0xc6b   :  { %v3749_v9 = vpop.eup %3748  ;;  %v3216_v62 = vmul.f32 -1.442695, %v2790_v26 }
 0xc6c   :  { %v3751_v13 = vpop.eup %3750  ;;  %v2861_v0 = vadd.f32 1.0, %v3749_v9 }
 0xc6d   :  { %v2989_v48 = vmul.f32 %v3751_v13, %v2860_v34  ;;  %3752 = vpow2.f32 %v3216_v62  ;;  %vm2994_vm1 = vweird.f32 %v3751_v13 }
 0xc6e   :  { %3754 = vrcp.f32 %v2861_v0  ;;  %vm2995_vm11 = vmor %vm2993_vm10, %vm2994_vm1  ;;  %v3014_v45 = vand.u32 2147483648, %v2861_v0  ;;  %v3012_v58 = vand.u32 2147483647, %v2861_v0  ;;  %vm3008_vm14 = vweird.f32 %v2861_v0 }
 0xc6f   :  { %v2990_v5 = vsub.f32 1.0, %v2989_v48 }
 0xc70   :  { %v2791_v59 = vpop.f32.mrf.mxu1  ;;  %v3015_v33 = vor.u32 1.1754944e-38, %v3014_v45  ;;  %vm3013_vm0 = vcmp.eq.f32.partialorder %v3012_v58, 8.507059e+37 }
 0xc71   :  { %v2991_v36 = vmul.f32 %v3751_v13, %v2990_v5  ;;  %v2792_v46 = vadd.f32 %v5597_v15, %v2791_v59 }
 0xc73   :  { %v3753_v53 = vpop.eup %3752  ;;  %v2992_v35 = vadd.f32 %v3751_v13, %v2991_v36  ;;  %v3217_v14 = vmul.f32 -1.442695, %v2792_v46 }
 0xc74   :  { %v3755_v3 = vpop.eup %3754  ;;  %v2862_v51 = vadd.f32 1.0, %v3753_v53 }
 0xc75   :  { %v2996_v50 = vsel %vm2995_vm11, %v3751_v13, %v2992_v35  ;;  %v3004_v37 = vmul.f32 %v3755_v3, %v2861_v0  ;;  %3756 = vpow2.f32 %v3217_v14  ;;  %vm3009_vm13 = vweird.f32 %v3755_v3 }
 0xc76   :  { %v3001_v2 = vsel %vm2998_vm12, %v3000_v21, %v2996_v50  ;;  %3758 = vrcp.f32 %v2862_v51  ;;  %vm3010_vm15 = vmor %vm3008_vm14, %vm3009_vm13  ;;  %v3029_v32 = vand.u32 2147483648, %v2862_v51  ;;  %v3027_v28 = vand.u32 2147483647, %v2862_v51 }
 0xc77   :  { %3116 = vst [vmem:[#allocation3 + $0x40] sm:$0xff] %v3001_v2  ;;  %v3005_v16 = vsub.f32 1.0, %v3004_v37  ;;  %vm3023_vm6 = vweird.f32 %v2862_v51 }
 0xc78   :  { %v2794_v29 = vpop.f32.mrf.mxu1  ;;  %v3030_v44 = vor.u32 1.1754944e-38, %v3029_v32  ;;  %vm3028_vm2 = vcmp.eq.f32.partialorder %v3027_v28, 8.507059e+37 }
 0xc79   :  { %v3006_v20 = vmul.f32 %v3755_v3, %v3005_v16  ;;  %v2795_v27 = vadd.f32 %v5597_v15, %v2794_v29 }
 0xc7b   :  { %v3757_v38 = vpop.eup %3756  ;;  %v3007_v54 = vadd.f32 %v3755_v3, %v3006_v20  ;;  %v3218_v22 = vmul.f32 -1.442695, %v2795_v27 }
 0xc7c   :  { %v3759_v42 = vpop.eup %3758  ;;  %v2863_v6 = vadd.f32 1.0, %v3757_v38 }
 0xc7d   :  { %v3011_v41 = vsel %vm3010_vm15, %v3755_v3, %v3007_v54  ;;  %v3019_v12 = vmul.f32 %v3759_v42, %v2862_v51  ;;  %vm3024_vm5 = vweird.f32 %v3759_v42 }
 0xc7e   :  { %v3016_v11 = vsel %vm3013_vm0, %v3015_v33, %v3011_v41  ;;  %3760 = vrcp.f32 %v2863_v6  ;;  %vm3025_vm8 = vmor %vm3023_vm6, %vm3024_vm5  ;;  %v3044_v4 = vand.u32 2147483648, %v2863_v6  ;;  %v3042_v1 = vand.u32 2147483647, %v2863_v6 }
 0xc7f   :  { %3117 = vst [vmem:[#allocation3 + $0x48] sm:$0xff] %v3016_v11  ;;  %v3020_v7 = vsub.f32 1.0, %v3019_v12  ;;  %3762 = vpow2.f32 %v3218_v22  ;;  %vm3038_vm4 = vweird.f32 %v2863_v6 }
 0xc80   :  { %v2796_v60 = vpop.f32.mrf.mxu1  ;;  %v3045_v57 = vor.u32 1.1754944e-38, %v3044_v4  ;;  %vm3043_vm7 = vcmp.eq.f32.partialorder %v3042_v1, 8.507059e+37 }
 0xc81   :  { %v3021_v30 = vmul.f32 %v3759_v42, %v3020_v7  ;;  %v2797_v18 = vadd.f32 %v5597_v15, %v2796_v60 }
 0xc83   :  { %v3022_v8 = vadd.f32 %v3759_v42, %v3021_v30  ;;  %v3219_v63 = vmul.f32 -1.442695, %v2797_v18 }
 0xc84   :  { %v3761_v25 = vpop.eup %3760 }
 0xc85   :  { %v3763_v52 = vpop.eup %3762  ;;  %v3026_v10 = vsel %vm3025_vm8, %v3759_v42, %v3022_v8  ;;  %v3034_v17 = vmul.f32 %v3761_v25, %v2863_v6  ;;  %3764 = vpow2.f32 %v3219_v63  ;;  %vm3039_vm3 = vweird.f32 %v3761_v25 }
 0xc86   :  { %v3031_v40 = vsel %vm3028_vm2, %v3030_v44, %v3026_v10  ;;  %v2864_v61 = vadd.f32 1.0, %v3763_v52  ;;  %vm3040_vm9 = vmor %vm3038_vm4, %vm3039_vm3 }
 0xc87   :  { %3118 = vst [vmem:[#allocation3 + $0x50] sm:$0xff] %v3031_v40  ;;  %v3035_v39 = vsub.f32 1.0, %v3034_v17 }
 0xc88   :  { %3766 = vrcp.f32 %v2864_v61  ;;  %v2799_v49 = vpop.f32.mrf.mxu1  ;;  %v3059_v48 = vand.u32 2147483648, %v2864_v61  ;;  %v3057_v59 = vand.u32 2147483647, %v2864_v61  ;;  %vm3053_vm10 = vweird.f32 %v2864_v61 }
 0xc89   :  { %v3036_v56 = vmul.f32 %v3761_v25, %v3035_v39  ;;  %v2800_v31 = vadd.f32 %v5597_v15, %v2799_v49 }
 0xc8a   :  { %v3060_v14 = vor.u32 1.1754944e-38, %v3059_v48  ;;  %vm3058_vm12 = vcmp.eq.f32.partialorder %v3057_v59, 8.507059e+37 }
 0xc8b   :  { %v3037_v55 = vadd.f32 %v3761_v25, %v3036_v56  ;;  %v3765_v19 = vpop.eup %3764  ;;  %v3220_v24 = vmul.f32 -1.442695, %v2800_v31 }
 0xc8c   :  { %v2865_v47 = vadd.f32 1.0, %v3765_v19 }
 0xc8d   :  { %v3041_v34 = vsel %vm3040_vm9, %v3761_v25, %v3037_v55  ;;  %3768 = vpow2.f32 %v3220_v24 }
 0xc8e   :  { %v3767_v26 = vpop.eup %3766  ;;  %v3046_v9 = vsel %vm3043_vm7, %v3045_v57, %v3041_v34  ;;  %3770 = vrcp.f32 %v2865_v47  ;;  %v3072_v2 = vand.u32 2147483647, %v2865_v47  ;;  %vm3068_vm14 = vweird.f32 %v2865_v47 }
 0xc8f   :  { %3119 = vst [vmem:[#allocation3 + $0x58] sm:$0xff] %v3046_v9  ;;  %v3049_v62 = vmul.f32 %v3767_v26, %v2864_v61  ;;  %vm3054_vm1 = vweird.f32 %v3767_v26 }
 0xc90   :  { %v2801_v0 = vpop.f32.mrf.mxu1  ;;  %vm3055_vm11 = vmor %vm3053_vm10, %vm3054_vm1  ;;  %vm3073_vm0 = vcmp.eq.f32.partialorder %v3072_v2, 8.507059e+37 }
 0xc91   :  { %v3050_v13 = vsub.f32 1.0, %v3049_v62  ;;  %v2802_v5 = vadd.f32 %v5597_v15, %v2801_v0  ;;  %v3074_v15 = vand.u32 2147483648, %v2865_v47 }
 0xc93   :  { %v3051_v43 = vmul.f32 %v3767_v26, %v3050_v13  ;;  %v3769_v36 = vpop.eup %3768  ;;  %v3221_v23 = vmul.f32 -1.442695, %v2802_v5  ;;  %v3075_v58 = vor.u32 1.1754944e-38, %v3074_v15 }
 0xc94   :  { %v3771_v46 = vpop.eup %3770  ;;  %v2866_v35 = vadd.f32 1.0, %v3769_v36 }
 0xc95   :  { %v3052_v53 = vadd.f32 %v3767_v26, %v3051_v43  ;;  %v3064_v3 = vmul.f32 %v3771_v46, %v2865_v47  ;;  %3772 = vpow2.f32 %v3221_v23  ;;  %vm3069_vm13 = vweird.f32 %v3771_v46 }
 0xc96   :  { %3774 = vrcp.f32 %v2866_v35  ;;  %vm3070_vm15 = vmor %vm3068_vm14, %vm3069_vm13  ;;  %v3089_v33 = vand.u32 2147483648, %v2866_v35  ;;  %v3087_v22 = vand.u32 2147483647, %v2866_v35  ;;  %vm3083_vm6 = vweird.f32 %v2866_v35 }
 0xc97   :  { %v3056_v21 = vsel %vm3055_vm11, %v3767_v26, %v3052_v53  ;;  %v3065_v50 = vsub.f32 1.0, %v3064_v3 }
 0xc98   :  { %v3061_v51 = vsel %vm3058_vm12, %v3060_v14, %v3056_v21  ;;  %v3090_v11 = vor.u32 1.1754944e-38, %v3089_v33  ;;  %vm3088_vm2 = vcmp.eq.f32.partialorder %v3087_v22, 8.507059e+37 }
 0xc99   :  { %3120 = vst [vmem:[#allocation3 + $0x60] sm:$0xff] %v3061_v51  ;;  %v3066_v37 = vmul.f32 %v3771_v46, %v3065_v50 }
 0xc9b   :  { %v3773_v16 = vpop.eup %3772  ;;  %v3067_v45 = vadd.f32 %v3771_v46, %v3066_v37 }
 0xc9c   :  { %v3775_v20 = vpop.eup %3774  ;;  %v2867_v29 = vadd.f32 1.0, %v3773_v16 }
 0xc9d   :  { %v3071_v27 = vsel %vm3070_vm15, %v3771_v46, %v3067_v45  ;;  %v3079_v38 = vmul.f32 %v3775_v20, %v2866_v35  ;;  %vm3084_vm5 = vweird.f32 %v3775_v20 }
 0xc9e   :  { %v3076_v54 = vsel %vm3073_vm0, %v3075_v58, %v3071_v27  ;;  %3776 = vrcp.f32 %v2867_v29  ;;  %vm3085_vm8 = vmor %vm3083_vm6, %vm3084_vm5  ;;  %v3104_v60 = vand.u32 2147483648, %v2867_v29  ;;  %v3102_v8 = vand.u32 2147483647, %v2867_v29 }
 0xc9f   :  { %3121 = vst [vmem:[#allocation3 + $0x68] sm:$0xff] %v3076_v54  ;;  %v3080_v42 = vsub.f32 1.0, %v3079_v38  ;;  %vm3098_vm4 = vweird.f32 %v2867_v29 }
 0xca0   :  { %v3105_v44 = vor.u32 1.1754944e-38, %v3104_v60  ;;  %vm3103_vm7 = vcmp.eq.f32.partialorder %v3102_v8, 8.507059e+37 }
 0xca1   :  { %v3081_v6 = vmul.f32 %v3775_v20, %v3080_v42 }
 0xca3   :  { %v3082_v41 = vadd.f32 %v3775_v20, %v3081_v6 }
 0xca4   :  { %v3777_v12 = vpop.eup %3776 }
 0xca5   :  { %v3086_v7 = vsel %vm3085_vm8, %v3775_v20, %v3082_v41  ;;  %v3094_v32 = vmul.f32 %v3777_v12, %v2867_v29  ;;  %vm3099_vm3 = vweird.f32 %v3777_v12 }
 0xca6   :  { %v3091_v30 = vsel %vm3088_vm2, %v3090_v11, %v3086_v7  ;;  %vm3100_vm9 = vmor %vm3098_vm4, %vm3099_vm3 }
 0xca7   :  { %3122 = vst [vmem:[#allocation3 + $0x70] sm:$0xff] %v3091_v30  ;;  %v3095_v28 = vsub.f32 1.0, %v3094_v32 }
 0xca9   :  { %v3096_v18 = vmul.f32 %v3777_v12, %v3095_v28 }
 0xcab   :  { %v3097_v25 = vadd.f32 %v3777_v12, %v3096_v18 }
 0xcad   :  { %v3101_v63 = vsel %vm3100_vm9, %v3777_v12, %v3097_v25 }
 0xcae   :  { %v3106_v52 = vsel %vm3103_vm7, %v3105_v44, %v3101_v63 }
 0xcaf   :  { %3123 = vst [vmem:[#allocation3 + $0x78] sm:$0xff] %v3106_v52 }
 0xcb0   :  { %3136 = dma.vmem_to_hbm [thread:$0]  %s3129_s16, 2048, %s3131_s19, [#allocation4], %s3813_s20, %s3813_s20, %s3814_s21  }
 0xcb1   :  { %3802 = dma.done.wait [#allocation4], 2048  }
 0xcb2   :  { %3803 = vsyncadd [#allocation4], 4294965248 }
 0xcb3   :  { %3141 = vsyncpa [#allocation4], 1 }

</bundles_post_ra>
